<compile_context>
chip_gen: v7x
topology: tpu7x:2x2x1
jax: 0.10.0
libtpu: 0.0.40
codegen_flags: <defaults>
</compile_context>

<pallas_src>
import jax
import jax.numpy as jnp
import numpy as np
from jax import lax
from jax.experimental import pallas as pl
from jax.experimental.pallas import tpu as pltpu

LANE = 128          # vreg lane width
GB = LANE // 4      # lanes per gate block in the gate-packed layout (32)


# ---------------------------------------------------------------------------
# Kernel
# ---------------------------------------------------------------------------

def _lstm_scorer_kernel(fx_ref, px_ref,
                        wf_ih_ref, wf_hh_ref, bf_ref,
                        wt_ihf_ref, wt_ihp_ref, wt_hh_ref, bt_ref,
                        wo_ref, bo_ref,
                        out_ref,
                        zf_sc, zp_sc, h_sc):
    F_len = fx_ref.shape[0]
    P_len = px_ref.shape[0]

    def sig(x):
        # sigmoid(x) = 0.5*tanh(0.5*x) + 0.5 : single EUP push + VPU fixups.
        return 0.5 * jnp.tanh(0.5 * x) + 0.5

    # ---- hoisted input projection for the feature LSTM (off the serial path)
    zf_sc[...] = (jnp.dot(fx_ref[...], wf_ih_ref[...],
                          preferred_element_type=jnp.float32) + bf_ref[...])

    def run_lstm(n_steps, z_sc, w_hh_ref, h_out_sc):
        # Gate-packed recurrence: z/h/c are single (1, 128) vregs; gates sit
        # at lane blocks [ i | f | g | o ] of GB = 32 lanes each.  Lanes >= GB
        # of h/c may hold bounded junk; the packed weight rows there are zero,
        # so the junk never reaches valid lanes.
        h = jnp.zeros((1, LANE), jnp.float32)
        c = jnp.zeros((1, LANE), jnp.float32)
        for t in range(n_steps):                       # fully unrolled, static
            z = z_sc[pl.ds(t, 1), :] + jnp.dot(
                h.astype(jnp.bfloat16), w_hh_ref[...],
                preferred_element_type=jnp.float32)
            s = sig(z)                                 # [ i | f | . | o ]
            g = jnp.tanh(z)                            # [ . | . | g | . ]
            f_v = pltpu.roll(s, shift=LANE - GB, axis=1)      # f -> block 0
            g_v = pltpu.roll(g, shift=LANE - 2 * GB, axis=1)  # g -> block 0
            o_v = pltpu.roll(s, shift=LANE - 3 * GB, axis=1)  # o -> block 0
            c = f_v * c + s * g_v                      # i is s at block 0
            h = o_v * jnp.tanh(c)
            if h_out_sc is not None:
                h_out_sc[pl.ds(t, 1), :] = h           # static-index row store
        return h

    # ---------------- feature LSTM ----------------
    hF = run_lstm(F_len, zf_sc, wf_hh_ref, None)       # (1,128); valid lanes [0,E)

    # ---------------- total LSTM ----------------
    # concat(hF, px_t) @ Wt_ih == hF @ Wt_ih[:E] + px_t @ Wt_ih[E:]  (hoisted)
    zF = (jnp.dot(hF, wt_ihf_ref[...], preferred_element_type=jnp.float32)
          + bt_ref[...])                               # (1, 128)
    zp_sc[...] = jnp.dot(px_ref[...], wt_ihp_ref[...],
                         preferred_element_type=jnp.float32) + zF

    run_lstm(P_len, zp_sc, wt_hh_ref, h_sc)

    # ---------------- linear head + sigmoid (lane-dense output) -------------
    # wo occupies column 0 of a (128, 128) matrix (zero elsewhere, zero rows
    # past H) -> full-width unmasked stores; wrapper takes column 0.
    logits = (jnp.dot(h_sc[...], wo_ref[...],
                      preferred_element_type=jnp.float32) + bo_ref[0])
    out_ref[...] = sig(logits)


# ---------------------------------------------------------------------------
# One-time parameter packing (NOT on the per-call path).
# ---------------------------------------------------------------------------

def _pack_gate_cols(w, hid):
    """(rows, 4*hid) -> (rows, 128): gate k occupies lanes [k*GB, k*GB+hid)."""
    rows = w.shape[0]
    out = jnp.zeros((rows, LANE), w.dtype)
    for k in range(4):
        out = out.at[:, k * GB:k * GB + hid].set(w[:, k * hid:(k + 1) * hid])
    return out


def _pad_rows(w, rows_pad):
    rows = w.shape[0]
    if rows == rows_pad:
        return w
    return jnp.concatenate(
        [w, jnp.zeros((rows_pad - rows,) + w.shape[1:], w.dtype)], axis=0)


def prepare_params(params):
    """Pack/pad weights once; call outside the hot loop."""
    E = params['wf_hh'].shape[0]
    H = params['wt_hh'].shape[0]
    if 4 * E > LANE or 4 * H > LANE:
        # TODO(synk): fall back to a 4x128-per-gate layout for E or H > 32.
        raise NotImplementedError("gate-packed layout requires E, H <= 32")
    wt_ih = params['wt_ih']
    return dict(
        feat_emb=params['feat_emb'],
        pn_emb=params['pn_emb'],
        wf_ih=_pack_gate_cols(params['wf_ih'], E),                         # (E,128) f32
        wf_hh=_pad_rows(_pack_gate_cols(params['wf_hh'], E),
                        LANE).astype(jnp.bfloat16),                       # (128,128) bf16
        bf=_pack_gate_cols(params['bf'], E),                               # (1,128) f32
        wt_ihf=_pad_rows(_pack_gate_cols(wt_ih[0:E], H), LANE),            # (128,128) f32
        wt_ihp=_pack_gate_cols(wt_ih[E:2 * E], H),                         # (E,128) f32
        wt_hh=_pad_rows(_pack_gate_cols(params['wt_hh'], H),
                        LANE).astype(jnp.bfloat16),                       # (128,128) bf16
        bt=_pack_gate_cols(params['bt'], H),                               # (1,128) f32
        wo=_pad_rows(jnp.pad(params['wo'], ((0, 0), (0, LANE - 1))), LANE),# (128,128) f32
        bo=params['bo'].reshape(-1),                                       # (1,)  f32 -> SMEM
    )


# ---------------------------------------------------------------------------
# Jitted wrapper: gathers + pallas_call + column slice in one XLA program.
# ---------------------------------------------------------------------------

@jax.jit
def lstm_token_scorer(pn_history, feature, packed):
    fx = packed['feat_emb'][feature]          # (F_len, E)
    px = packed['pn_emb'][pn_history]         # (P_len, E)
    F_len, E = fx.shape
    P_len = px.shape[0]

    operands = (fx, px, packed['wf_ih'], packed['wf_hh'], packed['bf'],
                packed['wt_ihf'], packed['wt_ihp'], packed['wt_hh'],
                packed['bt'], packed['wo'], packed['bo'])

    flops = 2 * (F_len * E * LANE + F_len * LANE * LANE + LANE * LANE
                 + P_len * E * LANE + 2 * P_len * LANE * LANE)
    transcendentals = 3 * LANE * (F_len + P_len) + LANE * P_len
    bytes_accessed = int(sum(x.size * x.dtype.itemsize for x in operands)
                         + P_len * LANE * 4)

    out = pl.pallas_call(
        _lstm_scorer_kernel,
        out_shape=jax.ShapeDtypeStruct((P_len, LANE), jnp.float32),
        in_specs=[pl.BlockSpec(memory_space=pltpu.MemorySpace.VMEM)] * 10
                 + [pl.BlockSpec(memory_space=pltpu.MemorySpace.SMEM)],
        out_specs=pl.BlockSpec(memory_space=pltpu.MemorySpace.VMEM),
        scratch_shapes=[pltpu.VMEM((F_len, LANE), jnp.float32),   # zf
                        pltpu.VMEM((P_len, LANE), jnp.float32),   # zp
                        pltpu.VMEM((P_len, LANE), jnp.float32)],  # h history
        cost_estimate=pl.CostEstimate(flops=flops,
                                      transcendentals=transcendentals,
                                      bytes_accessed=bytes_accessed),
    )(*operands)

    # Lane-dense kernel output -> column 0 (== torch.squeeze of (P,1)).
    return out[:, 0]


# ---------------------------------------------------------------------------
# Pure-JAX reference + params (unpadded, PyTorch semantics).
# ---------------------------------------------------------------------------

def _reference(pn_history, feature, params):
    fx = params['feat_emb'][feature]
    px = params['pn_emb'][pn_history]
    E = fx.shape[1]
    H = params['wt_hh'].shape[0]

    def step(carry, x, w_ih, w_hh, b, hid):
        h, c = carry
        z = x @ w_ih + h @ w_hh + b
        i = jax.nn.sigmoid(z[0:hid])
        f = jax.nn.sigmoid(z[hid:2 * hid])
        g = jnp.tanh(z[2 * hid:3 * hid])
        o = jax.nn.sigmoid(z[3 * hid:4 * hid])
        c = f * c + i * g
        h = o * jnp.tanh(c)
        return (h, c), h

    (hF, _), _ = lax.scan(
        lambda cr, x: step(cr, x, params['wf_ih'], params['wf_hh'],
                           params['bf'][0], E),
        (jnp.zeros(E), jnp.zeros(E)), fx)
    xcat = jnp.concatenate(
        [jnp.tile(hF[None, :], (px.shape[0], 1)), px], axis=1)
    _, hs = lax.scan(
        lambda cr, x: step(cr, x, params['wt_ih'], params['wt_hh'],
                           params['bt'][0], H),
        (jnp.zeros(H), jnp.zeros(H)), xcat)
    logits = hs @ params['wo'] + params['bo'][0]
    return jax.nn.sigmoid(logits[:, 0])


def init_params(key, embedding_dim, hidden_dim,
                pn_hist_vocab_size, feature_vocab_size):
    E, H = embedding_dim, hidden_dim
    ks = jax.random.split(key, 10)
    u = lambda k, shape: jax.random.uniform(k, shape, jnp.float32, -0.25, 0.25)
    return dict(
        feat_emb=u(ks[0], (feature_vocab_size, E)),
        pn_emb=u(ks[1], (pn_hist_vocab_size, E)),
        # LSTM weights stored pre-transposed: (input, 4*hidden), gate order
        # i,f,g,o. Biases are the combined b_ih + b_hh.
        wf_ih=u(ks[2], (E, 4 * E)),
        wf_hh=u(ks[3], (E, 4 * E)),
        bf=u(ks[4], (1, 4 * E)),
        wt_ih=u(ks[5], (2 * E, 4 * H)),
        wt_hh=u(ks[6], (H, 4 * H)),
        bt=u(ks[7], (1, 4 * H)),
        wo=u(ks[8], (H, 1)),
        bo=u(ks[9], (1, 1)),
    )


if __name__ == "__main__":
    # Small, TPU-friendly sizes (single-sequence forward, as in the module).
    embedding_dim, hidden_dim = 32, 32
    pn_hist_vocab_size, feature_vocab_size = 64, 48
    P_len, F_len = 16, 8

    key = jax.random.PRNGKey(0)
    kp, kf, kparam = jax.random.split(key, 3)
    pn_history = jax.random.randint(kp, (P_len,), 0, pn_hist_vocab_size, jnp.int32)
    feature = jax.random.randint(kf, (F_len,), 0, feature_vocab_size, jnp.int32)
    params = init_params(kparam, embedding_dim, hidden_dim,
                         pn_hist_vocab_size, feature_vocab_size)

    packed = prepare_params(params)   # one-time pack/pad, not per call

    out = lstm_token_scorer(pn_history, feature, packed)
    out = jax.block_until_ready(out)
    assert out.shape == (P_len,)

    ref = _reference(pn_history, feature, params)
    # bf16 recurrent weights -> loosened tolerance vs the f32 reference.
    np.testing.assert_allclose(np.asarray(out), np.asarray(ref),
                               atol=5e-3, rtol=5e-3)
    print("KERNEL_OK")
</pallas_src>

<mosaic_0001>
module attributes {stable_mosaic.version = 11 : i64} {
  func.func @_lstm_scorer_kernel(%arg0: memref<8x32xf32, #tpu.memory_space<vmem>>, %arg1: memref<16x32xf32, #tpu.memory_space<vmem>>, %arg2: memref<32x128xf32, #tpu.memory_space<vmem>>, %arg3: memref<128x128xbf16, #tpu.memory_space<vmem>>, %arg4: memref<1x128xf32, #tpu.memory_space<vmem>>, %arg5: memref<128x128xf32, #tpu.memory_space<vmem>>, %arg6: memref<32x128xf32, #tpu.memory_space<vmem>>, %arg7: memref<128x128xbf16, #tpu.memory_space<vmem>>, %arg8: memref<1x128xf32, #tpu.memory_space<vmem>>, %arg9: memref<128x128xf32, #tpu.memory_space<vmem>>, %arg10: memref<1xf32, #tpu.memory_space<smem>>, %arg11: memref<16x128xf32, #tpu.memory_space<vmem>>, %arg12: memref<8x128xf32, #tpu.memory_space<vmem>>, %arg13: memref<16x128xf32, #tpu.memory_space<vmem>>, %arg14: memref<16x128xf32, #tpu.memory_space<vmem>>) attributes {dimension_semantics = [], scalar_prefetch = 0 : i64, scratch_operands = 3 : i64, tpu.core_type = #tpu.core_type<tc>} {
    %c0 = arith.constant 0 : index
    %c0_0 = arith.constant 0 : index
    %0 = vector.load %arg0[%c0, %c0_0] : memref<8x32xf32, #tpu.memory_space<vmem>>, vector<8x32xf32>
    %c0_1 = arith.constant 0 : index
    %c0_2 = arith.constant 0 : index
    %1 = vector.load %arg2[%c0_1, %c0_2] : memref<32x128xf32, #tpu.memory_space<vmem>>, vector<32x128xf32>
    %cst = arith.constant dense<0.000000e+00> : vector<8x128xf32>
    %2 = tpu.matmul %0, %1, %cst {dimension_numbers = #tpu.dot_dimension_numbers<[1], [0], [0], [1], [0, 0, 1, 1], [], []>} : vector<8x32xf32>, vector<32x128xf32>, vector<8x128xf32> -> vector<8x128xf32>
    %c0_3 = arith.constant 0 : index
    %c0_4 = arith.constant 0 : index
    %3 = vector.load %arg4[%c0_3, %c0_4] : memref<1x128xf32, #tpu.memory_space<vmem>>, vector<1x128xf32>
    %4 = vector.broadcast %3 : vector<1x128xf32> to vector<8x128xf32>
    %5 = arith.addf %2, %4 : vector<8x128xf32>
    %c0_5 = arith.constant 0 : index
    %c0_6 = arith.constant 0 : index
    %6 = vector.load %arg12[%c0_5, %c0_6] : memref<8x128xf32, #tpu.memory_space<vmem>>, vector<8x128xf32>
    tpu.vector_store %arg12[%c0_5, %c0_6], %5 {strides = array<i32>} : memref<8x128xf32, #tpu.memory_space<vmem>>, vector<8x128xf32>,
    %cst_7 = arith.constant 0.000000e+00 : f32
    %7 = vector.broadcast %cst_7 : f32 to vector<1x128xf32>
    %cst_8 = arith.constant 0.000000e+00 : f32
    %8 = vector.broadcast %cst_8 : f32 to vector<1x128xf32>
    %c0_9 = arith.constant 0 : index
    %c0_10 = arith.constant 0 : index
    %9 = vector.load %arg12[%c0_9, %c0_10] : memref<8x128xf32, #tpu.memory_space<vmem>>, vector<1x128xf32>
    %10 = arith.truncf %7 : vector<1x128xf32> to vector<1x128xbf16>
    %c0_11 = arith.constant 0 : index
    %c0_12 = arith.constant 0 : index
    %11 = vector.load %arg3[%c0_11, %c0_12] : memref<128x128xbf16, #tpu.memory_space<vmem>>, vector<128x128xbf16>
    %cst_13 = arith.constant dense<0.000000e+00> : vector<1x128xf32>
    %12 = tpu.matmul %10, %11, %cst_13 {dimension_numbers = #tpu.dot_dimension_numbers<[1], [0], [0], [1], [0, 0, 1, 1], [], []>} : vector<1x128xbf16>, vector<128x128xbf16>, vector<1x128xf32> -> vector<1x128xf32>
    %13 = arith.addf %9, %12 : vector<1x128xf32>
    %cst_14 = arith.constant 5.000000e-01 : f32
    %14 = vector.broadcast %cst_14 : f32 to vector<1x128xf32>
    %15 = arith.mulf %14, %13 : vector<1x128xf32>
    %16 = math.tanh %15 : vector<1x128xf32>
    %cst_15 = arith.constant 5.000000e-01 : f32
    %17 = vector.broadcast %cst_15 : f32 to vector<1x128xf32>
    %18 = arith.mulf %17, %16 : vector<1x128xf32>
    %cst_16 = arith.constant 5.000000e-01 : f32
    %19 = vector.broadcast %cst_16 : f32 to vector<1x128xf32>
    %20 = arith.addf %18, %19 : vector<1x128xf32>
    %21 = math.tanh %13 : vector<1x128xf32>
    %c96_i32 = arith.constant 96 : i32
    %22 = tpu.dynamic_rotate %20 by %c96_i32 dim 1 : vector<1x128xf32>, i32 -> vector<1x128xf32>
    %c64_i32 = arith.constant 64 : i32
    %23 = tpu.dynamic_rotate %21 by %c64_i32 dim 1 : vector<1x128xf32>, i32 -> vector<1x128xf32>
    %c32_i32 = arith.constant 32 : i32
    %24 = tpu.dynamic_rotate %20 by %c32_i32 dim 1 : vector<1x128xf32>, i32 -> vector<1x128xf32>
    %25 = arith.mulf %22, %8 : vector<1x128xf32>
    %26 = arith.mulf %20, %23 : vector<1x128xf32>
    %27 = arith.addf %25, %26 : vector<1x128xf32>
    %28 = math.tanh %27 : vector<1x128xf32>
    %29 = arith.mulf %24, %28 : vector<1x128xf32>
    %c1 = arith.constant 1 : index
    %c0_17 = arith.constant 0 : index
    %30 = vector.load %arg12[%c1, %c0_17] : memref<8x128xf32, #tpu.memory_space<vmem>>, vector<1x128xf32>
    %31 = arith.truncf %29 : vector<1x128xf32> to vector<1x128xbf16>
    %c0_18 = arith.constant 0 : index
    %c0_19 = arith.constant 0 : index
    %32 = vector.load %arg3[%c0_18, %c0_19] : memref<128x128xbf16, #tpu.memory_space<vmem>>, vector<128x128xbf16>
    %cst_20 = arith.constant dense<0.000000e+00> : vector<1x128xf32>
    %33 = tpu.matmul %31, %32, %cst_20 {dimension_numbers = #tpu.dot_dimension_numbers<[1], [0], [0], [1], [0, 0, 1, 1], [], []>} : vector<1x128xbf16>, vector<128x128xbf16>, vector<1x128xf32> -> vector<1x128xf32>
    %34 = arith.addf %30, %33 : vector<1x128xf32>
    %cst_21 = arith.constant 5.000000e-01 : f32
    %35 = vector.broadcast %cst_21 : f32 to vector<1x128xf32>
    %36 = arith.mulf %35, %34 : vector<1x128xf32>
    %37 = math.tanh %36 : vector<1x128xf32>
    %cst_22 = arith.constant 5.000000e-01 : f32
    %38 = vector.broadcast %cst_22 : f32 to vector<1x128xf32>
    %39 = arith.mulf %38, %37 : vector<1x128xf32>
    %cst_23 = arith.constant 5.000000e-01 : f32
    %40 = vector.broadcast %cst_23 : f32 to vector<1x128xf32>
    %41 = arith.addf %39, %40 : vector<1x128xf32>
    %42 = math.tanh %34 : vector<1x128xf32>
    %c96_i32_24 = arith.constant 96 : i32
    %43 = tpu.dynamic_rotate %41 by %c96_i32_24 dim 1 : vector<1x128xf32>, i32 -> vector<1x128xf32>
    %c64_i32_25 = arith.constant 64 : i32
    %44 = tpu.dynamic_rotate %42 by %c64_i32_25 dim 1 : vector<1x128xf32>, i32 -> vector<1x128xf32>
    %c32_i32_26 = arith.constant 32 : i32
    %45 = tpu.dynamic_rotate %41 by %c32_i32_26 dim 1 : vector<1x128xf32>, i32 -> vector<1x128xf32>
    %46 = arith.mulf %43, %27 : vector<1x128xf32>
    %47 = arith.mulf %41, %44 : vector<1x128xf32>
    %48 = arith.addf %46, %47 : vector<1x128xf32>
    %49 = math.tanh %48 : vector<1x128xf32>
    %50 = arith.mulf %45, %49 : vector<1x128xf32>
    %c2 = arith.constant 2 : index
    %c0_27 = arith.constant 0 : index
    %51 = vector.load %arg12[%c2, %c0_27] : memref<8x128xf32, #tpu.memory_space<vmem>>, vector<1x128xf32>
    %52 = arith.truncf %50 : vector<1x128xf32> to vector<1x128xbf16>
    %c0_28 = arith.constant 0 : index
    %c0_29 = arith.constant 0 : index
    %53 = vector.load %arg3[%c0_28, %c0_29] : memref<128x128xbf16, #tpu.memory_space<vmem>>, vector<128x128xbf16>
    %cst_30 = arith.constant dense<0.000000e+00> : vector<1x128xf32>
    %54 = tpu.matmul %52, %53, %cst_30 {dimension_numbers = #tpu.dot_dimension_numbers<[1], [0], [0], [1], [0, 0, 1, 1], [], []>} : vector<1x128xbf16>, vector<128x128xbf16>, vector<1x128xf32> -> vector<1x128xf32>
    %55 = arith.addf %51, %54 : vector<1x128xf32>
    %cst_31 = arith.constant 5.000000e-01 : f32
    %56 = vector.broadcast %cst_31 : f32 to vector<1x128xf32>
    %57 = arith.mulf %56, %55 : vector<1x128xf32>
    %58 = math.tanh %57 : vector<1x128xf32>
    %cst_32 = arith.constant 5.000000e-01 : f32
    %59 = vector.broadcast %cst_32 : f32 to vector<1x128xf32>
    %60 = arith.mulf %59, %58 : vector<1x128xf32>
    %cst_33 = arith.constant 5.000000e-01 : f32
    %61 = vector.broadcast %cst_33 : f32 to vector<1x128xf32>
    %62 = arith.addf %60, %61 : vector<1x128xf32>
    %63 = math.tanh %55 : vector<1x128xf32>
    %c96_i32_34 = arith.constant 96 : i32
    %64 = tpu.dynamic_rotate %62 by %c96_i32_34 dim 1 : vector<1x128xf32>, i32 -> vector<1x128xf32>
    %c64_i32_35 = arith.constant 64 : i32
    %65 = tpu.dynamic_rotate %63 by %c64_i32_35 dim 1 : vector<1x128xf32>, i32 -> vector<1x128xf32>
    %c32_i32_36 = arith.constant 32 : i32
    %66 = tpu.dynamic_rotate %62 by %c32_i32_36 dim 1 : vector<1x128xf32>, i32 -> vector<1x128xf32>
    %67 = arith.mulf %64, %48 : vector<1x128xf32>
    %68 = arith.mulf %62, %65 : vector<1x128xf32>
    %69 = arith.addf %67, %68 : vector<1x128xf32>
    %70 = math.tanh %69 : vector<1x128xf32>
    %71 = arith.mulf %66, %70 : vector<1x128xf32>
    %c3 = arith.constant 3 : index
    %c0_37 = arith.constant 0 : index
    %72 = vector.load %arg12[%c3, %c0_37] : memref<8x128xf32, #tpu.memory_space<vmem>>, vector<1x128xf32>
    %73 = arith.truncf %71 : vector<1x128xf32> to vector<1x128xbf16>
    %c0_38 = arith.constant 0 : index
    %c0_39 = arith.constant 0 : index
    %74 = vector.load %arg3[%c0_38, %c0_39] : memref<128x128xbf16, #tpu.memory_space<vmem>>, vector<128x128xbf16>
    %cst_40 = arith.constant dense<0.000000e+00> : vector<1x128xf32>
    %75 = tpu.matmul %73, %74, %cst_40 {dimension_numbers = #tpu.dot_dimension_numbers<[1], [0], [0], [1], [0, 0, 1, 1], [], []>} : vector<1x128xbf16>, vector<128x128xbf16>, vector<1x128xf32> -> vector<1x128xf32>
    %76 = arith.addf %72, %75 : vector<1x128xf32>
    %cst_41 = arith.constant 5.000000e-01 : f32
    %77 = vector.broadcast %cst_41 : f32 to vector<1x128xf32>
    %78 = arith.mulf %77, %76 : vector<1x128xf32>
    %79 = math.tanh %78 : vector<1x128xf32>
    %cst_42 = arith.constant 5.000000e-01 : f32
    %80 = vector.broadcast %cst_42 : f32 to vector<1x128xf32>
    %81 = arith.mulf %80, %79 : vector<1x128xf32>
    %cst_43 = arith.constant 5.000000e-01 : f32
    %82 = vector.broadcast %cst_43 : f32 to vector<1x128xf32>
    %83 = arith.addf %81, %82 : vector<1x128xf32>
    %84 = math.tanh %76 : vector<1x128xf32>
    %c96_i32_44 = arith.constant 96 : i32
    %85 = tpu.dynamic_rotate %83 by %c96_i32_44 dim 1 : vector<1x128xf32>, i32 -> vector<1x128xf32>
    %c64_i32_45 = arith.constant 64 : i32
    %86 = tpu.dynamic_rotate %84 by %c64_i32_45 dim 1 : vector<1x128xf32>, i32 -> vector<1x128xf32>
    %c32_i32_46 = arith.constant 32 : i32
    %87 = tpu.dynamic_rotate %83 by %c32_i32_46 dim 1 : vector<1x128xf32>, i32 -> vector<1x128xf32>
    %88 = arith.mulf %85, %69 : vector<1x128xf32>
    %89 = arith.mulf %83, %86 : vector<1x128xf32>
    %90 = arith.addf %88, %89 : vector<1x128xf32>
    %91 = math.tanh %90 : vector<1x128xf32>
    %92 = arith.mulf %87, %91 : vector<1x128xf32>
    %c4 = arith.constant 4 : index
    %c0_47 = arith.constant 0 : index
    %93 = vector.load %arg12[%c4, %c0_47] : memref<8x128xf32, #tpu.memory_space<vmem>>, vector<1x128xf32>
    %94 = arith.truncf %92 : vector<1x128xf32> to vector<1x128xbf16>
    %c0_48 = arith.constant 0 : index
    %c0_49 = arith.constant 0 : index
    %95 = vector.load %arg3[%c0_48, %c0_49] : memref<128x128xbf16, #tpu.memory_space<vmem>>, vector<128x128xbf16>
    %cst_50 = arith.constant dense<0.000000e+00> : vector<1x128xf32>
    %96 = tpu.matmul %94, %95, %cst_50 {dimension_numbers = #tpu.dot_dimension_numbers<[1], [0], [0], [1], [0, 0, 1, 1], [], []>} : vector<1x128xbf16>, vector<128x128xbf16>, vector<1x128xf32> -> vector<1x128xf32>
    %97 = arith.addf %93, %96 : vector<1x128xf32>
    %cst_51 = arith.constant 5.000000e-01 : f32
    %98 = vector.broadcast %cst_51 : f32 to vector<1x128xf32>
    %99 = arith.mulf %98, %97 : vector<1x128xf32>
    %100 = math.tanh %99 : vector<1x128xf32>
    %cst_52 = arith.constant 5.000000e-01 : f32
    %101 = vector.broadcast %cst_52 : f32 to vector<1x128xf32>
    %102 = arith.mulf %101, %100 : vector<1x128xf32>
    %cst_53 = arith.constant 5.000000e-01 : f32
    %103 = vector.broadcast %cst_53 : f32 to vector<1x128xf32>
    %104 = arith.addf %102, %103 : vector<1x128xf32>
    %105 = math.tanh %97 : vector<1x128xf32>
    %c96_i32_54 = arith.constant 96 : i32
    %106 = tpu.dynamic_rotate %104 by %c96_i32_54 dim 1 : vector<1x128xf32>, i32 -> vector<1x128xf32>
    %c64_i32_55 = arith.constant 64 : i32
    %107 = tpu.dynamic_rotate %105 by %c64_i32_55 dim 1 : vector<1x128xf32>, i32 -> vector<1x128xf32>
    %c32_i32_56 = arith.constant 32 : i32
    %108 = tpu.dynamic_rotate %104 by %c32_i32_56 dim 1 : vector<1x128xf32>, i32 -> vector<1x128xf32>
    %109 = arith.mulf %106, %90 : vector<1x128xf32>
    %110 = arith.mulf %104, %107 : vector<1x128xf32>
    %111 = arith.addf %109, %110 : vector<1x128xf32>
    %112 = math.tanh %111 : vector<1x128xf32>
    %113 = arith.mulf %108, %112 : vector<1x128xf32>
    %c5 = arith.constant 5 : index
    %c0_57 = arith.constant 0 : index
    %114 = vector.load %arg12[%c5, %c0_57] : memref<8x128xf32, #tpu.memory_space<vmem>>, vector<1x128xf32>
    %115 = arith.truncf %113 : vector<1x128xf32> to vector<1x128xbf16>
    %c0_58 = arith.constant 0 : index
    %c0_59 = arith.constant 0 : index
    %116 = vector.load %arg3[%c0_58, %c0_59] : memref<128x128xbf16, #tpu.memory_space<vmem>>, vector<128x128xbf16>
    %cst_60 = arith.constant dense<0.000000e+00> : vector<1x128xf32>
    %117 = tpu.matmul %115, %116, %cst_60 {dimension_numbers = #tpu.dot_dimension_numbers<[1], [0], [0], [1], [0, 0, 1, 1], [], []>} : vector<1x128xbf16>, vector<128x128xbf16>, vector<1x128xf32> -> vector<1x128xf32>
    %118 = arith.addf %114, %117 : vector<1x128xf32>
    %cst_61 = arith.constant 5.000000e-01 : f32
    %119 = vector.broadcast %cst_61 : f32 to vector<1x128xf32>
    %120 = arith.mulf %119, %118 : vector<1x128xf32>
    %121 = math.tanh %120 : vector<1x128xf32>
    %cst_62 = arith.constant 5.000000e-01 : f32
    %122 = vector.broadcast %cst_62 : f32 to vector<1x128xf32>
    %123 = arith.mulf %122, %121 : vector<1x128xf32>
    %cst_63 = arith.constant 5.000000e-01 : f32
    %124 = vector.broadcast %cst_63 : f32 to vector<1x128xf32>
    %125 = arith.addf %123, %124 : vector<1x128xf32>
    %126 = math.tanh %118 : vector<1x128xf32>
    %c96_i32_64 = arith.constant 96 : i32
    %127 = tpu.dynamic_rotate %125 by %c96_i32_64 dim 1 : vector<1x128xf32>, i32 -> vector<1x128xf32>
    %c64_i32_65 = arith.constant 64 : i32
    %128 = tpu.dynamic_rotate %126 by %c64_i32_65 dim 1 : vector<1x128xf32>, i32 -> vector<1x128xf32>
    %c32_i32_66 = arith.constant 32 : i32
    %129 = tpu.dynamic_rotate %125 by %c32_i32_66 dim 1 : vector<1x128xf32>, i32 -> vector<1x128xf32>
    %130 = arith.mulf %127, %111 : vector<1x128xf32>
    %131 = arith.mulf %125, %128 : vector<1x128xf32>
    %132 = arith.addf %130, %131 : vector<1x128xf32>
    %133 = math.tanh %132 : vector<1x128xf32>
    %134 = arith.mulf %129, %133 : vector<1x128xf32>
    %c6 = arith.constant 6 : index
    %c0_67 = arith.constant 0 : index
    %135 = vector.load %arg12[%c6, %c0_67] : memref<8x128xf32, #tpu.memory_space<vmem>>, vector<1x128xf32>
    %136 = arith.truncf %134 : vector<1x128xf32> to vector<1x128xbf16>
    %c0_68 = arith.constant 0 : index
    %c0_69 = arith.constant 0 : index
    %137 = vector.load %arg3[%c0_68, %c0_69] : memref<128x128xbf16, #tpu.memory_space<vmem>>, vector<128x128xbf16>
    %cst_70 = arith.constant dense<0.000000e+00> : vector<1x128xf32>
    %138 = tpu.matmul %136, %137, %cst_70 {dimension_numbers = #tpu.dot_dimension_numbers<[1], [0], [0], [1], [0, 0, 1, 1], [], []>} : vector<1x128xbf16>, vector<128x128xbf16>, vector<1x128xf32> -> vector<1x128xf32>
    %139 = arith.addf %135, %138 : vector<1x128xf32>
    %cst_71 = arith.constant 5.000000e-01 : f32
    %140 = vector.broadcast %cst_71 : f32 to vector<1x128xf32>
    %141 = arith.mulf %140, %139 : vector<1x128xf32>
    %142 = math.tanh %141 : vector<1x128xf32>
    %cst_72 = arith.constant 5.000000e-01 : f32
    %143 = vector.broadcast %cst_72 : f32 to vector<1x128xf32>
    %144 = arith.mulf %143, %142 : vector<1x128xf32>
    %cst_73 = arith.constant 5.000000e-01 : f32
    %145 = vector.broadcast %cst_73 : f32 to vector<1x128xf32>
    %146 = arith.addf %144, %145 : vector<1x128xf32>
    %147 = math.tanh %139 : vector<1x128xf32>
    %c96_i32_74 = arith.constant 96 : i32
    %148 = tpu.dynamic_rotate %146 by %c96_i32_74 dim 1 : vector<1x128xf32>, i32 -> vector<1x128xf32>
    %c64_i32_75 = arith.constant 64 : i32
    %149 = tpu.dynamic_rotate %147 by %c64_i32_75 dim 1 : vector<1x128xf32>, i32 -> vector<1x128xf32>
    %c32_i32_76 = arith.constant 32 : i32
    %150 = tpu.dynamic_rotate %146 by %c32_i32_76 dim 1 : vector<1x128xf32>, i32 -> vector<1x128xf32>
    %151 = arith.mulf %148, %132 : vector<1x128xf32>
    %152 = arith.mulf %146, %149 : vector<1x128xf32>
    %153 = arith.addf %151, %152 : vector<1x128xf32>
    %154 = math.tanh %153 : vector<1x128xf32>
    %155 = arith.mulf %150, %154 : vector<1x128xf32>
    %c7 = arith.constant 7 : index
    %c0_77 = arith.constant 0 : index
    %156 = vector.load %arg12[%c7, %c0_77] : memref<8x128xf32, #tpu.memory_space<vmem>>, vector<1x128xf32>
    %157 = arith.truncf %155 : vector<1x128xf32> to vector<1x128xbf16>
    %c0_78 = arith.constant 0 : index
    %c0_79 = arith.constant 0 : index
    %158 = vector.load %arg3[%c0_78, %c0_79] : memref<128x128xbf16, #tpu.memory_space<vmem>>, vector<128x128xbf16>
    %cst_80 = arith.constant dense<0.000000e+00> : vector<1x128xf32>
    %159 = tpu.matmul %157, %158, %cst_80 {dimension_numbers = #tpu.dot_dimension_numbers<[1], [0], [0], [1], [0, 0, 1, 1], [], []>} : vector<1x128xbf16>, vector<128x128xbf16>, vector<1x128xf32> -> vector<1x128xf32>
    %160 = arith.addf %156, %159 : vector<1x128xf32>
    %cst_81 = arith.constant 5.000000e-01 : f32
    %161 = vector.broadcast %cst_81 : f32 to vector<1x128xf32>
    %162 = arith.mulf %161, %160 : vector<1x128xf32>
    %163 = math.tanh %162 : vector<1x128xf32>
    %cst_82 = arith.constant 5.000000e-01 : f32
    %164 = vector.broadcast %cst_82 : f32 to vector<1x128xf32>
    %165 = arith.mulf %164, %163 : vector<1x128xf32>
    %cst_83 = arith.constant 5.000000e-01 : f32
    %166 = vector.broadcast %cst_83 : f32 to vector<1x128xf32>
    %167 = arith.addf %165, %166 : vector<1x128xf32>
    %168 = math.tanh %160 : vector<1x128xf32>
    %c96_i32_84 = arith.constant 96 : i32
    %169 = tpu.dynamic_rotate %167 by %c96_i32_84 dim 1 : vector<1x128xf32>, i32 -> vector<1x128xf32>
    %c64_i32_85 = arith.constant 64 : i32
    %170 = tpu.dynamic_rotate %168 by %c64_i32_85 dim 1 : vector<1x128xf32>, i32 -> vector<1x128xf32>
    %c32_i32_86 = arith.constant 32 : i32
    %171 = tpu.dynamic_rotate %167 by %c32_i32_86 dim 1 : vector<1x128xf32>, i32 -> vector<1x128xf32>
    %172 = arith.mulf %169, %153 : vector<1x128xf32>
    %173 = arith.mulf %167, %170 : vector<1x128xf32>
    %174 = arith.addf %172, %173 : vector<1x128xf32>
    %175 = math.tanh %174 : vector<1x128xf32>
    %176 = arith.mulf %171, %175 : vector<1x128xf32>
    %c0_87 = arith.constant 0 : index
    %c0_88 = arith.constant 0 : index
    %177 = vector.load %arg5[%c0_87, %c0_88] : memref<128x128xf32, #tpu.memory_space<vmem>>, vector<128x128xf32>
    %cst_89 = arith.constant dense<0.000000e+00> : vector<1x128xf32>
    %178 = tpu.matmul %176, %177, %cst_89 {dimension_numbers = #tpu.dot_dimension_numbers<[1], [0], [0], [1], [0, 0, 1, 1], [], []>} : vector<1x128xf32>, vector<128x128xf32>, vector<1x128xf32> -> vector<1x128xf32>
    %c0_90 = arith.constant 0 : index
    %c0_91 = arith.constant 0 : index
    %179 = vector.load %arg8[%c0_90, %c0_91] : memref<1x128xf32, #tpu.memory_space<vmem>>, vector<1x128xf32>
    %180 = arith.addf %178, %179 : vector<1x128xf32>
    %c0_92 = arith.constant 0 : index
    %c0_93 = arith.constant 0 : index
    %181 = vector.load %arg1[%c0_92, %c0_93] : memref<16x32xf32, #tpu.memory_space<vmem>>, vector<16x32xf32>
    %c0_94 = arith.constant 0 : index
    %c0_95 = arith.constant 0 : index
    %182 = vector.load %arg6[%c0_94, %c0_95] : memref<32x128xf32, #tpu.memory_space<vmem>>, vector<32x128xf32>
    %cst_96 = arith.constant dense<0.000000e+00> : vector<16x128xf32>
    %183 = tpu.matmul %181, %182, %cst_96 {dimension_numbers = #tpu.dot_dimension_numbers<[1], [0], [0], [1], [0, 0, 1, 1], [], []>} : vector<16x32xf32>, vector<32x128xf32>, vector<16x128xf32> -> vector<16x128xf32>
    %184 = vector.broadcast %180 : vector<1x128xf32> to vector<16x128xf32>
    %185 = arith.addf %183, %184 : vector<16x128xf32>
    %c0_97 = arith.constant 0 : index
    %c0_98 = arith.constant 0 : index
    %186 = vector.load %arg13[%c0_97, %c0_98] : memref<16x128xf32, #tpu.memory_space<vmem>>, vector<16x128xf32>
    tpu.vector_store %arg13[%c0_97, %c0_98], %185 {strides = array<i32>} : memref<16x128xf32, #tpu.memory_space<vmem>>, vector<16x128xf32>,
    %cst_99 = arith.constant 0.000000e+00 : f32
    %187 = vector.broadcast %cst_99 : f32 to vector<1x128xf32>
    %cst_100 = arith.constant 0.000000e+00 : f32
    %188 = vector.broadcast %cst_100 : f32 to vector<1x128xf32>
    %c0_101 = arith.constant 0 : index
    %c0_102 = arith.constant 0 : index
    %189 = vector.load %arg13[%c0_101, %c0_102] : memref<16x128xf32, #tpu.memory_space<vmem>>, vector<1x128xf32>
    %190 = arith.truncf %187 : vector<1x128xf32> to vector<1x128xbf16>
    %c0_103 = arith.constant 0 : index
    %c0_104 = arith.constant 0 : index
    %191 = vector.load %arg7[%c0_103, %c0_104] : memref<128x128xbf16, #tpu.memory_space<vmem>>, vector<128x128xbf16>
    %cst_105 = arith.constant dense<0.000000e+00> : vector<1x128xf32>
    %192 = tpu.matmul %190, %191, %cst_105 {dimension_numbers = #tpu.dot_dimension_numbers<[1], [0], [0], [1], [0, 0, 1, 1], [], []>} : vector<1x128xbf16>, vector<128x128xbf16>, vector<1x128xf32> -> vector<1x128xf32>
    %193 = arith.addf %189, %192 : vector<1x128xf32>
    %cst_106 = arith.constant 5.000000e-01 : f32
    %194 = vector.broadcast %cst_106 : f32 to vector<1x128xf32>
    %195 = arith.mulf %194, %193 : vector<1x128xf32>
    %196 = math.tanh %195 : vector<1x128xf32>
    %cst_107 = arith.constant 5.000000e-01 : f32
    %197 = vector.broadcast %cst_107 : f32 to vector<1x128xf32>
    %198 = arith.mulf %197, %196 : vector<1x128xf32>
    %cst_108 = arith.constant 5.000000e-01 : f32
    %199 = vector.broadcast %cst_108 : f32 to vector<1x128xf32>
    %200 = arith.addf %198, %199 : vector<1x128xf32>
    %201 = math.tanh %193 : vector<1x128xf32>
    %c96_i32_109 = arith.constant 96 : i32
    %202 = tpu.dynamic_rotate %200 by %c96_i32_109 dim 1 : vector<1x128xf32>, i32 -> vector<1x128xf32>
    %c64_i32_110 = arith.constant 64 : i32
    %203 = tpu.dynamic_rotate %201 by %c64_i32_110 dim 1 : vector<1x128xf32>, i32 -> vector<1x128xf32>
    %c32_i32_111 = arith.constant 32 : i32
    %204 = tpu.dynamic_rotate %200 by %c32_i32_111 dim 1 : vector<1x128xf32>, i32 -> vector<1x128xf32>
    %205 = arith.mulf %202, %188 : vector<1x128xf32>
    %206 = arith.mulf %200, %203 : vector<1x128xf32>
    %207 = arith.addf %205, %206 : vector<1x128xf32>
    %208 = math.tanh %207 : vector<1x128xf32>
    %209 = arith.mulf %204, %208 : vector<1x128xf32>
    %c0_112 = arith.constant 0 : index
    %c0_113 = arith.constant 0 : index
    %210 = vector.load %arg14[%c0_112, %c0_113] : memref<16x128xf32, #tpu.memory_space<vmem>>, vector<1x128xf32>
    tpu.vector_store %arg14[%c0_112, %c0_113], %209 {strides = array<i32>} : memref<16x128xf32, #tpu.memory_space<vmem>>, vector<1x128xf32>,
    %c1_114 = arith.constant 1 : index
    %c0_115 = arith.constant 0 : index
    %211 = vector.load %arg13[%c1_114, %c0_115] : memref<16x128xf32, #tpu.memory_space<vmem>>, vector<1x128xf32>
    %212 = arith.truncf %209 : vector<1x128xf32> to vector<1x128xbf16>
    %c0_116 = arith.constant 0 : index
    %c0_117 = arith.constant 0 : index
    %213 = vector.load %arg7[%c0_116, %c0_117] : memref<128x128xbf16, #tpu.memory_space<vmem>>, vector<128x128xbf16>
    %cst_118 = arith.constant dense<0.000000e+00> : vector<1x128xf32>
    %214 = tpu.matmul %212, %213, %cst_118 {dimension_numbers = #tpu.dot_dimension_numbers<[1], [0], [0], [1], [0, 0, 1, 1], [], []>} : vector<1x128xbf16>, vector<128x128xbf16>, vector<1x128xf32> -> vector<1x128xf32>
    %215 = arith.addf %211, %214 : vector<1x128xf32>
    %cst_119 = arith.constant 5.000000e-01 : f32
    %216 = vector.broadcast %cst_119 : f32 to vector<1x128xf32>
    %217 = arith.mulf %216, %215 : vector<1x128xf32>
    %218 = math.tanh %217 : vector<1x128xf32>
    %cst_120 = arith.constant 5.000000e-01 : f32
    %219 = vector.broadcast %cst_120 : f32 to vector<1x128xf32>
    %220 = arith.mulf %219, %218 : vector<1x128xf32>
    %cst_121 = arith.constant 5.000000e-01 : f32
    %221 = vector.broadcast %cst_121 : f32 to vector<1x128xf32>
    %222 = arith.addf %220, %221 : vector<1x128xf32>
    %223 = math.tanh %215 : vector<1x128xf32>
    %c96_i32_122 = arith.constant 96 : i32
    %224 = tpu.dynamic_rotate %222 by %c96_i32_122 dim 1 : vector<1x128xf32>, i32 -> vector<1x128xf32>
    %c64_i32_123 = arith.constant 64 : i32
    %225 = tpu.dynamic_rotate %223 by %c64_i32_123 dim 1 : vector<1x128xf32>, i32 -> vector<1x128xf32>
    %c32_i32_124 = arith.constant 32 : i32
    %226 = tpu.dynamic_rotate %222 by %c32_i32_124 dim 1 : vector<1x128xf32>, i32 -> vector<1x128xf32>
    %227 = arith.mulf %224, %207 : vector<1x128xf32>
    %228 = arith.mulf %222, %225 : vector<1x128xf32>
    %229 = arith.addf %227, %228 : vector<1x128xf32>
    %230 = math.tanh %229 : vector<1x128xf32>
    %231 = arith.mulf %226, %230 : vector<1x128xf32>
    %c1_125 = arith.constant 1 : index
    %c0_126 = arith.constant 0 : index
    %232 = vector.load %arg14[%c1_125, %c0_126] : memref<16x128xf32, #tpu.memory_space<vmem>>, vector<1x128xf32>
    tpu.vector_store %arg14[%c1_125, %c0_126], %231 {strides = array<i32>} : memref<16x128xf32, #tpu.memory_space<vmem>>, vector<1x128xf32>,
    %c2_127 = arith.constant 2 : index
    %c0_128 = arith.constant 0 : index
    %233 = vector.load %arg13[%c2_127, %c0_128] : memref<16x128xf32, #tpu.memory_space<vmem>>, vector<1x128xf32>
    %234 = arith.truncf %231 : vector<1x128xf32> to vector<1x128xbf16>
    %c0_129 = arith.constant 0 : index
    %c0_130 = arith.constant 0 : index
    %235 = vector.load %arg7[%c0_129, %c0_130] : memref<128x128xbf16, #tpu.memory_space<vmem>>, vector<128x128xbf16>
    %cst_131 = arith.constant dense<0.000000e+00> : vector<1x128xf32>
    %236 = tpu.matmul %234, %235, %cst_131 {dimension_numbers = #tpu.dot_dimension_numbers<[1], [0], [0], [1], [0, 0, 1, 1], [], []>} : vector<1x128xbf16>, vector<128x128xbf16>, vector<1x128xf32> -> vector<1x128xf32>
    %237 = arith.addf %233, %236 : vector<1x128xf32>
    %cst_132 = arith.constant 5.000000e-01 : f32
    %238 = vector.broadcast %cst_132 : f32 to vector<1x128xf32>
    %239 = arith.mulf %238, %237 : vector<1x128xf32>
    %240 = math.tanh %239 : vector<1x128xf32>
    %cst_133 = arith.constant 5.000000e-01 : f32
    %241 = vector.broadcast %cst_133 : f32 to vector<1x128xf32>
    %242 = arith.mulf %241, %240 : vector<1x128xf32>
    %cst_134 = arith.constant 5.000000e-01 : f32
    %243 = vector.broadcast %cst_134 : f32 to vector<1x128xf32>
    %244 = arith.addf %242, %243 : vector<1x128xf32>
    %245 = math.tanh %237 : vector<1x128xf32>
    %c96_i32_135 = arith.constant 96 : i32
    %246 = tpu.dynamic_rotate %244 by %c96_i32_135 dim 1 : vector<1x128xf32>, i32 -> vector<1x128xf32>
    %c64_i32_136 = arith.constant 64 : i32
    %247 = tpu.dynamic_rotate %245 by %c64_i32_136 dim 1 : vector<1x128xf32>, i32 -> vector<1x128xf32>
    %c32_i32_137 = arith.constant 32 : i32
    %248 = tpu.dynamic_rotate %244 by %c32_i32_137 dim 1 : vector<1x128xf32>, i32 -> vector<1x128xf32>
    %249 = arith.mulf %246, %229 : vector<1x128xf32>
    %250 = arith.mulf %244, %247 : vector<1x128xf32>
    %251 = arith.addf %249, %250 : vector<1x128xf32>
    %252 = math.tanh %251 : vector<1x128xf32>
    %253 = arith.mulf %248, %252 : vector<1x128xf32>
    %c2_138 = arith.constant 2 : index
    %c0_139 = arith.constant 0 : index
    %254 = vector.load %arg14[%c2_138, %c0_139] : memref<16x128xf32, #tpu.memory_space<vmem>>, vector<1x128xf32>
    tpu.vector_store %arg14[%c2_138, %c0_139], %253 {strides = array<i32>} : memref<16x128xf32, #tpu.memory_space<vmem>>, vector<1x128xf32>,
    %c3_140 = arith.constant 3 : index
    %c0_141 = arith.constant 0 : index
    %255 = vector.load %arg13[%c3_140, %c0_141] : memref<16x128xf32, #tpu.memory_space<vmem>>, vector<1x128xf32>
    %256 = arith.truncf %253 : vector<1x128xf32> to vector<1x128xbf16>
    %c0_142 = arith.constant 0 : index
    %c0_143 = arith.constant 0 : index
    %257 = vector.load %arg7[%c0_142, %c0_143] : memref<128x128xbf16, #tpu.memory_space<vmem>>, vector<128x128xbf16>
    %cst_144 = arith.constant dense<0.000000e+00> : vector<1x128xf32>
    %258 = tpu.matmul %256, %257, %cst_144 {dimension_numbers = #tpu.dot_dimension_numbers<[1], [0], [0], [1], [0, 0, 1, 1], [], []>} : vector<1x128xbf16>, vector<128x128xbf16>, vector<1x128xf32> -> vector<1x128xf32>
    %259 = arith.addf %255, %258 : vector<1x128xf32>
    %cst_145 = arith.constant 5.000000e-01 : f32
    %260 = vector.broadcast %cst_145 : f32 to vector<1x128xf32>
    %261 = arith.mulf %260, %259 : vector<1x128xf32>
    %262 = math.tanh %261 : vector<1x128xf32>
    %cst_146 = arith.constant 5.000000e-01 : f32
    %263 = vector.broadcast %cst_146 : f32 to vector<1x128xf32>
    %264 = arith.mulf %263, %262 : vector<1x128xf32>
    %cst_147 = arith.constant 5.000000e-01 : f32
    %265 = vector.broadcast %cst_147 : f32 to vector<1x128xf32>
    %266 = arith.addf %264, %265 : vector<1x128xf32>
    %267 = math.tanh %259 : vector<1x128xf32>
    %c96_i32_148 = arith.constant 96 : i32
    %268 = tpu.dynamic_rotate %266 by %c96_i32_148 dim 1 : vector<1x128xf32>, i32 -> vector<1x128xf32>
    %c64_i32_149 = arith.constant 64 : i32
    %269 = tpu.dynamic_rotate %267 by %c64_i32_149 dim 1 : vector<1x128xf32>, i32 -> vector<1x128xf32>
    %c32_i32_150 = arith.constant 32 : i32
    %270 = tpu.dynamic_rotate %266 by %c32_i32_150 dim 1 : vector<1x128xf32>, i32 -> vector<1x128xf32>
    %271 = arith.mulf %268, %251 : vector<1x128xf32>
    %272 = arith.mulf %266, %269 : vector<1x128xf32>
    %273 = arith.addf %271, %272 : vector<1x128xf32>
    %274 = math.tanh %273 : vector<1x128xf32>
    %275 = arith.mulf %270, %274 : vector<1x128xf32>
    %c3_151 = arith.constant 3 : index
    %c0_152 = arith.constant 0 : index
    %276 = vector.load %arg14[%c3_151, %c0_152] : memref<16x128xf32, #tpu.memory_space<vmem>>, vector<1x128xf32>
    tpu.vector_store %arg14[%c3_151, %c0_152], %275 {strides = array<i32>} : memref<16x128xf32, #tpu.memory_space<vmem>>, vector<1x128xf32>,
    %c4_153 = arith.constant 4 : index
    %c0_154 = arith.constant 0 : index
    %277 = vector.load %arg13[%c4_153, %c0_154] : memref<16x128xf32, #tpu.memory_space<vmem>>, vector<1x128xf32>
    %278 = arith.truncf %275 : vector<1x128xf32> to vector<1x128xbf16>
    %c0_155 = arith.constant 0 : index
    %c0_156 = arith.constant 0 : index
    %279 = vector.load %arg7[%c0_155, %c0_156] : memref<128x128xbf16, #tpu.memory_space<vmem>>, vector<128x128xbf16>
    %cst_157 = arith.constant dense<0.000000e+00> : vector<1x128xf32>
    %280 = tpu.matmul %278, %279, %cst_157 {dimension_numbers = #tpu.dot_dimension_numbers<[1], [0], [0], [1], [0, 0, 1, 1], [], []>} : vector<1x128xbf16>, vector<128x128xbf16>, vector<1x128xf32> -> vector<1x128xf32>
    %281 = arith.addf %277, %280 : vector<1x128xf32>
    %cst_158 = arith.constant 5.000000e-01 : f32
    %282 = vector.broadcast %cst_158 : f32 to vector<1x128xf32>
    %283 = arith.mulf %282, %281 : vector<1x128xf32>
    %284 = math.tanh %283 : vector<1x128xf32>
    %cst_159 = arith.constant 5.000000e-01 : f32
    %285 = vector.broadcast %cst_159 : f32 to vector<1x128xf32>
    %286 = arith.mulf %285, %284 : vector<1x128xf32>
    %cst_160 = arith.constant 5.000000e-01 : f32
    %287 = vector.broadcast %cst_160 : f32 to vector<1x128xf32>
    %288 = arith.addf %286, %287 : vector<1x128xf32>
    %289 = math.tanh %281 : vector<1x128xf32>
    %c96_i32_161 = arith.constant 96 : i32
    %290 = tpu.dynamic_rotate %288 by %c96_i32_161 dim 1 : vector<1x128xf32>, i32 -> vector<1x128xf32>
    %c64_i32_162 = arith.constant 64 : i32
    %291 = tpu.dynamic_rotate %289 by %c64_i32_162 dim 1 : vector<1x128xf32>, i32 -> vector<1x128xf32>
    %c32_i32_163 = arith.constant 32 : i32
    %292 = tpu.dynamic_rotate %288 by %c32_i32_163 dim 1 : vector<1x128xf32>, i32 -> vector<1x128xf32>
    %293 = arith.mulf %290, %273 : vector<1x128xf32>
    %294 = arith.mulf %288, %291 : vector<1x128xf32>
    %295 = arith.addf %293, %294 : vector<1x128xf32>
    %296 = math.tanh %295 : vector<1x128xf32>
    %297 = arith.mulf %292, %296 : vector<1x128xf32>
    %c4_164 = arith.constant 4 : index
    %c0_165 = arith.constant 0 : index
    %298 = vector.load %arg14[%c4_164, %c0_165] : memref<16x128xf32, #tpu.memory_space<vmem>>, vector<1x128xf32>
    tpu.vector_store %arg14[%c4_164, %c0_165], %297 {strides = array<i32>} : memref<16x128xf32, #tpu.memory_space<vmem>>, vector<1x128xf32>,
    %c5_166 = arith.constant 5 : index
    %c0_167 = arith.constant 0 : index
    %299 = vector.load %arg13[%c5_166, %c0_167] : memref<16x128xf32, #tpu.memory_space<vmem>>, vector<1x128xf32>
    %300 = arith.truncf %297 : vector<1x128xf32> to vector<1x128xbf16>
    %c0_168 = arith.constant 0 : index
    %c0_169 = arith.constant 0 : index
    %301 = vector.load %arg7[%c0_168, %c0_169] : memref<128x128xbf16, #tpu.memory_space<vmem>>, vector<128x128xbf16>
    %cst_170 = arith.constant dense<0.000000e+00> : vector<1x128xf32>
    %302 = tpu.matmul %300, %301, %cst_170 {dimension_numbers = #tpu.dot_dimension_numbers<[1], [0], [0], [1], [0, 0, 1, 1], [], []>} : vector<1x128xbf16>, vector<128x128xbf16>, vector<1x128xf32> -> vector<1x128xf32>
    %303 = arith.addf %299, %302 : vector<1x128xf32>
    %cst_171 = arith.constant 5.000000e-01 : f32
    %304 = vector.broadcast %cst_171 : f32 to vector<1x128xf32>
    %305 = arith.mulf %304, %303 : vector<1x128xf32>
    %306 = math.tanh %305 : vector<1x128xf32>
    %cst_172 = arith.constant 5.000000e-01 : f32
    %307 = vector.broadcast %cst_172 : f32 to vector<1x128xf32>
    %308 = arith.mulf %307, %306 : vector<1x128xf32>
    %cst_173 = arith.constant 5.000000e-01 : f32
    %309 = vector.broadcast %cst_173 : f32 to vector<1x128xf32>
    %310 = arith.addf %308, %309 : vector<1x128xf32>
    %311 = math.tanh %303 : vector<1x128xf32>
    %c96_i32_174 = arith.constant 96 : i32
    %312 = tpu.dynamic_rotate %310 by %c96_i32_174 dim 1 : vector<1x128xf32>, i32 -> vector<1x128xf32>
    %c64_i32_175 = arith.constant 64 : i32
    %313 = tpu.dynamic_rotate %311 by %c64_i32_175 dim 1 : vector<1x128xf32>, i32 -> vector<1x128xf32>
    %c32_i32_176 = arith.constant 32 : i32
    %314 = tpu.dynamic_rotate %310 by %c32_i32_176 dim 1 : vector<1x128xf32>, i32 -> vector<1x128xf32>
    %315 = arith.mulf %312, %295 : vector<1x128xf32>
    %316 = arith.mulf %310, %313 : vector<1x128xf32>
    %317 = arith.addf %315, %316 : vector<1x128xf32>
    %318 = math.tanh %317 : vector<1x128xf32>
    %319 = arith.mulf %314, %318 : vector<1x128xf32>
    %c5_177 = arith.constant 5 : index
    %c0_178 = arith.constant 0 : index
    %320 = vector.load %arg14[%c5_177, %c0_178] : memref<16x128xf32, #tpu.memory_space<vmem>>, vector<1x128xf32>
    tpu.vector_store %arg14[%c5_177, %c0_178], %319 {strides = array<i32>} : memref<16x128xf32, #tpu.memory_space<vmem>>, vector<1x128xf32>,
    %c6_179 = arith.constant 6 : index
    %c0_180 = arith.constant 0 : index
    %321 = vector.load %arg13[%c6_179, %c0_180] : memref<16x128xf32, #tpu.memory_space<vmem>>, vector<1x128xf32>
    %322 = arith.truncf %319 : vector<1x128xf32> to vector<1x128xbf16>
    %c0_181 = arith.constant 0 : index
    %c0_182 = arith.constant 0 : index
    %323 = vector.load %arg7[%c0_181, %c0_182] : memref<128x128xbf16, #tpu.memory_space<vmem>>, vector<128x128xbf16>
    %cst_183 = arith.constant dense<0.000000e+00> : vector<1x128xf32>
    %324 = tpu.matmul %322, %323, %cst_183 {dimension_numbers = #tpu.dot_dimension_numbers<[1], [0], [0], [1], [0, 0, 1, 1], [], []>} : vector<1x128xbf16>, vector<128x128xbf16>, vector<1x128xf32> -> vector<1x128xf32>
    %325 = arith.addf %321, %324 : vector<1x128xf32>
    %cst_184 = arith.constant 5.000000e-01 : f32
    %326 = vector.broadcast %cst_184 : f32 to vector<1x128xf32>
    %327 = arith.mulf %326, %325 : vector<1x128xf32>
    %328 = math.tanh %327 : vector<1x128xf32>
    %cst_185 = arith.constant 5.000000e-01 : f32
    %329 = vector.broadcast %cst_185 : f32 to vector<1x128xf32>
    %330 = arith.mulf %329, %328 : vector<1x128xf32>
    %cst_186 = arith.constant 5.000000e-01 : f32
    %331 = vector.broadcast %cst_186 : f32 to vector<1x128xf32>
    %332 = arith.addf %330, %331 : vector<1x128xf32>
    %333 = math.tanh %325 : vector<1x128xf32>
    %c96_i32_187 = arith.constant 96 : i32
    %334 = tpu.dynamic_rotate %332 by %c96_i32_187 dim 1 : vector<1x128xf32>, i32 -> vector<1x128xf32>
    %c64_i32_188 = arith.constant 64 : i32
    %335 = tpu.dynamic_rotate %333 by %c64_i32_188 dim 1 : vector<1x128xf32>, i32 -> vector<1x128xf32>
    %c32_i32_189 = arith.constant 32 : i32
    %336 = tpu.dynamic_rotate %332 by %c32_i32_189 dim 1 : vector<1x128xf32>, i32 -> vector<1x128xf32>
    %337 = arith.mulf %334, %317 : vector<1x128xf32>
    %338 = arith.mulf %332, %335 : vector<1x128xf32>
    %339 = arith.addf %337, %338 : vector<1x128xf32>
    %340 = math.tanh %339 : vector<1x128xf32>
    %341 = arith.mulf %336, %340 : vector<1x128xf32>
    %c6_190 = arith.constant 6 : index
    %c0_191 = arith.constant 0 : index
    %342 = vector.load %arg14[%c6_190, %c0_191] : memref<16x128xf32, #tpu.memory_space<vmem>>, vector<1x128xf32>
    tpu.vector_store %arg14[%c6_190, %c0_191], %341 {strides = array<i32>} : memref<16x128xf32, #tpu.memory_space<vmem>>, vector<1x128xf32>,
    %c7_192 = arith.constant 7 : index
    %c0_193 = arith.constant 0 : index
    %343 = vector.load %arg13[%c7_192, %c0_193] : memref<16x128xf32, #tpu.memory_space<vmem>>, vector<1x128xf32>
    %344 = arith.truncf %341 : vector<1x128xf32> to vector<1x128xbf16>
    %c0_194 = arith.constant 0 : index
    %c0_195 = arith.constant 0 : index
    %345 = vector.load %arg7[%c0_194, %c0_195] : memref<128x128xbf16, #tpu.memory_space<vmem>>, vector<128x128xbf16>
    %cst_196 = arith.constant dense<0.000000e+00> : vector<1x128xf32>
    %346 = tpu.matmul %344, %345, %cst_196 {dimension_numbers = #tpu.dot_dimension_numbers<[1], [0], [0], [1], [0, 0, 1, 1], [], []>} : vector<1x128xbf16>, vector<128x128xbf16>, vector<1x128xf32> -> vector<1x128xf32>
    %347 = arith.addf %343, %346 : vector<1x128xf32>
    %cst_197 = arith.constant 5.000000e-01 : f32
    %348 = vector.broadcast %cst_197 : f32 to vector<1x128xf32>
    %349 = arith.mulf %348, %347 : vector<1x128xf32>
    %350 = math.tanh %349 : vector<1x128xf32>
    %cst_198 = arith.constant 5.000000e-01 : f32
    %351 = vector.broadcast %cst_198 : f32 to vector<1x128xf32>
    %352 = arith.mulf %351, %350 : vector<1x128xf32>
    %cst_199 = arith.constant 5.000000e-01 : f32
    %353 = vector.broadcast %cst_199 : f32 to vector<1x128xf32>
    %354 = arith.addf %352, %353 : vector<1x128xf32>
    %355 = math.tanh %347 : vector<1x128xf32>
    %c96_i32_200 = arith.constant 96 : i32
    %356 = tpu.dynamic_rotate %354 by %c96_i32_200 dim 1 : vector<1x128xf32>, i32 -> vector<1x128xf32>
    %c64_i32_201 = arith.constant 64 : i32
    %357 = tpu.dynamic_rotate %355 by %c64_i32_201 dim 1 : vector<1x128xf32>, i32 -> vector<1x128xf32>
    %c32_i32_202 = arith.constant 32 : i32
    %358 = tpu.dynamic_rotate %354 by %c32_i32_202 dim 1 : vector<1x128xf32>, i32 -> vector<1x128xf32>
    %359 = arith.mulf %356, %339 : vector<1x128xf32>
    %360 = arith.mulf %354, %357 : vector<1x128xf32>
    %361 = arith.addf %359, %360 : vector<1x128xf32>
    %362 = math.tanh %361 : vector<1x128xf32>
    %363 = arith.mulf %358, %362 : vector<1x128xf32>
    %c7_203 = arith.constant 7 : index
    %c0_204 = arith.constant 0 : index
    %364 = vector.load %arg14[%c7_203, %c0_204] : memref<16x128xf32, #tpu.memory_space<vmem>>, vector<1x128xf32>
    tpu.vector_store %arg14[%c7_203, %c0_204], %363 {strides = array<i32>} : memref<16x128xf32, #tpu.memory_space<vmem>>, vector<1x128xf32>,
    %c8 = arith.constant 8 : index
    %c0_205 = arith.constant 0 : index
    %365 = vector.load %arg13[%c8, %c0_205] : memref<16x128xf32, #tpu.memory_space<vmem>>, vector<1x128xf32>
    %366 = arith.truncf %363 : vector<1x128xf32> to vector<1x128xbf16>
    %c0_206 = arith.constant 0 : index
    %c0_207 = arith.constant 0 : index
    %367 = vector.load %arg7[%c0_206, %c0_207] : memref<128x128xbf16, #tpu.memory_space<vmem>>, vector<128x128xbf16>
    %cst_208 = arith.constant dense<0.000000e+00> : vector<1x128xf32>
    %368 = tpu.matmul %366, %367, %cst_208 {dimension_numbers = #tpu.dot_dimension_numbers<[1], [0], [0], [1], [0, 0, 1, 1], [], []>} : vector<1x128xbf16>, vector<128x128xbf16>, vector<1x128xf32> -> vector<1x128xf32>
    %369 = arith.addf %365, %368 : vector<1x128xf32>
    %cst_209 = arith.constant 5.000000e-01 : f32
    %370 = vector.broadcast %cst_209 : f32 to vector<1x128xf32>
    %371 = arith.mulf %370, %369 : vector<1x128xf32>
    %372 = math.tanh %371 : vector<1x128xf32>
    %cst_210 = arith.constant 5.000000e-01 : f32
    %373 = vector.broadcast %cst_210 : f32 to vector<1x128xf32>
    %374 = arith.mulf %373, %372 : vector<1x128xf32>
    %cst_211 = arith.constant 5.000000e-01 : f32
    %375 = vector.broadcast %cst_211 : f32 to vector<1x128xf32>
    %376 = arith.addf %374, %375 : vector<1x128xf32>
    %377 = math.tanh %369 : vector<1x128xf32>
    %c96_i32_212 = arith.constant 96 : i32
    %378 = tpu.dynamic_rotate %376 by %c96_i32_212 dim 1 : vector<1x128xf32>, i32 -> vector<1x128xf32>
    %c64_i32_213 = arith.constant 64 : i32
    %379 = tpu.dynamic_rotate %377 by %c64_i32_213 dim 1 : vector<1x128xf32>, i32 -> vector<1x128xf32>
    %c32_i32_214 = arith.constant 32 : i32
    %380 = tpu.dynamic_rotate %376 by %c32_i32_214 dim 1 : vector<1x128xf32>, i32 -> vector<1x128xf32>
    %381 = arith.mulf %378, %361 : vector<1x128xf32>
    %382 = arith.mulf %376, %379 : vector<1x128xf32>
    %383 = arith.addf %381, %382 : vector<1x128xf32>
    %384 = math.tanh %383 : vector<1x128xf32>
    %385 = arith.mulf %380, %384 : vector<1x128xf32>
    %c8_215 = arith.constant 8 : index
    %c0_216 = arith.constant 0 : index
    %386 = vector.load %arg14[%c8_215, %c0_216] : memref<16x128xf32, #tpu.memory_space<vmem>>, vector<1x128xf32>
    tpu.vector_store %arg14[%c8_215, %c0_216], %385 {strides = array<i32>} : memref<16x128xf32, #tpu.memory_space<vmem>>, vector<1x128xf32>,
    %c9 = arith.constant 9 : index
    %c0_217 = arith.constant 0 : index
    %387 = vector.load %arg13[%c9, %c0_217] : memref<16x128xf32, #tpu.memory_space<vmem>>, vector<1x128xf32>
    %388 = arith.truncf %385 : vector<1x128xf32> to vector<1x128xbf16>
    %c0_218 = arith.constant 0 : index
    %c0_219 = arith.constant 0 : index
    %389 = vector.load %arg7[%c0_218, %c0_219] : memref<128x128xbf16, #tpu.memory_space<vmem>>, vector<128x128xbf16>
    %cst_220 = arith.constant dense<0.000000e+00> : vector<1x128xf32>
    %390 = tpu.matmul %388, %389, %cst_220 {dimension_numbers = #tpu.dot_dimension_numbers<[1], [0], [0], [1], [0, 0, 1, 1], [], []>} : vector<1x128xbf16>, vector<128x128xbf16>, vector<1x128xf32> -> vector<1x128xf32>
    %391 = arith.addf %387, %390 : vector<1x128xf32>
    %cst_221 = arith.constant 5.000000e-01 : f32
    %392 = vector.broadcast %cst_221 : f32 to vector<1x128xf32>
    %393 = arith.mulf %392, %391 : vector<1x128xf32>
    %394 = math.tanh %393 : vector<1x128xf32>
    %cst_222 = arith.constant 5.000000e-01 : f32
    %395 = vector.broadcast %cst_222 : f32 to vector<1x128xf32>
    %396 = arith.mulf %395, %394 : vector<1x128xf32>
    %cst_223 = arith.constant 5.000000e-01 : f32
    %397 = vector.broadcast %cst_223 : f32 to vector<1x128xf32>
    %398 = arith.addf %396, %397 : vector<1x128xf32>
    %399 = math.tanh %391 : vector<1x128xf32>
    %c96_i32_224 = arith.constant 96 : i32
    %400 = tpu.dynamic_rotate %398 by %c96_i32_224 dim 1 : vector<1x128xf32>, i32 -> vector<1x128xf32>
    %c64_i32_225 = arith.constant 64 : i32
    %401 = tpu.dynamic_rotate %399 by %c64_i32_225 dim 1 : vector<1x128xf32>, i32 -> vector<1x128xf32>
    %c32_i32_226 = arith.constant 32 : i32
    %402 = tpu.dynamic_rotate %398 by %c32_i32_226 dim 1 : vector<1x128xf32>, i32 -> vector<1x128xf32>
    %403 = arith.mulf %400, %383 : vector<1x128xf32>
    %404 = arith.mulf %398, %401 : vector<1x128xf32>
    %405 = arith.addf %403, %404 : vector<1x128xf32>
    %406 = math.tanh %405 : vector<1x128xf32>
    %407 = arith.mulf %402, %406 : vector<1x128xf32>
    %c9_227 = arith.constant 9 : index
    %c0_228 = arith.constant 0 : index
    %408 = vector.load %arg14[%c9_227, %c0_228] : memref<16x128xf32, #tpu.memory_space<vmem>>, vector<1x128xf32>
    tpu.vector_store %arg14[%c9_227, %c0_228], %407 {strides = array<i32>} : memref<16x128xf32, #tpu.memory_space<vmem>>, vector<1x128xf32>,
    %c10 = arith.constant 10 : index
    %c0_229 = arith.constant 0 : index
    %409 = vector.load %arg13[%c10, %c0_229] : memref<16x128xf32, #tpu.memory_space<vmem>>, vector<1x128xf32>
    %410 = arith.truncf %407 : vector<1x128xf32> to vector<1x128xbf16>
    %c0_230 = arith.constant 0 : index
    %c0_231 = arith.constant 0 : index
    %411 = vector.load %arg7[%c0_230, %c0_231] : memref<128x128xbf16, #tpu.memory_space<vmem>>, vector<128x128xbf16>
    %cst_232 = arith.constant dense<0.000000e+00> : vector<1x128xf32>
    %412 = tpu.matmul %410, %411, %cst_232 {dimension_numbers = #tpu.dot_dimension_numbers<[1], [0], [0], [1], [0, 0, 1, 1], [], []>} : vector<1x128xbf16>, vector<128x128xbf16>, vector<1x128xf32> -> vector<1x128xf32>
    %413 = arith.addf %409, %412 : vector<1x128xf32>
    %cst_233 = arith.constant 5.000000e-01 : f32
    %414 = vector.broadcast %cst_233 : f32 to vector<1x128xf32>
    %415 = arith.mulf %414, %413 : vector<1x128xf32>
    %416 = math.tanh %415 : vector<1x128xf32>
    %cst_234 = arith.constant 5.000000e-01 : f32
    %417 = vector.broadcast %cst_234 : f32 to vector<1x128xf32>
    %418 = arith.mulf %417, %416 : vector<1x128xf32>
    %cst_235 = arith.constant 5.000000e-01 : f32
    %419 = vector.broadcast %cst_235 : f32 to vector<1x128xf32>
    %420 = arith.addf %418, %419 : vector<1x128xf32>
    %421 = math.tanh %413 : vector<1x128xf32>
    %c96_i32_236 = arith.constant 96 : i32
    %422 = tpu.dynamic_rotate %420 by %c96_i32_236 dim 1 : vector<1x128xf32>, i32 -> vector<1x128xf32>
    %c64_i32_237 = arith.constant 64 : i32
    %423 = tpu.dynamic_rotate %421 by %c64_i32_237 dim 1 : vector<1x128xf32>, i32 -> vector<1x128xf32>
    %c32_i32_238 = arith.constant 32 : i32
    %424 = tpu.dynamic_rotate %420 by %c32_i32_238 dim 1 : vector<1x128xf32>, i32 -> vector<1x128xf32>
    %425 = arith.mulf %422, %405 : vector<1x128xf32>
    %426 = arith.mulf %420, %423 : vector<1x128xf32>
    %427 = arith.addf %425, %426 : vector<1x128xf32>
    %428 = math.tanh %427 : vector<1x128xf32>
    %429 = arith.mulf %424, %428 : vector<1x128xf32>
    %c10_239 = arith.constant 10 : index
    %c0_240 = arith.constant 0 : index
    %430 = vector.load %arg14[%c10_239, %c0_240] : memref<16x128xf32, #tpu.memory_space<vmem>>, vector<1x128xf32>
    tpu.vector_store %arg14[%c10_239, %c0_240], %429 {strides = array<i32>} : memref<16x128xf32, #tpu.memory_space<vmem>>, vector<1x128xf32>,
    %c11 = arith.constant 11 : index
    %c0_241 = arith.constant 0 : index
    %431 = vector.load %arg13[%c11, %c0_241] : memref<16x128xf32, #tpu.memory_space<vmem>>, vector<1x128xf32>
    %432 = arith.truncf %429 : vector<1x128xf32> to vector<1x128xbf16>
    %c0_242 = arith.constant 0 : index
    %c0_243 = arith.constant 0 : index
    %433 = vector.load %arg7[%c0_242, %c0_243] : memref<128x128xbf16, #tpu.memory_space<vmem>>, vector<128x128xbf16>
    %cst_244 = arith.constant dense<0.000000e+00> : vector<1x128xf32>
    %434 = tpu.matmul %432, %433, %cst_244 {dimension_numbers = #tpu.dot_dimension_numbers<[1], [0], [0], [1], [0, 0, 1, 1], [], []>} : vector<1x128xbf16>, vector<128x128xbf16>, vector<1x128xf32> -> vector<1x128xf32>
    %435 = arith.addf %431, %434 : vector<1x128xf32>
    %cst_245 = arith.constant 5.000000e-01 : f32
    %436 = vector.broadcast %cst_245 : f32 to vector<1x128xf32>
    %437 = arith.mulf %436, %435 : vector<1x128xf32>
    %438 = math.tanh %437 : vector<1x128xf32>
    %cst_246 = arith.constant 5.000000e-01 : f32
    %439 = vector.broadcast %cst_246 : f32 to vector<1x128xf32>
    %440 = arith.mulf %439, %438 : vector<1x128xf32>
    %cst_247 = arith.constant 5.000000e-01 : f32
    %441 = vector.broadcast %cst_247 : f32 to vector<1x128xf32>
    %442 = arith.addf %440, %441 : vector<1x128xf32>
    %443 = math.tanh %435 : vector<1x128xf32>
    %c96_i32_248 = arith.constant 96 : i32
    %444 = tpu.dynamic_rotate %442 by %c96_i32_248 dim 1 : vector<1x128xf32>, i32 -> vector<1x128xf32>
    %c64_i32_249 = arith.constant 64 : i32
    %445 = tpu.dynamic_rotate %443 by %c64_i32_249 dim 1 : vector<1x128xf32>, i32 -> vector<1x128xf32>
    %c32_i32_250 = arith.constant 32 : i32
    %446 = tpu.dynamic_rotate %442 by %c32_i32_250 dim 1 : vector<1x128xf32>, i32 -> vector<1x128xf32>
    %447 = arith.mulf %444, %427 : vector<1x128xf32>
    %448 = arith.mulf %442, %445 : vector<1x128xf32>
    %449 = arith.addf %447, %448 : vector<1x128xf32>
    %450 = math.tanh %449 : vector<1x128xf32>
    %451 = arith.mulf %446, %450 : vector<1x128xf32>
    %c11_251 = arith.constant 11 : index
    %c0_252 = arith.constant 0 : index
    %452 = vector.load %arg14[%c11_251, %c0_252] : memref<16x128xf32, #tpu.memory_space<vmem>>, vector<1x128xf32>
    tpu.vector_store %arg14[%c11_251, %c0_252], %451 {strides = array<i32>} : memref<16x128xf32, #tpu.memory_space<vmem>>, vector<1x128xf32>,
    %c12 = arith.constant 12 : index
    %c0_253 = arith.constant 0 : index
    %453 = vector.load %arg13[%c12, %c0_253] : memref<16x128xf32, #tpu.memory_space<vmem>>, vector<1x128xf32>
    %454 = arith.truncf %451 : vector<1x128xf32> to vector<1x128xbf16>
    %c0_254 = arith.constant 0 : index
    %c0_255 = arith.constant 0 : index
    %455 = vector.load %arg7[%c0_254, %c0_255] : memref<128x128xbf16, #tpu.memory_space<vmem>>, vector<128x128xbf16>
    %cst_256 = arith.constant dense<0.000000e+00> : vector<1x128xf32>
    %456 = tpu.matmul %454, %455, %cst_256 {dimension_numbers = #tpu.dot_dimension_numbers<[1], [0], [0], [1], [0, 0, 1, 1], [], []>} : vector<1x128xbf16>, vector<128x128xbf16>, vector<1x128xf32> -> vector<1x128xf32>
    %457 = arith.addf %453, %456 : vector<1x128xf32>
    %cst_257 = arith.constant 5.000000e-01 : f32
    %458 = vector.broadcast %cst_257 : f32 to vector<1x128xf32>
    %459 = arith.mulf %458, %457 : vector<1x128xf32>
    %460 = math.tanh %459 : vector<1x128xf32>
    %cst_258 = arith.constant 5.000000e-01 : f32
    %461 = vector.broadcast %cst_258 : f32 to vector<1x128xf32>
    %462 = arith.mulf %461, %460 : vector<1x128xf32>
    %cst_259 = arith.constant 5.000000e-01 : f32
    %463 = vector.broadcast %cst_259 : f32 to vector<1x128xf32>
    %464 = arith.addf %462, %463 : vector<1x128xf32>
    %465 = math.tanh %457 : vector<1x128xf32>
    %c96_i32_260 = arith.constant 96 : i32
    %466 = tpu.dynamic_rotate %464 by %c96_i32_260 dim 1 : vector<1x128xf32>, i32 -> vector<1x128xf32>
    %c64_i32_261 = arith.constant 64 : i32
    %467 = tpu.dynamic_rotate %465 by %c64_i32_261 dim 1 : vector<1x128xf32>, i32 -> vector<1x128xf32>
    %c32_i32_262 = arith.constant 32 : i32
    %468 = tpu.dynamic_rotate %464 by %c32_i32_262 dim 1 : vector<1x128xf32>, i32 -> vector<1x128xf32>
    %469 = arith.mulf %466, %449 : vector<1x128xf32>
    %470 = arith.mulf %464, %467 : vector<1x128xf32>
    %471 = arith.addf %469, %470 : vector<1x128xf32>
    %472 = math.tanh %471 : vector<1x128xf32>
    %473 = arith.mulf %468, %472 : vector<1x128xf32>
    %c12_263 = arith.constant 12 : index
    %c0_264 = arith.constant 0 : index
    %474 = vector.load %arg14[%c12_263, %c0_264] : memref<16x128xf32, #tpu.memory_space<vmem>>, vector<1x128xf32>
    tpu.vector_store %arg14[%c12_263, %c0_264], %473 {strides = array<i32>} : memref<16x128xf32, #tpu.memory_space<vmem>>, vector<1x128xf32>,
    %c13 = arith.constant 13 : index
    %c0_265 = arith.constant 0 : index
    %475 = vector.load %arg13[%c13, %c0_265] : memref<16x128xf32, #tpu.memory_space<vmem>>, vector<1x128xf32>
    %476 = arith.truncf %473 : vector<1x128xf32> to vector<1x128xbf16>
    %c0_266 = arith.constant 0 : index
    %c0_267 = arith.constant 0 : index
    %477 = vector.load %arg7[%c0_266, %c0_267] : memref<128x128xbf16, #tpu.memory_space<vmem>>, vector<128x128xbf16>
    %cst_268 = arith.constant dense<0.000000e+00> : vector<1x128xf32>
    %478 = tpu.matmul %476, %477, %cst_268 {dimension_numbers = #tpu.dot_dimension_numbers<[1], [0], [0], [1], [0, 0, 1, 1], [], []>} : vector<1x128xbf16>, vector<128x128xbf16>, vector<1x128xf32> -> vector<1x128xf32>
    %479 = arith.addf %475, %478 : vector<1x128xf32>
    %cst_269 = arith.constant 5.000000e-01 : f32
    %480 = vector.broadcast %cst_269 : f32 to vector<1x128xf32>
    %481 = arith.mulf %480, %479 : vector<1x128xf32>
    %482 = math.tanh %481 : vector<1x128xf32>
    %cst_270 = arith.constant 5.000000e-01 : f32
    %483 = vector.broadcast %cst_270 : f32 to vector<1x128xf32>
    %484 = arith.mulf %483, %482 : vector<1x128xf32>
    %cst_271 = arith.constant 5.000000e-01 : f32
    %485 = vector.broadcast %cst_271 : f32 to vector<1x128xf32>
    %486 = arith.addf %484, %485 : vector<1x128xf32>
    %487 = math.tanh %479 : vector<1x128xf32>
    %c96_i32_272 = arith.constant 96 : i32
    %488 = tpu.dynamic_rotate %486 by %c96_i32_272 dim 1 : vector<1x128xf32>, i32 -> vector<1x128xf32>
    %c64_i32_273 = arith.constant 64 : i32
    %489 = tpu.dynamic_rotate %487 by %c64_i32_273 dim 1 : vector<1x128xf32>, i32 -> vector<1x128xf32>
    %c32_i32_274 = arith.constant 32 : i32
    %490 = tpu.dynamic_rotate %486 by %c32_i32_274 dim 1 : vector<1x128xf32>, i32 -> vector<1x128xf32>
    %491 = arith.mulf %488, %471 : vector<1x128xf32>
    %492 = arith.mulf %486, %489 : vector<1x128xf32>
    %493 = arith.addf %491, %492 : vector<1x128xf32>
    %494 = math.tanh %493 : vector<1x128xf32>
    %495 = arith.mulf %490, %494 : vector<1x128xf32>
    %c13_275 = arith.constant 13 : index
    %c0_276 = arith.constant 0 : index
    %496 = vector.load %arg14[%c13_275, %c0_276] : memref<16x128xf32, #tpu.memory_space<vmem>>, vector<1x128xf32>
    tpu.vector_store %arg14[%c13_275, %c0_276], %495 {strides = array<i32>} : memref<16x128xf32, #tpu.memory_space<vmem>>, vector<1x128xf32>,
    %c14 = arith.constant 14 : index
    %c0_277 = arith.constant 0 : index
    %497 = vector.load %arg13[%c14, %c0_277] : memref<16x128xf32, #tpu.memory_space<vmem>>, vector<1x128xf32>
    %498 = arith.truncf %495 : vector<1x128xf32> to vector<1x128xbf16>
    %c0_278 = arith.constant 0 : index
    %c0_279 = arith.constant 0 : index
    %499 = vector.load %arg7[%c0_278, %c0_279] : memref<128x128xbf16, #tpu.memory_space<vmem>>, vector<128x128xbf16>
    %cst_280 = arith.constant dense<0.000000e+00> : vector<1x128xf32>
    %500 = tpu.matmul %498, %499, %cst_280 {dimension_numbers = #tpu.dot_dimension_numbers<[1], [0], [0], [1], [0, 0, 1, 1], [], []>} : vector<1x128xbf16>, vector<128x128xbf16>, vector<1x128xf32> -> vector<1x128xf32>
    %501 = arith.addf %497, %500 : vector<1x128xf32>
    %cst_281 = arith.constant 5.000000e-01 : f32
    %502 = vector.broadcast %cst_281 : f32 to vector<1x128xf32>
    %503 = arith.mulf %502, %501 : vector<1x128xf32>
    %504 = math.tanh %503 : vector<1x128xf32>
    %cst_282 = arith.constant 5.000000e-01 : f32
    %505 = vector.broadcast %cst_282 : f32 to vector<1x128xf32>
    %506 = arith.mulf %505, %504 : vector<1x128xf32>
    %cst_283 = arith.constant 5.000000e-01 : f32
    %507 = vector.broadcast %cst_283 : f32 to vector<1x128xf32>
    %508 = arith.addf %506, %507 : vector<1x128xf32>
    %509 = math.tanh %501 : vector<1x128xf32>
    %c96_i32_284 = arith.constant 96 : i32
    %510 = tpu.dynamic_rotate %508 by %c96_i32_284 dim 1 : vector<1x128xf32>, i32 -> vector<1x128xf32>
    %c64_i32_285 = arith.constant 64 : i32
    %511 = tpu.dynamic_rotate %509 by %c64_i32_285 dim 1 : vector<1x128xf32>, i32 -> vector<1x128xf32>
    %c32_i32_286 = arith.constant 32 : i32
    %512 = tpu.dynamic_rotate %508 by %c32_i32_286 dim 1 : vector<1x128xf32>, i32 -> vector<1x128xf32>
    %513 = arith.mulf %510, %493 : vector<1x128xf32>
    %514 = arith.mulf %508, %511 : vector<1x128xf32>
    %515 = arith.addf %513, %514 : vector<1x128xf32>
    %516 = math.tanh %515 : vector<1x128xf32>
    %517 = arith.mulf %512, %516 : vector<1x128xf32>
    %c14_287 = arith.constant 14 : index
    %c0_288 = arith.constant 0 : index
    %518 = vector.load %arg14[%c14_287, %c0_288] : memref<16x128xf32, #tpu.memory_space<vmem>>, vector<1x128xf32>
    tpu.vector_store %arg14[%c14_287, %c0_288], %517 {strides = array<i32>} : memref<16x128xf32, #tpu.memory_space<vmem>>, vector<1x128xf32>,
    %c15 = arith.constant 15 : index
    %c0_289 = arith.constant 0 : index
    %519 = vector.load %arg13[%c15, %c0_289] : memref<16x128xf32, #tpu.memory_space<vmem>>, vector<1x128xf32>
    %520 = arith.truncf %517 : vector<1x128xf32> to vector<1x128xbf16>
    %c0_290 = arith.constant 0 : index
    %c0_291 = arith.constant 0 : index
    %521 = vector.load %arg7[%c0_290, %c0_291] : memref<128x128xbf16, #tpu.memory_space<vmem>>, vector<128x128xbf16>
    %cst_292 = arith.constant dense<0.000000e+00> : vector<1x128xf32>
    %522 = tpu.matmul %520, %521, %cst_292 {dimension_numbers = #tpu.dot_dimension_numbers<[1], [0], [0], [1], [0, 0, 1, 1], [], []>} : vector<1x128xbf16>, vector<128x128xbf16>, vector<1x128xf32> -> vector<1x128xf32>
    %523 = arith.addf %519, %522 : vector<1x128xf32>
    %cst_293 = arith.constant 5.000000e-01 : f32
    %524 = vector.broadcast %cst_293 : f32 to vector<1x128xf32>
    %525 = arith.mulf %524, %523 : vector<1x128xf32>
    %526 = math.tanh %525 : vector<1x128xf32>
    %cst_294 = arith.constant 5.000000e-01 : f32
    %527 = vector.broadcast %cst_294 : f32 to vector<1x128xf32>
    %528 = arith.mulf %527, %526 : vector<1x128xf32>
    %cst_295 = arith.constant 5.000000e-01 : f32
    %529 = vector.broadcast %cst_295 : f32 to vector<1x128xf32>
    %530 = arith.addf %528, %529 : vector<1x128xf32>
    %531 = math.tanh %523 : vector<1x128xf32>
    %c96_i32_296 = arith.constant 96 : i32
    %532 = tpu.dynamic_rotate %530 by %c96_i32_296 dim 1 : vector<1x128xf32>, i32 -> vector<1x128xf32>
    %c64_i32_297 = arith.constant 64 : i32
    %533 = tpu.dynamic_rotate %531 by %c64_i32_297 dim 1 : vector<1x128xf32>, i32 -> vector<1x128xf32>
    %c32_i32_298 = arith.constant 32 : i32
    %534 = tpu.dynamic_rotate %530 by %c32_i32_298 dim 1 : vector<1x128xf32>, i32 -> vector<1x128xf32>
    %535 = arith.mulf %532, %515 : vector<1x128xf32>
    %536 = arith.mulf %530, %533 : vector<1x128xf32>
    %537 = arith.addf %535, %536 : vector<1x128xf32>
    %538 = math.tanh %537 : vector<1x128xf32>
    %539 = arith.mulf %534, %538 : vector<1x128xf32>
    %c15_299 = arith.constant 15 : index
    %c0_300 = arith.constant 0 : index
    %540 = vector.load %arg14[%c15_299, %c0_300] : memref<16x128xf32, #tpu.memory_space<vmem>>, vector<1x128xf32>
    tpu.vector_store %arg14[%c15_299, %c0_300], %539 {strides = array<i32>} : memref<16x128xf32, #tpu.memory_space<vmem>>, vector<1x128xf32>,
    %c0_301 = arith.constant 0 : index
    %c0_302 = arith.constant 0 : index
    %541 = vector.load %arg14[%c0_301, %c0_302] : memref<16x128xf32, #tpu.memory_space<vmem>>, vector<16x128xf32>
    %c0_303 = arith.constant 0 : index
    %c0_304 = arith.constant 0 : index
    %542 = vector.load %arg9[%c0_303, %c0_304] : memref<128x128xf32, #tpu.memory_space<vmem>>, vector<128x128xf32>
    %cst_305 = arith.constant dense<0.000000e+00> : vector<16x128xf32>
    %543 = tpu.matmul %541, %542, %cst_305 {dimension_numbers = #tpu.dot_dimension_numbers<[1], [0], [0], [1], [0, 0, 1, 1], [], []>} : vector<16x128xf32>, vector<128x128xf32>, vector<16x128xf32> -> vector<16x128xf32>
    %c0_306 = arith.constant 0 : index
    %544 = memref.load %arg10[%c0_306] : memref<1xf32, #tpu.memory_space<smem>>
    %545 = vector.broadcast %544 : f32 to vector<16x128xf32>
    %546 = arith.addf %543, %545 : vector<16x128xf32>
    %cst_307 = arith.constant 5.000000e-01 : f32
    %547 = vector.broadcast %cst_307 : f32 to vector<16x128xf32>
    %548 = arith.mulf %547, %546 : vector<16x128xf32>
    %549 = math.tanh %548 : vector<16x128xf32>
    %cst_308 = arith.constant 5.000000e-01 : f32
    %550 = vector.broadcast %cst_308 : f32 to vector<16x128xf32>
    %551 = arith.mulf %550, %549 : vector<16x128xf32>
    %cst_309 = arith.constant 5.000000e-01 : f32
    %552 = vector.broadcast %cst_309 : f32 to vector<16x128xf32>
    %553 = arith.addf %551, %552 : vector<16x128xf32>
    %c0_310 = arith.constant 0 : index
    %c0_311 = arith.constant 0 : index
    %554 = vector.load %arg11[%c0_310, %c0_311] : memref<16x128xf32, #tpu.memory_space<vmem>>, vector<16x128xf32>
    tpu.vector_store %arg11[%c0_310, %c0_311], %553 {strides = array<i32>} : memref<16x128xf32, #tpu.memory_space<vmem>>, vector<16x128xf32>,
    return
  }
}

</mosaic_0001>

<bundles_post_ra>
// kernel: lstm_token_scorer.1
= control target key start
LH: loop header
LB: loop body
LE: loop exit
PB: predicated region body
PF: predicated region fallthrough
CT: control target
= control target key end

     0   :  { %17 = vsyncpa [#allocation7], 0  ;;  %s5405_s0 = inlined_call_operand.vmem [shape: f32[8,32], index: 0, kind: input, shape index: {}]   ;;  %s5406_s1 = inlined_call_operand.vmem [shape: f32[16,32], index: 1, kind: input, shape index: {}]   ;;  %s5407_s2 = inlined_call_operand.hbm [shape: f32[32,128], index: 2, kind: input, shape index: {}]   ;;  %s5408_s3 = inlined_call_operand.vmem [shape: bf16[128,128], index: 3, kind: input, shape index: {}]   ;;  %s5409_s4 = inlined_call_operand.vmem [shape: f32[1,128], index: 4, kind: input, shape index: {}]   ;;  %s5410_s5 = inlined_call_operand.vmem [shape: f32[128,128], index: 5, kind: input, shape index: {}]   ;;  %s5411_s6 = inlined_call_operand.hbm [shape: f32[32,128], index: 6, kind: input, shape index: {}]   ;;  %s5412_s7 = inlined_call_operand.vmem [shape: bf16[128,128], index: 7, kind: input, shape index: {}]   ;;  %s5413_s8 = inlined_call_operand.vmem [shape: f32[1,128], index: 8, kind: input, shape index: {}]   ;;  %s5414_s9 = inlined_call_operand.vmem [shape: f32[128,128], index: 9, kind: input, shape index: {}]   ;;  %s5415_s10 = inlined_call_operand.<no memory space> [shape: f32[1], index: 10, kind: input, shape index: {}]   ;;  %s5416_s11 = inlined_call_operand.vmem [shape: f32[16,128], index: 11, kind: output, shape index: {}]  }
   0x1   :  { %18 = vsyncpa [#allocation9], 0  ;;  %s4355_s17 = smov [#allocation6]   ;;  %s4307_s21 = scalar_lea.hbm %s5407_s2, 512 }
   0x2   :  { %s28_s18 = sshll.u32 %s4355_s17, 4  ;;  %p4308_p0 = scmp.ne.s32.totalorder %s5407_s2, %s4307_s21  ;;  %s29_s18 = int_to_ptr.vmem [resolvable:$true] %s28_s18 }
   0x3   :  { %p4311_p1 = scmp.lt.u32.totalorder %s4307_s21, %s5407_s2 }
   0x5   :  { %p4313_p2 = pnand %p4311_p1, %p4308_p0 }
   0x7   :  { %4316 = shalt.err (!%p4313_p2)
}
   0x8   :  { %s4317_s26 = scalar_lea.vmem %s29_s18, 512  ;;  %p4322_p4 = scmp.lt.s32.totalorder %s29_s18, %s29_s18 }
   0x9   :  { %p4318_p3 = scmp.ne.s32.totalorder %s29_s18, %s4317_s26  ;;  %p4323_p5 = scmp.lt.s32.totalorder %s4317_s26, %s4317_s26 }
   0xb   :  { %p4324_p6 = por %p4323_p5, %p4322_p4 }
   0xd   :  { %p4325_p7 = pnand %p4324_p6, %p4318_p3 }
   0xf   :  { %4328 = shalt.err (!%p4325_p7)
}
  0x10   :  { %s4356_s27 = smov 128   ;;  %s4357_s28 = smov 8  }
  0x11   :  { %34 = dma.hbm_to_vmem [thread:$0]  %s5407_s2, 512, %s29_s18, [#allocation7], %s4356_s27, %s4356_s27, %s4357_s28  }
  0x12   :  { %s4358_s12 = smov [#allocation8]   ;;  %s4329_s16 = scalar_lea.hbm %s5411_s6, 512 }
  0x13   :  { %s46_s13 = sshll.u32 %s4358_s12, 4  ;;  %p4330_p8 = scmp.ne.s32.totalorder %s5411_s6, %s4329_s16  ;;  %s47_s13 = int_to_ptr.vmem [resolvable:$true] %s46_s13 }
  0x14   :  { %p4333_p9 = scmp.lt.u32.totalorder %s4329_s16, %s5411_s6 }
  0x16   :  { %p4335_p10 = pnand %p4333_p9, %p4330_p8 }
  0x18   :  { %4338 = shalt.err (!%p4335_p10)
}
  0x19   :  { %s4339_s22 = scalar_lea.vmem %s47_s13, 512  ;;  %p4344_p12 = scmp.lt.s32.totalorder %s47_s13, %s47_s13 }
  0x1a   :  { %p4340_p11 = scmp.ne.s32.totalorder %s47_s13, %s4339_s22  ;;  %p4345_p13 = scmp.lt.s32.totalorder %s4339_s22, %s4339_s22 }
  0x1c   :  { %p4346_p0 = por %p4345_p13, %p4344_p12 }
  0x1e   :  { %p4347_p1 = pnand %p4346_p0, %p4340_p11 }
  0x20   :  { %4350 = shalt.err (!%p4347_p1)
}
  0x21   :  { %52 = dma.hbm_to_vmem [thread:$0]  %s5411_s6, 512, %s47_s13, [#allocation9], %s4356_s27, %s4356_s27, %s4357_s28  }
  0x22   :  { %4351 = dma.done.wait [#allocation7], 512  }
  0x23   :  { %4352 = vsyncadd [#allocation7], 4294966784 }
  0x24   :  { %4353 = dma.done.wait [#allocation9], 512  }
  0x25   :  { %4354 = vsyncadd [#allocation9], 4294966784  ;;  %v4359_v0 = vmov 0.0|0.0   ;;  %vm4360_vm0 = vmmov 0   ;;  %v4361_v1 = vmov 0.0   ;;  %v69_v2 = vld [vmem:[#allocation6] sm:$0xff] }
  0x26   :  { %3938 = vmatprep.subr.bf16.mxu1 %v4359_v0  ;;  %3374 = vmatprep.mubr.msk.f32.mxu1 %vm4360_vm0, %v4361_v1  ;;  %v70_v3 = vld [vmem:[#allocation6 + $0x8] sm:$0xff]  ;;  %v71_v4 = vld [vmem:[#allocation6 + $0x10] sm:$0xff]  ;;  %v72_v6 = vld [vmem:[#allocation6 + $0x18] sm:$0xff]  ;;  %vm80_vm1 = vcmask 261120   ;;  %v4362_v17 = vmov 0   ;;  %s4363_s2 = smov 32  }
  0x27   :  { %3397 = vmatprep.subr.bf16.mxu0 %v4361_v1  ;;  %3413 = vmatprep.mubr.msk.bf16.mxu0 %vm4360_vm0, %v4361_v1  ;;  %v3939_v5 = vpack.c.bf16 %v70_v3, %v69_v2  ;;  %v4459_v7 = vld [vmem:[%s5408_s3] sm:$0xff]   ;;  %v3942_v8 = vpack.c.bf16 %v72_v6, %v71_v4  ;;  %v4467_v9 = vld [vmem:[%s5408_s3 + $0x8] sm:$0xff]   ;;  %v4477_v11 = vld [vmem:[%s5408_s3 + $0x10] sm:$0xff]   ;;  %s4365_s18 = smov 64  }
  0x28   :  { %3398 = vmatpush3.bf16.msra.mxu0 %v4459_v7  ;;  %v68_v10 = vld [vmem:[%s5405_s0] sm:$0xff]  ;;  %v4488_v12 = vld [vmem:[%s5408_s3 + $0x18] sm:$0xff]   ;;  %v4506_v14 = vld [vmem:[%s5408_s3 + $0x28] sm:$0xff]  }
  0x29   :  { %3940 = vmatpush3.bf16.msra.mxu1 %v3939_v5  ;;  %3399 = vmatprep.subr.bf16.mxu0 %v4361_v1  ;;  %v4497_v13 = vld [vmem:[%s5408_s3 + $0x20] sm:$0xff]   ;;  %v4515_v15 = vld [vmem:[%s5408_s3 + $0x30] sm:$0xff]   ;;  %v4524_v16 = vld [vmem:[%s5408_s3 + $0x38] sm:$0xff]  }
  0x2a   :  { %3941 = vmatprep.subr.bf16.mxu1 %v4359_v0  ;;  %v2964_v18 = vld [vmem:[%s5409_s4] ss:$0 sm:$0xff]  ;;  %s4364_s4 = smov 96  }
  0x2c   :  { %3400 = vmatpush3.bf16.msra.mxu0 %v4467_v9 }
  0x2d   :  { %3943 = vmatpush3.bf16.msra.mxu1 %v3942_v8  ;;  %3401 = vmatprep.subr.bf16.mxu0 %v4361_v1 }
  0x2e   :  { %3377 = vmatprep.subr.bf16.mxu1 %v4361_v1 }
  0x30   :  { %3375 = vmatmul.mubr.msk.f32.vlgmr.msra.gmra.mrb[0].mxu1 %vm80_vm1, %v68_v10  ;;  %3402 = vmatpush3.bf16.msra.mxu0 %v4477_v11 }
  0x31   :  { %3378 = vmatpush3.bf16.msra.mxu1 %v4459_v7  ;;  %3393 = vmatprep.mubr.msk.bf16.mxu1 %vm4360_vm0, %v4361_v1 }
  0x32   :  { %3379 = vmatprep.subr.bf16.mxu1 %v4361_v1  ;;  %3403 = vmatprep.subr.bf16.mxu0 %v4361_v1 }
  0x34   :  { %3404 = vmatpush3.bf16.msra.mxu0 %v4488_v12 }
  0x35   :  { %3380 = vmatpush3.bf16.msra.mxu1 %v4467_v9  ;;  %3405 = vmatprep.subr.bf16.mxu0 %v4361_v1 }
  0x36   :  { %3381 = vmatprep.subr.bf16.mxu1 %v4361_v1 }
  0x38   :  { %3406 = vmatpush3.bf16.msra.mxu0 %v4497_v13 }
  0x39   :  { %3382 = vmatpush3.bf16.msra.mxu1 %v4477_v11  ;;  %3407 = vmatprep.subr.bf16.mxu0 %v4361_v1 }
  0x3a   :  { %3383 = vmatprep.subr.bf16.mxu1 %v4361_v1 }
  0x3c   :  { %3408 = vmatpush3.bf16.msra.mxu0 %v4506_v14 }
  0x3d   :  { %3384 = vmatpush3.bf16.msra.mxu1 %v4488_v12  ;;  %3409 = vmatprep.subr.bf16.mxu0 %v4361_v1 }
  0x3e   :  { %3385 = vmatprep.subr.bf16.mxu1 %v4361_v1 }
  0x40   :  { %3410 = vmatpush3.bf16.msra.mxu0 %v4515_v15 }
  0x41   :  { %3386 = vmatpush3.bf16.msra.mxu1 %v4497_v13  ;;  %3411 = vmatprep.subr.bf16.mxu0 %v4361_v1 }
  0x42   :  { %3387 = vmatprep.subr.bf16.mxu1 %v4361_v1 }
  0x44   :  { %3412 = vmatpush3.bf16.msra.mxu0 %v4524_v16 }
  0x45   :  { %3388 = vmatpush3.bf16.msra.mxu1 %v4506_v14  ;;  %3437 = vmatprep.subr.bf16.mxu0 %v4361_v1 }
  0x46   :  { %3389 = vmatprep.subr.bf16.mxu1 %v4361_v1 }
  0x49   :  { %3390 = vmatpush3.bf16.msra.mxu1 %v4515_v15 }
  0x4a   :  { %3391 = vmatprep.subr.bf16.mxu1 %v4361_v1 }
  0x4d   :  { %3392 = vmatpush3.bf16.msra.mxu1 %v4524_v16 }
  0x4e   :  { %3417 = vmatprep.subr.bf16.mxu1 %v4361_v1 }
  0x50   :  { %3394 = vmatmul.mubr.bf16.vlgmr.msra.gmra.mrb[4].mxu1 %v4362_v17 }
  0x51   :  { %3418 = vmatpush3.bf16.msra.mxu1 %v4459_v7  ;;  %3433 = vmatprep.mubr.msk.bf16.mxu1 %vm4360_vm0, %v4361_v1 }
  0x52   :  { %3419 = vmatprep.subr.bf16.mxu1 %v4361_v1 }
  0x55   :  { %3420 = vmatpush3.bf16.msra.mxu1 %v4467_v9 }
  0x56   :  { %3421 = vmatprep.subr.bf16.mxu1 %v4361_v1 }
  0x59   :  { %3422 = vmatpush3.bf16.msra.mxu1 %v4477_v11 }
  0x5a   :  { %3423 = vmatprep.subr.bf16.mxu1 %v4361_v1 }
  0x5d   :  { %3424 = vmatpush3.bf16.msra.mxu1 %v4488_v12 }
  0x5e   :  { %3425 = vmatprep.subr.bf16.mxu1 %v4361_v1 }
  0x61   :  { %3426 = vmatpush3.bf16.msra.mxu1 %v4497_v13 }
  0x62   :  { %3427 = vmatprep.subr.bf16.mxu1 %v4361_v1 }
  0x65   :  { %3428 = vmatpush3.bf16.msra.mxu1 %v4506_v14 }
  0x66   :  { %3429 = vmatprep.subr.bf16.mxu1 %v4361_v1 }
  0x69   :  { %3430 = vmatpush3.bf16.msra.mxu1 %v4515_v15 }
  0x6a   :  { %3431 = vmatprep.subr.bf16.mxu1 %v4361_v1 }
  0x6d   :  { %3432 = vmatpush3.bf16.msra.mxu1 %v4524_v16 }
  0x6e   :  { %3457 = vmatprep.subr.bf16.mxu1 %v4361_v1 }
 0x103   :  { %v150_v19 = vpop.f32.mrb[0].mxu1 }
 0x104   :  { %v151_v20 = vadd.f32 %v2964_v18, %v150_v19  ;;  %v3376_v21 = vpop.f32.mrb[1].mxu1 }
 0x106   :  { %154 = vst [vmem:[#allocation2] sm:$0xff] %v151_v20 }
 0x10d   :  { %v155_v22 = vld [vmem:[#allocation2] sm:$0x1]  ;;  %v277_v42 = vld [vmem:[#allocation2 + $0x1] sm:$0x1]  ;;  %v336_v62 = vld [vmem:[#allocation2 + $0x2] sm:$0x1] }
 0x123   :  { %v254_v23 = vpop.f32.mrb[4].mxu1 }
 0x124   :  { %v260_v24 = vadd.f32 %v254_v23, %v155_v22  ;;  %v3395_v25 = vpop.f32.mrb[5].mxu1 }
 0x125   :  { %v257_v26 = vpop.f32.mrb[6].mxu1 }
 0x126   :  { %v261_v27 = vmul.f32 0.5, %v260_v24  ;;  %v3396_v28 = vpop.f32.mrb[7].mxu1 }
 0x128   :  { %4155 = vtanh.f32 %v261_v27 }
 0x129   :  { %4157 = vtanh.f32 %v260_v24 }
 0x132   :  { %v4156_v29 = vpop.eup %4155 }
 0x133   :  { %v263_v30 = vmul.f32 0.5, %v4156_v29  ;;  %v4158_v32 = vpop.eup %4157  ;;  %v395_v29 = vld [vmem:[#allocation2 + $0x3] sm:$0x1] }
 0x135   :  { %v264_v31 = vadd.f32 0.5, %v263_v30 }
 0x137   :  { %270 = vrot.lane.b32.xlu1 %v264_v31, %s4363_s2  ;;  %266 = vrot.lane.b32.xlu0 %v264_v31, %s4364_s4 }
 0x13b   :  { %268 = vrot.lane.b32.xlu0 %v4158_v32, %s4365_s18 }
 0x1a9   :  { %v267_v33 = vpop.permute.xlu0 %266  ;;  %v271_v39 = vpop.permute.xlu1 %270 }
 0x1aa   :  { %v272_v35 = vmul.f32 0.0, %v267_v33 }
 0x1ad   :  { %v269_v34 = vpop.permute.xlu0 %268 }
 0x1ae   :  { %v273_v36 = vmul.f32 %v269_v34, %v264_v31 }
 0x1b0   :  { %v274_v37 = vadd.f32 %v273_v36, %v272_v35 }
 0x1b2   :  { %4159 = vtanh.f32 %v274_v37 }
 0x1bc   :  { %v4160_v38 = vpop.eup %4159 }
 0x1bd   :  { %v276_v40 = vmul.f32 %v4160_v38, %v271_v39 }
 0x1bf   :  { %v278_v41 = vpack.c.bf16 %v276_v40, %v276_v40 }
 0x1c1   :  { %3414 = vmatmul.mubr.bf16.vlgmr.msra.gmra.mrb[0].mxu0 %v278_v41 }
 0x1c2   :  { %3438 = vmatpush3.bf16.msra.mxu0 %v4459_v7  ;;  %3453 = vmatprep.mubr.msk.bf16.mxu0 %vm4360_vm0, %v4361_v1 }
 0x1c3   :  { %3439 = vmatprep.subr.bf16.mxu0 %v4361_v1 }
 0x1c6   :  { %3440 = vmatpush3.bf16.msra.mxu0 %v4467_v9 }
 0x1c7   :  { %3441 = vmatprep.subr.bf16.mxu0 %v4361_v1 }
 0x1ca   :  { %3442 = vmatpush3.bf16.msra.mxu0 %v4477_v11 }
 0x1cb   :  { %3443 = vmatprep.subr.bf16.mxu0 %v4361_v1 }
 0x1ce   :  { %3444 = vmatpush3.bf16.msra.mxu0 %v4488_v12 }
 0x1cf   :  { %3445 = vmatprep.subr.bf16.mxu0 %v4361_v1 }
 0x1d2   :  { %3446 = vmatpush3.bf16.msra.mxu0 %v4497_v13 }
 0x1d3   :  { %3447 = vmatprep.subr.bf16.mxu0 %v4361_v1 }
 0x1d6   :  { %3448 = vmatpush3.bf16.msra.mxu0 %v4506_v14 }
 0x1d7   :  { %3449 = vmatprep.subr.bf16.mxu0 %v4361_v1 }
 0x1da   :  { %3450 = vmatpush3.bf16.msra.mxu0 %v4515_v15 }
 0x1db   :  { %3451 = vmatprep.subr.bf16.mxu0 %v4361_v1 }
 0x1de   :  { %3452 = vmatpush3.bf16.msra.mxu0 %v4524_v16 }
 0x1df   :  { %3477 = vmatprep.subr.bf16.mxu0 %v4361_v1 }
 0x294   :  { %v313_v43 = vpop.f32.mrb[0].mxu0 }
 0x295   :  { %v319_v44 = vadd.f32 %v313_v43, %v277_v42  ;;  %v3415_v45 = vpop.f32.mrb[1].mxu0 }
 0x296   :  { %v316_v46 = vpop.f32.mrb[2].mxu0 }
 0x297   :  { %v320_v47 = vmul.f32 0.5, %v319_v44  ;;  %4161 = vtanh.f32 %v319_v44  ;;  %v3416_v48 = vpop.f32.mrb[3].mxu0 }
 0x299   :  { %4163 = vtanh.f32 %v320_v47 }
 0x2a1   :  { %v4162_v49 = vpop.eup %4161 }
 0x2a2   :  { %327 = vrot.lane.b32.xlu0 %v4162_v49, %s4365_s18 }
 0x2a3   :  { %v4164_v50 = vpop.eup %4163 }
 0x2a4   :  { %v322_v51 = vmul.f32 0.5, %v4164_v50 }
 0x2a6   :  { %v323_v52 = vadd.f32 0.5, %v322_v51 }
 0x2a8   :  { %325 = vrot.lane.b32.xlu1 %v323_v52, %s4364_s4 }
 0x2ac   :  { %329 = vrot.lane.b32.xlu1 %v323_v52, %s4363_s2 }
 0x314   :  { %v328_v53 = vpop.permute.xlu0 %327 }
 0x315   :  { %v332_v55 = vmul.f32 %v328_v53, %v323_v52 }
 0x31a   :  { %v326_v54 = vpop.permute.xlu1 %325 }
 0x31b   :  { %v331_v56 = vmul.f32 %v326_v54, %v274_v37 }
 0x31d   :  { %v333_v57 = vadd.f32 %v332_v55, %v331_v56 }
 0x31e   :  { %v330_v59 = vpop.permute.xlu1 %329 }
 0x31f   :  { %4165 = vtanh.f32 %v333_v57 }
 0x329   :  { %v4166_v58 = vpop.eup %4165 }
 0x32a   :  { %v335_v60 = vmul.f32 %v4166_v58, %v330_v59 }
 0x32c   :  { %v337_v61 = vpack.c.bf16 %v335_v60, %v335_v60 }
 0x32e   :  { %3434 = vmatmul.mubr.bf16.vlgmr.msra.gmra.mrb[8].mxu1 %v337_v61 }
 0x32f   :  { %3458 = vmatpush3.bf16.msra.mxu1 %v4459_v7  ;;  %3473 = vmatprep.mubr.msk.bf16.mxu1 %vm4360_vm0, %v4361_v1 }
 0x330   :  { %3459 = vmatprep.subr.bf16.mxu1 %v4361_v1 }
 0x333   :  { %3460 = vmatpush3.bf16.msra.mxu1 %v4467_v9 }
 0x334   :  { %3461 = vmatprep.subr.bf16.mxu1 %v4361_v1 }
 0x337   :  { %3462 = vmatpush3.bf16.msra.mxu1 %v4477_v11 }
 0x338   :  { %3463 = vmatprep.subr.bf16.mxu1 %v4361_v1 }
 0x33b   :  { %3464 = vmatpush3.bf16.msra.mxu1 %v4488_v12 }
 0x33c   :  { %3465 = vmatprep.subr.bf16.mxu1 %v4361_v1 }
 0x33f   :  { %3466 = vmatpush3.bf16.msra.mxu1 %v4497_v13 }
 0x340   :  { %3467 = vmatprep.subr.bf16.mxu1 %v4361_v1 }
 0x343   :  { %3468 = vmatpush3.bf16.msra.mxu1 %v4506_v14 }
 0x344   :  { %3469 = vmatprep.subr.bf16.mxu1 %v4361_v1 }
 0x347   :  { %3470 = vmatpush3.bf16.msra.mxu1 %v4515_v15 }
 0x348   :  { %3471 = vmatprep.subr.bf16.mxu1 %v4361_v1 }
 0x34b   :  { %3472 = vmatpush3.bf16.msra.mxu1 %v4524_v16 }
 0x34c   :  { %3497 = vmatprep.subr.bf16.mxu1 %v4361_v1 }
 0x401   :  { %v372_v63 = vpop.f32.mrb[8].mxu1 }
 0x402   :  { %v378_v2 = vadd.f32 %v372_v63, %v336_v62  ;;  %v3435_v3 = vpop.f32.mrb[9].mxu1 }
 0x403   :  { %v375_v4 = vpop.f32.mrb[10].mxu1  ;;  %v4303_v3 = vld [vmem:[%s5408_s3] sm:$0xff]  }
 0x404   :  { %v379_v5 = vmul.f32 0.5, %v378_v2  ;;  %4167 = vtanh.f32 %v378_v2  ;;  %v3436_v6 = vpop.f32.mrb[11].mxu1  ;;  %v4304_v4 = vld [vmem:[%s5408_s3 + $0x8] sm:$0xff]  }
 0x405   :  { %v4306_v6 = vld [vmem:[%s5408_s3 + $0x18] sm:$0xff]  }
 0x406   :  { %4169 = vtanh.f32 %v379_v5  ;;  %v4305_v5 = vld [vmem:[%s5408_s3 + $0x10] sm:$0xff]  }
 0x40e   :  { %v4168_v8 = vpop.eup %4167 }
 0x40f   :  { %386 = vrot.lane.b32.xlu1 %v4168_v8, %s4365_s18  ;;  %v513_v8 = vld [vmem:[#allocation2 + $0x5] sm:$0x1] }
 0x410   :  { %v4170_v10 = vpop.eup %4169 }
 0x411   :  { %v381_v18 = vmul.f32 0.5, %v4170_v10 }
 0x413   :  { %v382_v19 = vadd.f32 0.5, %v381_v18 }
 0x415   :  { %384 = vrot.lane.b32.xlu0 %v382_v19, %s4364_s4 }
 0x419   :  { %388 = vrot.lane.b32.xlu0 %v382_v19, %s4363_s2 }
 0x481   :  { %v387_v20 = vpop.permute.xlu1 %386 }
 0x482   :  { %v391_v22 = vmul.f32 %v387_v20, %v382_v19 }
 0x487   :  { %v385_v21 = vpop.permute.xlu0 %384 }
 0x488   :  { %v390_v23 = vmul.f32 %v385_v21, %v333_v57 }
 0x48a   :  { %v392_v24 = vadd.f32 %v391_v22, %v390_v23 }
 0x48b   :  { %v389_v26 = vpop.permute.xlu0 %388 }
 0x48c   :  { %4171 = vtanh.f32 %v392_v24 }
 0x496   :  { %v4172_v25 = vpop.eup %4171 }
 0x497   :  { %v394_v27 = vmul.f32 %v4172_v25, %v389_v26 }
 0x499   :  { %v396_v28 = vpack.c.bf16 %v394_v27, %v394_v27 }
 0x49b   :  { %3454 = vmatmul.mubr.bf16.vlgmr.msra.gmra.mrb[4].mxu0 %v396_v28 }
 0x49c   :  { %3478 = vmatpush3.bf16.msra.mxu0 %v4459_v7  ;;  %3493 = vmatprep.mubr.msk.bf16.mxu0 %vm4360_vm0, %v4361_v1 }
 0x49d   :  { %3479 = vmatprep.subr.bf16.mxu0 %v4361_v1 }
 0x4a0   :  { %3480 = vmatpush3.bf16.msra.mxu0 %v4467_v9 }
 0x4a1   :  { %3481 = vmatprep.subr.bf16.mxu0 %v4361_v1 }
 0x4a4   :  { %3482 = vmatpush3.bf16.msra.mxu0 %v4477_v11 }
 0x4a5   :  { %3483 = vmatprep.subr.bf16.mxu0 %v4361_v1 }
 0x4a8   :  { %3484 = vmatpush3.bf16.msra.mxu0 %v4488_v12 }
 0x4a9   :  { %3485 = vmatprep.subr.bf16.mxu0 %v4361_v1 }
 0x4ac   :  { %3486 = vmatpush3.bf16.msra.mxu0 %v4497_v13 }
 0x4ad   :  { %3487 = vmatprep.subr.bf16.mxu0 %v4361_v1 }
 0x4b0   :  { %3488 = vmatpush3.bf16.msra.mxu0 %v4506_v14 }
 0x4b1   :  { %3489 = vmatprep.subr.bf16.mxu0 %v4361_v1 }
 0x4b4   :  { %3490 = vmatpush3.bf16.msra.mxu0 %v4515_v15 }
 0x4b5   :  { %3491 = vmatprep.subr.bf16.mxu0 %v4361_v1 }
 0x4b8   :  { %3492 = vmatpush3.bf16.msra.mxu0 %v4524_v16 }
 0x4b9   :  { %3517 = vmatprep.subr.bf16.mxu0 %v4361_v1 }
 0x56e   :  { %v431_v30 = vpop.f32.mrb[4].mxu0 }
 0x56f   :  { %v437_v31 = vadd.f32 %v431_v30, %v395_v29  ;;  %v3455_v32 = vpop.f32.mrb[5].mxu0 }
 0x570   :  { %v434_v33 = vpop.f32.mrb[6].mxu0  ;;  %v572_v32 = vld [vmem:[#allocation2 + $0x6] sm:$0x1] }
 0x571   :  { %v438_v34 = vmul.f32 0.5, %v437_v31  ;;  %4173 = vtanh.f32 %v437_v31  ;;  %v3456_v35 = vpop.f32.mrb[7].mxu0 }
 0x573   :  { %4175 = vtanh.f32 %v438_v34 }
 0x57b   :  { %v4174_v36 = vpop.eup %4173 }
 0x57c   :  { %445 = vrot.lane.b32.xlu0 %v4174_v36, %s4365_s18 }
 0x57d   :  { %v4176_v37 = vpop.eup %4175 }
 0x57e   :  { %v440_v38 = vmul.f32 0.5, %v4176_v37 }
 0x580   :  { %v441_v39 = vadd.f32 0.5, %v440_v38 }
 0x582   :  { %443 = vrot.lane.b32.xlu1 %v441_v39, %s4364_s4 }
 0x586   :  { %447 = vrot.lane.b32.xlu1 %v441_v39, %s4363_s2 }
 0x5ee   :  { %v446_v40 = vpop.permute.xlu0 %445 }
 0x5ef   :  { %v450_v42 = vmul.f32 %v446_v40, %v441_v39 }
 0x5f4   :  { %v444_v41 = vpop.permute.xlu1 %443 }
 0x5f5   :  { %v449_v43 = vmul.f32 %v444_v41, %v392_v24 }
 0x5f7   :  { %v451_v44 = vadd.f32 %v450_v42, %v449_v43 }
 0x5f8   :  { %v448_v46 = vpop.permute.xlu1 %447 }
 0x5f9   :  { %4177 = vtanh.f32 %v451_v44 }
 0x603   :  { %v4178_v45 = vpop.eup %4177 }
 0x604   :  { %v453_v47 = vmul.f32 %v4178_v45, %v448_v46 }
 0x606   :  { %v455_v48 = vpack.c.bf16 %v453_v47, %v453_v47 }
 0x608   :  { %3474 = vmatmul.mubr.bf16.vlgmr.msra.gmra.mrb[12].mxu1 %v455_v48 }
 0x609   :  { %3498 = vmatpush3.bf16.msra.mxu1 %v4459_v7  ;;  %3513 = vmatprep.mubr.msk.bf16.mxu1 %vm4360_vm0, %v4361_v1  ;;  %v454_v7 = vld [vmem:[#allocation2 + $0x4] sm:$0x1] }
 0x60a   :  { %3499 = vmatprep.subr.bf16.mxu1 %v4361_v1 }
 0x60d   :  { %3500 = vmatpush3.bf16.msra.mxu1 %v4467_v9 }
 0x60e   :  { %3501 = vmatprep.subr.bf16.mxu1 %v4361_v1 }
 0x611   :  { %3502 = vmatpush3.bf16.msra.mxu1 %v4477_v11 }
 0x612   :  { %3503 = vmatprep.subr.bf16.mxu1 %v4361_v1 }
 0x615   :  { %3504 = vmatpush3.bf16.msra.mxu1 %v4488_v12 }
 0x616   :  { %3505 = vmatprep.subr.bf16.mxu1 %v4361_v1 }
 0x619   :  { %3506 = vmatpush3.bf16.msra.mxu1 %v4497_v13 }
 0x61a   :  { %3507 = vmatprep.subr.bf16.mxu1 %v4361_v1 }
 0x61d   :  { %3508 = vmatpush3.bf16.msra.mxu1 %v4506_v14 }
 0x61e   :  { %3509 = vmatprep.subr.bf16.mxu1 %v4361_v1 }
 0x621   :  { %3510 = vmatpush3.bf16.msra.mxu1 %v4515_v15 }
 0x622   :  { %3511 = vmatprep.subr.bf16.mxu1 %v4361_v1 }
 0x625   :  { %3512 = vmatpush3.bf16.msra.mxu1 %v4524_v16 }
 0x626   :  { %3944 = vmatprep.subr.bf16.mxu1 %v4359_v0 }
 0x6db   :  { %v490_v9 = vpop.f32.mrb[12].mxu1 }
 0x6dc   :  { %v496_v11 = vadd.f32 %v490_v9, %v454_v7  ;;  %v3475_v12 = vpop.f32.mrb[13].mxu1 }
 0x6dd   :  { %v493_v49 = vpop.f32.mrb[14].mxu1  ;;  %v690_v12 = vld [vmem:[%s5410_s5] sm:$0xff] }
 0x6de   :  { %v497_v50 = vmul.f32 0.5, %v496_v11  ;;  %4179 = vtanh.f32 %v496_v11  ;;  %v3476_v51 = vpop.f32.mrb[15].mxu1  ;;  %v691_v49 = vld [vmem:[%s5410_s5 + $0x8] sm:$0xff] }
 0x6df   :  { %v3945_v51 = vpack.c.bf16 %v691_v49, %v690_v12 }
 0x6e0   :  { %4181 = vtanh.f32 %v497_v50  ;;  %v779_v50 = vld [vmem:[#allocation8] sm:$0xff] }
 0x6e8   :  { %v4180_v52 = vpop.eup %4179 }
 0x6e9   :  { %504 = vrot.lane.b32.xlu1 %v4180_v52, %s4365_s18  ;;  %v780_v52 = vld [vmem:[#allocation8 + $0x8] sm:$0xff] }
 0x6ea   :  { %v4182_v53 = vpop.eup %4181 }
 0x6eb   :  { %v499_v54 = vmul.f32 0.5, %v4182_v53  ;;  %v692_v53 = vld [vmem:[%s5410_s5 + $0x10] sm:$0xff] }
 0x6ed   :  { %v500_v55 = vadd.f32 0.5, %v499_v54  ;;  %v693_v54 = vld [vmem:[%s5410_s5 + $0x18] sm:$0xff] }
 0x6ef   :  { %502 = vrot.lane.b32.xlu0 %v500_v55, %s4364_s4 }
 0x6f3   :  { %506 = vrot.lane.b32.xlu0 %v500_v55, %s4363_s2 }
 0x75b   :  { %v505_v56 = vpop.permute.xlu1 %504 }
 0x75c   :  { %v509_v58 = vmul.f32 %v505_v56, %v500_v55  ;;  %v3968_v55 = vpack.c.bf16 %v780_v52, %v779_v50  ;;  %v781_v56 = vld [vmem:[#allocation8 + $0x10] sm:$0xff]  ;;  %v783_v52 = vlaneseq }
 0x761   :  { %v503_v57 = vpop.permute.xlu0 %502 }
 0x762   :  { %v508_v59 = vmul.f32 %v503_v57, %v451_v44  ;;  %v782_v57 = vld [vmem:[#allocation8 + $0x18] sm:$0xff] }
 0x764   :  { %v510_v60 = vadd.f32 %v509_v58, %v508_v59  ;;  %v3948_v58 = vpack.c.bf16 %v693_v54, %v692_v53  ;;  %v3972_v59 = vpack.c.bf16 %v782_v57, %v781_v56  ;;  %v784_v53 = vshrl.u32 %v783_v52, 7  ;;  %v706_v54 = vld [vmem:[%s5413_s8] sm:$0x1] }
 0x765   :  { %v507_v62 = vpop.permute.xlu0 %506 }
 0x766   :  { %4183 = vtanh.f32 %v510_v60 }
 0x770   :  { %v4184_v61 = vpop.eup %4183 }
 0x771   :  { %v512_v63 = vmul.f32 %v4184_v61, %v507_v62  ;;  %v695_v61 = vld [vmem:[%s5410_s5 + $0x28] sm:$0xff]  ;;  %v631_v62 = vld [vmem:[#allocation2 + $0x7] sm:$0x1] }
 0x773   :  { %v514_v2 = vpack.c.bf16 %v512_v63, %v512_v63 }
 0x775   :  { %3494 = vmatmul.mubr.bf16.vlgmr.msra.gmra.mrb[8].mxu0 %v514_v2 }
 0x776   :  { %3518 = vmatpush3.bf16.msra.mxu0 %v4303_v3  ;;  %3533 = vmatprep.mubr.msk.bf16.mxu0 %vm4360_vm0, %v4361_v1 }
 0x777   :  { %3519 = vmatprep.subr.bf16.mxu0 %v4361_v1 }
 0x77a   :  { %3520 = vmatpush3.bf16.msra.mxu0 %v4304_v4 }
 0x77b   :  { %3521 = vmatprep.subr.bf16.mxu0 %v4361_v1 }
 0x77e   :  { %3522 = vmatpush3.bf16.msra.mxu0 %v4305_v5  ;;  %v777_v5 = vld [vmem:[%s5406_s1] sm:$0xff] }
 0x77f   :  { %3523 = vmatprep.subr.bf16.mxu0 %v4361_v1 }
 0x782   :  { %3524 = vmatpush3.bf16.msra.mxu0 %v4306_v6  ;;  %v778_v6 = vld [vmem:[%s5406_s1 + $0x8] sm:$0xff] }
 0x783   :  { %3525 = vmatprep.subr.bf16.mxu0 %v4361_v1 }
 0x786   :  { %3526 = vmatpush3.bf16.msra.mxu0 %v4497_v13 }
 0x787   :  { %3527 = vmatprep.subr.bf16.mxu0 %v4361_v1 }
 0x78a   :  { %3528 = vmatpush3.bf16.msra.mxu0 %v4506_v14 }
 0x78b   :  { %3529 = vmatprep.subr.bf16.mxu0 %v4361_v1 }
 0x78e   :  { %3530 = vmatpush3.bf16.msra.mxu0 %v4515_v15 }
 0x78f   :  { %3531 = vmatprep.subr.bf16.mxu0 %v4361_v1 }
 0x792   :  { %3532 = vmatpush3.bf16.msra.mxu0 %v4524_v16 }
 0x793   :  { %3969 = vmatprep.subr.bf16.mxu0 %v3968_v55 }
 0x848   :  { %v549_v10 = vpop.f32.mrb[8].mxu0 }
 0x849   :  { %v555_v18 = vadd.f32 %v549_v10, %v513_v8  ;;  %v3495_v19 = vpop.f32.mrb[9].mxu0  ;;  %v4027_v8 = vld [vmem:[%s5412_s7] sm:$0xff]  }
 0x84a   :  { %v552_v20 = vpop.f32.mrb[10].mxu0  ;;  %v697_v19 = vld [vmem:[%s5410_s5 + $0x38] sm:$0xff] }
 0x84b   :  { %v556_v21 = vmul.f32 0.5, %v555_v18  ;;  %4185 = vtanh.f32 %v555_v18  ;;  %v3496_v13 = vpop.f32.mrb[11].mxu0  ;;  %v696_v18 = vld [vmem:[%s5410_s5 + $0x30] sm:$0xff] }
 0x84c   :  { %v3954_v13 = vpack.c.bf16 %v697_v19, %v696_v18 }
 0x84d   :  { %4187 = vtanh.f32 %v556_v21 }
 0x855   :  { %v4186_v22 = vpop.eup %4185 }
 0x856   :  { %563 = vrot.lane.b32.xlu0 %v4186_v22, %s4365_s18  ;;  %v4028_v22 = vld [vmem:[%s5412_s7 + $0x8] sm:$0xff]  }
 0x857   :  { %v4188_v14 = vpop.eup %4187 }
 0x858   :  { %v558_v23 = vmul.f32 0.5, %v4188_v14  ;;  %v698_v14 = vld [vmem:[%s5410_s5 + $0x40] sm:$0xff] }
 0x85a   :  { %v559_v24 = vadd.f32 0.5, %v558_v23  ;;  %v699_v23 = vld [vmem:[%s5410_s5 + $0x48] sm:$0xff] }
 0x85c   :  { %561 = vrot.lane.b32.xlu1 %v559_v24, %s4364_s4 }
 0x860   :  { %565 = vrot.lane.b32.xlu1 %v559_v24, %s4363_s2 }
 0x8c8   :  { %v564_v15 = vpop.permute.xlu0 %563 }
 0x8c9   :  { %v568_v25 = vmul.f32 %v564_v15, %v559_v24  ;;  %v3957_v24 = vpack.c.bf16 %v699_v23, %v698_v14  ;;  %v4029_v15 = vld [vmem:[%s5412_s7 + $0x10] sm:$0xff]  }
 0x8ce   :  { %v562_v16 = vpop.permute.xlu1 %561 }
 0x8cf   :  { %v567_v26 = vmul.f32 %v562_v16, %v510_v60  ;;  %v694_v60 = vld [vmem:[%s5410_s5 + $0x20] sm:$0xff]  ;;  %v700_v16 = vld [vmem:[%s5410_s5 + $0x50] sm:$0xff] }
 0x8d0   :  { %v3951_v2 = vpack.c.bf16 %v695_v61, %v694_v60 }
 0x8d1   :  { %v569_v27 = vadd.f32 %v568_v25, %v567_v26  ;;  %v701_v25 = vld [vmem:[%s5410_s5 + $0x58] sm:$0xff] }
 0x8d2   :  { %v566_v29 = vpop.permute.xlu1 %565  ;;  %v3960_v26 = vpack.c.bf16 %v701_v25, %v700_v16 }
 0x8d3   :  { %4189 = vtanh.f32 %v569_v27 }
 0x8dd   :  { %v4190_v28 = vpop.eup %4189 }
 0x8de   :  { %v571_v30 = vmul.f32 %v4190_v28, %v566_v29  ;;  %v4030_v29 = vld [vmem:[%s5412_s7 + $0x18] sm:$0xff]  }
 0x8e0   :  { %v573_v31 = vpack.c.bf16 %v571_v30, %v571_v30  ;;  %v702_v30 = vld [vmem:[%s5410_s5 + $0x60] sm:$0xff] }
 0x8e2   :  { %3514 = vmatmul.mubr.bf16.vlgmr.msra.gmra.mrb[16].mxu1 %v573_v31  ;;  %v703_v31 = vld [vmem:[%s5410_s5 + $0x68] sm:$0xff] }
 0x8e3   :  { %3569 = vmatprep.mubr.msk.f32.mxu1 %vm4360_vm0, %v4361_v1  ;;  %3946 = vmatpush3.bf16.msra.mxu1 %v3945_v51  ;;  %v4035_v51 = vld [vmem:[%s5412_s7] sm:$0xff]  }
 0x8e4   :  { %3947 = vmatprep.subr.bf16.mxu1 %v4359_v0 }
 0x8e7   :  { %3949 = vmatpush3.bf16.msra.mxu1 %v3948_v58 }
 0x8e8   :  { %3950 = vmatprep.subr.bf16.mxu1 %v4359_v0 }
 0x8eb   :  { %3952 = vmatpush3.bf16.msra.mxu1 %v3951_v2  ;;  %v4037_v2 = vld [vmem:[%s5412_s7 + $0x10] sm:$0xff]  }
 0x8ec   :  { %3953 = vmatprep.subr.bf16.mxu1 %v4359_v0 }
 0x8ef   :  { %3955 = vmatpush3.bf16.msra.mxu1 %v3954_v13 }
 0x8f0   :  { %3956 = vmatprep.subr.bf16.mxu1 %v4359_v0 }
 0x8f3   :  { %3958 = vmatpush3.bf16.msra.mxu1 %v3957_v24 }
 0x8f4   :  { %3959 = vmatprep.subr.bf16.mxu1 %v4359_v0 }
 0x8f7   :  { %3961 = vmatpush3.bf16.msra.mxu1 %v3960_v26 }
 0x8f8   :  { %3962 = vmatprep.subr.bf16.mxu1 %v4359_v0 }
 0x9b5   :  { %v608_v33 = vpop.f32.mrb[16].mxu1 }
 0x9b6   :  { %v614_v34 = vadd.f32 %v608_v33, %v572_v32  ;;  %v3515_v35 = vpop.f32.mrb[17].mxu1  ;;  %v3963_v33 = vpack.c.bf16 %v703_v31, %v702_v30 }
 0x9b7   :  { %v611_v36 = vpop.f32.mrb[18].mxu1  ;;  %v4031_v35 = vld [vmem:[%s5412_s7 + $0x20] sm:$0xff]  }
 0x9b8   :  { %v615_v37 = vmul.f32 0.5, %v614_v34  ;;  %4191 = vtanh.f32 %v614_v34  ;;  %v3516_v38 = vpop.f32.mrb[19].mxu1  ;;  %3964 = vmatpush3.bf16.msra.mxu1 %v3963_v33  ;;  %v704_v36 = vld [vmem:[%s5410_s5 + $0x70] sm:$0xff] }
 0x9b9   :  { %3965 = vmatprep.subr.bf16.mxu1 %v4359_v0  ;;  %v4032_v0 = vld [vmem:[%s5412_s7 + $0x28] sm:$0xff]   ;;  %v4045_v33 = vld [vmem:[%s5412_s7 + $0x10] sm:$0xff]  }
 0x9ba   :  { %4193 = vtanh.f32 %v615_v37  ;;  %v705_v37 = vld [vmem:[%s5410_s5 + $0x78] sm:$0xff] }
 0x9bb   :  { %v3966_v38 = vpack.c.bf16 %v705_v37, %v704_v36  ;;  %v4046_v37 = vld [vmem:[%s5412_s7 + $0x18] sm:$0xff]  }
 0x9bd   :  { %3967 = vmatpush3.bf16.msra.mxu1 %v3966_v38  ;;  %v4047_v38 = vld [vmem:[%s5412_s7 + $0x20] sm:$0xff]  }
 0x9be   :  { %3603 = vmatprep.subr.bf16.mxu1 %v4361_v1 }
 0x9c2   :  { %v4192_v39 = vpop.eup %4191 }
 0x9c3   :  { %622 = vrot.lane.b32.xlu1 %v4192_v39, %s4365_s18  ;;  %v4033_v39 = vld [vmem:[%s5412_s7 + $0x30] sm:$0xff]  }
 0x9c4   :  { %v4194_v40 = vpop.eup %4193 }
 0x9c5   :  { %v617_v41 = vmul.f32 0.5, %v4194_v40  ;;  %v4034_v40 = vld [vmem:[%s5412_s7 + $0x38] sm:$0xff]  }
 0x9c7   :  { %v618_v42 = vadd.f32 0.5, %v617_v41 }
 0x9c9   :  { %620 = vrot.lane.b32.xlu0 %v618_v42, %s4364_s4 }
 0x9cd   :  { %624 = vrot.lane.b32.xlu0 %v618_v42, %s4363_s2 }
 0xa35   :  { %v623_v43 = vpop.permute.xlu1 %622 }
 0xa36   :  { %v627_v45 = vmul.f32 %v623_v43, %v618_v42 }
 0xa3b   :  { %v621_v44 = vpop.permute.xlu0 %620 }
 0xa3c   :  { %v626_v46 = vmul.f32 %v621_v44, %v569_v27 }
 0xa3e   :  { %v4678_v47 = vadd.f32 %v627_v45, %v626_v46 }
 0xa3f   :  { %v625_v7 = vpop.permute.xlu0 %624 }
 0xa40   :  { %4195 = vtanh.f32 %v4678_v47 }
 0xa4a   :  { %v4196_v48 = vpop.eup %4195 }
 0xa4b   :  { %v630_v9 = vmul.f32 %v4196_v48, %v625_v7 }
 0xa4d   :  { %v632_v11 = vpack.c.bf16 %v630_v9, %v630_v9 }
 0xa4f   :  { %3534 = vmatmul.mubr.bf16.vlgmr.msra.gmra.mrb[12].mxu0 %v632_v11 }
 0xa50   :  { %3971 = vmatpush3.bf16.msra.mxu0 %v3968_v55  ;;  %3580 = vmatprep.mubr.msk.f32.mxu0 %vm80_vm1, %v777_v5  ;;  %v785_v55 = vsub.s32 0, %v784_v53  ;;  %v4039_v5 = vld [vmem:[%s5412_s7 + $0x20] sm:$0xff]  }
 0xa51   :  { %3973 = vmatprep.subr.bf16.mxu0 %v3972_v59 }
 0xa54   :  { %3975 = vmatpush3.bf16.msra.mxu0 %v3972_v59 }
 0xa55   :  { %3583 = vmatprep.subr.bf16.mxu0 %v4361_v1 }
 0xa57   :  { %3581 = vmatmul.mubr.msk.f32.vlgmr.msra.gmra.mrb[16].mxu0 %vm80_vm1, %v778_v6 }
 0xa58   :  { %3584 = vmatpush3.bf16.msra.mxu0 %v4027_v8  ;;  %3599 = vmatprep.mubr.msk.bf16.mxu0 %vm4360_vm0, %v4361_v1  ;;  %v4040_v8 = vld [vmem:[%s5412_s7 + $0x28] sm:$0xff]  }
 0xa59   :  { %3585 = vmatprep.subr.bf16.mxu0 %v4361_v1 }
 0xa5c   :  { %3586 = vmatpush3.bf16.msra.mxu0 %v4028_v22 }
 0xa5d   :  { %3587 = vmatprep.subr.bf16.mxu0 %v4361_v1 }
 0xa60   :  { %3588 = vmatpush3.bf16.msra.mxu0 %v4029_v15 }
 0xa61   :  { %3589 = vmatprep.subr.bf16.mxu0 %v4361_v1 }
 0xa64   :  { %3590 = vmatpush3.bf16.msra.mxu0 %v4030_v29 }
 0xa65   :  { %3591 = vmatprep.subr.bf16.mxu0 %v4361_v1 }
 0xa68   :  { %3592 = vmatpush3.bf16.msra.mxu0 %v4031_v35 }
 0xa69   :  { %3593 = vmatprep.subr.bf16.mxu0 %v4361_v1 }
 0xa6c   :  { %3594 = vmatpush3.bf16.msra.mxu0 %v4032_v0 }
 0xa6d   :  { %3595 = vmatprep.subr.bf16.mxu0 %v4361_v1 }
 0xa70   :  { %3596 = vmatpush3.bf16.msra.mxu0 %v4033_v39  ;;  %v4048_v39 = vld [vmem:[%s5412_s7 + $0x28] sm:$0xff]  }
 0xa71   :  { %3597 = vmatprep.subr.bf16.mxu0 %v4361_v1 }
 0xa74   :  { %3598 = vmatpush3.bf16.msra.mxu0 %v4034_v40 }
 0xa75   :  { %3623 = vmatprep.subr.bf16.mxu0 %v4361_v1 }
 0xa77   :  { %3600 = vmatmul.mubr.bf16.vlgmr.msra.gmra.mrb[20].mxu0 %v4362_v17 }
 0xa78   :  { %3639 = vmatprep.mubr.msk.bf16.mxu0 %vm4360_vm0, %v4361_v1 }
 0xb22   :  { %v667_v63 = vpop.f32.mrb[12].mxu0 }
 0xb23   :  { %v673_v3 = vadd.f32 %v667_v63, %v631_v62  ;;  %v3535_v4 = vpop.f32.mrb[13].mxu0 }
 0xb24   :  { %v670_v10 = vpop.f32.mrb[14].mxu0  ;;  %v4038_v4 = vld [vmem:[%s5412_s7 + $0x18] sm:$0xff]  }
 0xb25   :  { %v674_v20 = vmul.f32 0.5, %v673_v3  ;;  %4197 = vtanh.f32 %v673_v3  ;;  %v3536_v21 = vpop.f32.mrb[15].mxu0 }
 0xb26   :  { %v4042_v21 = vld [vmem:[%s5412_s7 + $0x38] sm:$0xff]  }
 0xb27   :  { %4199 = vtanh.f32 %v674_v20  ;;  %v4041_v20 = vld [vmem:[%s5412_s7 + $0x30] sm:$0xff]  }
 0xb2a   :  { %v3582_v9 = vpop.f32.mrb[16].mxu0 }
 0xb2b   :  { %v859_v11 = vpop.f32.mrb[17].mxu0 }
 0xb2f   :  { %v4198_v27 = vpop.eup %4197 }
 0xb30   :  { %681 = vrot.lane.b32.xlu0 %v4198_v27, %s4365_s18  ;;  %v4043_v27 = vld [vmem:[%s5412_s7] sm:$0xff]  }
 0xb31   :  { %v4200_v28 = vpop.eup %4199  ;;  %3624 = vmatpush3.bf16.msra.mxu0 %v4043_v27 }
 0xb32   :  { %v676_v32 = vmul.f32 0.5, %v4200_v28  ;;  %v4044_v28 = vld [vmem:[%s5412_s7 + $0x8] sm:$0xff]   ;;  %3625 = vmatprep.subr.bf16.mxu0 %v4361_v1 }
 0xb34   :  { %v677_v34 = vadd.f32 0.5, %v676_v32 }
 0xb35   :  { %3626 = vmatpush3.bf16.msra.mxu0 %v4044_v28 }
 0xb36   :  { %679 = vrot.lane.b32.xlu1 %v677_v34, %s4364_s4  ;;  %3627 = vmatprep.subr.bf16.mxu0 %v4361_v1 }
 0xb39   :  { %3628 = vmatpush3.bf16.msra.mxu0 %v4045_v33  ;;  %v4064_v33 = vld [vmem:[%s5412_s7 + $0x28] sm:$0xff]  }
 0xb3a   :  { %683 = vrot.lane.b32.xlu1 %v677_v34, %s4363_s2  ;;  %3629 = vmatprep.subr.bf16.mxu0 %v4361_v1 }
 0xb3d   :  { %3630 = vmatpush3.bf16.msra.mxu0 %v4046_v37  ;;  %v4065_v37 = vld [vmem:[%s5412_s7 + $0x30] sm:$0xff]  }
 0xb3e   :  { %3631 = vmatprep.subr.bf16.mxu0 %v4361_v1 }
 0xb41   :  { %3632 = vmatpush3.bf16.msra.mxu0 %v4047_v38  ;;  %v4066_v38 = vld [vmem:[%s5412_s7 + $0x38] sm:$0xff]  }
 0xb42   :  { %3633 = vmatprep.subr.bf16.mxu0 %v4361_v1 }
 0xb45   :  { %3634 = vmatpush3.bf16.msra.mxu0 %v4048_v39 }
 0xb46   :  { %3635 = vmatprep.subr.bf16.mxu0 %v4361_v1 }
 0xb4a   :  { %v969_v17 = vpop.f32.mrb[20].mxu0 }
 0xb4b   :  { %v3601_v12 = vpop.f32.mrb[21].mxu0 }
 0xb4c   :  { %v972_v49 = vpop.f32.mrb[22].mxu0 }
 0xb4d   :  { %v3602_v50 = vpop.f32.mrb[23].mxu0 }
 0xb4e   :  { %v4051_v50 = vld [vmem:[%s5412_s7] sm:$0xff]  }
 0xba2   :  { %v682_v41 = vpop.permute.xlu0 %681 }
 0xba3   :  { %v686_v43 = vmul.f32 %v682_v41, %v677_v34 }
 0xba8   :  { %v680_v42 = vpop.permute.xlu1 %679 }
 0xba9   :  { %v685_v44 = vmul.f32 %v680_v42, %v4678_v47  ;;  %v4036_v47 = vld [vmem:[%s5412_s7 + $0x8] sm:$0xff]  }
 0xbab   :  { %v687_v45 = vadd.f32 %v686_v43, %v685_v44  ;;  %v4049_v43 = vld [vmem:[%s5412_s7 + $0x30] sm:$0xff]   ;;  %v4050_v44 = vld [vmem:[%s5412_s7 + $0x38] sm:$0xff]  }
 0xbac   :  { %v684_v48 = vpop.permute.xlu1 %683  ;;  %3636 = vmatpush3.bf16.msra.mxu0 %v4049_v43 }
 0xbad   :  { %4201 = vtanh.f32 %v687_v45  ;;  %3637 = vmatprep.subr.bf16.mxu0 %v4361_v1 }
 0xbb0   :  { %3638 = vmatpush3.bf16.msra.mxu0 %v4050_v44 }
 0xbb1   :  { %3663 = vmatprep.subr.bf16.mxu0 %v4361_v1 }
 0xbb7   :  { %v4202_v46 = vpop.eup %4201 }
 0xbb8   :  { %v689_v7 = vmul.f32 %v4202_v46, %v684_v48 }
 0xbba   :  { %3570 = vmatmul.mubr.f32.vlgmr.msra.gmra.mrb[2].mxu1 %v689_v7 }
 0xbbb   :  { %3619 = vmatprep.mubr.msk.bf16.mxu1 %vm4360_vm0, %v4361_v1  ;;  %3604 = vmatpush3.bf16.msra.mxu1 %v4035_v51  ;;  %v4052_v51 = vld [vmem:[%s5412_s7 + $0x8] sm:$0xff]  }
 0xbbc   :  { %3605 = vmatprep.subr.bf16.mxu1 %v4361_v1 }
 0xbbf   :  { %3606 = vmatpush3.bf16.msra.mxu1 %v4036_v47 }
 0xbc0   :  { %3607 = vmatprep.subr.bf16.mxu1 %v4361_v1 }
 0xbc3   :  { %3608 = vmatpush3.bf16.msra.mxu1 %v4037_v2 }
 0xbc4   :  { %3609 = vmatprep.subr.bf16.mxu1 %v4361_v1 }
 0xbc7   :  { %3610 = vmatpush3.bf16.msra.mxu1 %v4038_v4  ;;  %v4057_v4 = vld [vmem:[%s5412_s7 + $0x30] sm:$0xff]  }
 0xbc8   :  { %3611 = vmatprep.subr.bf16.mxu1 %v4361_v1 }
 0xbcb   :  { %3612 = vmatpush3.bf16.msra.mxu1 %v4039_v5  ;;  %v4058_v5 = vld [vmem:[%s5412_s7 + $0x38] sm:$0xff]  }
 0xbcc   :  { %3613 = vmatprep.subr.bf16.mxu1 %v4361_v1 }
 0xbcf   :  { %3614 = vmatpush3.bf16.msra.mxu1 %v4040_v8 }
 0xbd0   :  { %3615 = vmatprep.subr.bf16.mxu1 %v4361_v1 }
 0xbd3   :  { %3616 = vmatpush3.bf16.msra.mxu1 %v4041_v20 }
 0xbd4   :  { %3617 = vmatprep.subr.bf16.mxu1 %v4361_v1 }
 0xbd7   :  { %3618 = vmatpush3.bf16.msra.mxu1 %v4042_v21 }
 0xbd8   :  { %3643 = vmatprep.subr.bf16.mxu1 %v4361_v1 }
 0xc8d   :  { %v773_v56 = vpop.f32.mrb[2].mxu1 }
 0xc8e   :  { %v774_v57 = vadd.f32 %v773_v56, %v706_v54  ;;  %v3571_v58 = vpop.f32.mrb[3].mxu1 }
 0xc90   :  { %v786_v59 = vrot.slane %v774_v57, %v785_v55  ;;  %v4053_v55 = vld [vmem:[%s5412_s7 + $0x10] sm:$0xff]  }
 0xc92   :  { %v860_v60 = vadd.f32 %v859_v11, %v786_v59  ;;  %v865_v61 = vadd.f32 %v3582_v9, %v786_v59  ;;  %v4054_v59 = vld [vmem:[%s5412_s7 + $0x18] sm:$0xff]  }
 0xc94   :  { %868 = vst [vmem:[#allocation3] sm:$0xff] %v860_v60  ;;  %869 = vst [vmem:[#allocation3 + $0x8] sm:$0xff] %v865_v61  ;;  %v4055_v60 = vld [vmem:[%s5412_s7 + $0x20] sm:$0xff]  }
 0xc9b   :  { %v870_v62 = vld [vmem:[#allocation3] sm:$0x1]  ;;  %v993_v29 = vld [vmem:[#allocation3 + $0x1] sm:$0x1]  ;;  %v1117_v47 = vld [vmem:[#allocation3 + $0x2] sm:$0x1] }
 0xc9c   :  { %v975_v63 = vadd.f32 %v969_v17, %v870_v62  ;;  %v4056_v62 = vld [vmem:[%s5412_s7 + $0x28] sm:$0xff]  }
 0xc9e   :  { %v976_v3 = vmul.f32 0.5, %v975_v63  ;;  %4203 = vtanh.f32 %v975_v63 }
 0xca0   :  { %4205 = vtanh.f32 %v976_v3 }
 0xca8   :  { %v4204_v6 = vpop.eup %4203 }
 0xca9   :  { %983 = vrot.lane.b32.xlu1 %v4204_v6, %s4365_s18 }
 0xcaa   :  { %v4206_v10 = vpop.eup %4205 }
 0xcab   :  { %v978_v18 = vmul.f32 0.5, %v4206_v10 }
 0xcad   :  { %v979_v19 = vadd.f32 0.5, %v978_v18 }
 0xcaf   :  { %981 = vrot.lane.b32.xlu0 %v979_v19, %s4364_s4 }
 0xcb3   :  { %985 = vrot.lane.b32.xlu0 %v979_v19, %s4363_s2 }
 0xd1b   :  { %v984_v13 = vpop.permute.xlu1 %983 }
 0xd1c   :  { %v988_v14 = vmul.f32 %v984_v13, %v979_v19 }
 0xd21   :  { %v982_v22 = vpop.permute.xlu0 %981 }
 0xd22   :  { %v987_v23 = vmul.f32 0.0, %v982_v22 }
 0xd24   :  { %v989_v24 = vadd.f32 %v988_v14, %v987_v23  ;;  %v4059_v14 = vld [vmem:[%s5412_s7] sm:$0xff]   ;;  %v4060_v23 = vld [vmem:[%s5412_s7 + $0x8] sm:$0xff]  }
 0xd25   :  { %v986_v16 = vpop.permute.xlu0 %985 }
 0xd26   :  { %4207 = vtanh.f32 %v989_v24 }
 0xd30   :  { %v4208_v15 = vpop.eup %4207 }
 0xd31   :  { %v991_v25 = vmul.f32 %v4208_v15, %v986_v16 }
 0xd33   :  { %992 = vst [vmem:[#allocation4] sm:$0x1] %v991_v25  ;;  %v994_v26 = vpack.c.bf16 %v991_v25, %v991_v25 }
 0xd35   :  { %3620 = vmatmul.mubr.bf16.vlgmr.msra.gmra.mrb[20].mxu1 %v994_v26  ;;  %v4061_v26 = vld [vmem:[%s5412_s7 + $0x10] sm:$0xff]  }
 0xd36   :  { %3659 = vmatprep.mubr.msk.bf16.mxu1 %vm4360_vm0, %v4361_v1  ;;  %3644 = vmatpush3.bf16.msra.mxu1 %v4051_v50 }
 0xd37   :  { %3645 = vmatprep.subr.bf16.mxu1 %v4361_v1 }
 0xd3a   :  { %3646 = vmatpush3.bf16.msra.mxu1 %v4052_v51 }
 0xd3b   :  { %3647 = vmatprep.subr.bf16.mxu1 %v4361_v1 }
 0xd3e   :  { %3648 = vmatpush3.bf16.msra.mxu1 %v4053_v55  ;;  %v4072_v55 = vld [vmem:[%s5412_s7 + $0x28] sm:$0xff]  }
 0xd3f   :  { %3649 = vmatprep.subr.bf16.mxu1 %v4361_v1 }
 0xd42   :  { %3650 = vmatpush3.bf16.msra.mxu1 %v4054_v59  ;;  %v4073_v59 = vld [vmem:[%s5412_s7 + $0x30] sm:$0xff]  }
 0xd43   :  { %3651 = vmatprep.subr.bf16.mxu1 %v4361_v1 }
 0xd46   :  { %3652 = vmatpush3.bf16.msra.mxu1 %v4055_v60  ;;  %v4074_v60 = vld [vmem:[%s5412_s7 + $0x38] sm:$0xff]  }
 0xd47   :  { %3653 = vmatprep.subr.bf16.mxu1 %v4361_v1 }
 0xd4a   :  { %3654 = vmatpush3.bf16.msra.mxu1 %v4056_v62 }
 0xd4b   :  { %3655 = vmatprep.subr.bf16.mxu1 %v4361_v1 }
 0xd4e   :  { %3656 = vmatpush3.bf16.msra.mxu1 %v4057_v4 }
 0xd4f   :  { %3657 = vmatprep.subr.bf16.mxu1 %v4361_v1 }
 0xd52   :  { %3658 = vmatpush3.bf16.msra.mxu1 %v4058_v5 }
 0xd53   :  { %3683 = vmatprep.subr.bf16.mxu1 %v4361_v1 }
 0xe08   :  { %v1093_v30 = vpop.f32.mrb[20].mxu1 }
 0xe09   :  { %v1099_v31 = vadd.f32 %v1093_v30, %v993_v29  ;;  %v3621_v32 = vpop.f32.mrb[21].mxu1  ;;  %v4062_v30 = vld [vmem:[%s5412_s7 + $0x18] sm:$0xff]  }
 0xe0a   :  { %v1096_v34 = vpop.f32.mrb[22].mxu1 }
 0xe0b   :  { %v1100_v35 = vmul.f32 0.5, %v1099_v31  ;;  %4209 = vtanh.f32 %v1099_v31  ;;  %v3622_v36 = vpop.f32.mrb[23].mxu1  ;;  %v4063_v31 = vld [vmem:[%s5412_s7 + $0x20] sm:$0xff]  }
 0xe0d   :  { %4211 = vtanh.f32 %v1100_v35 }
 0xe15   :  { %v4210_v0 = vpop.eup %4209 }
 0xe16   :  { %1107 = vrot.lane.b32.xlu0 %v4210_v0, %s4365_s18 }
 0xe17   :  { %v4212_v40 = vpop.eup %4211 }
 0xe18   :  { %v1102_v41 = vmul.f32 0.5, %v4212_v40 }
 0xe1a   :  { %v1103_v42 = vadd.f32 0.5, %v1102_v41 }
 0xe1c   :  { %1105 = vrot.lane.b32.xlu1 %v1103_v42, %s4364_s4 }
 0xe20   :  { %1109 = vrot.lane.b32.xlu1 %v1103_v42, %s4363_s2 }
 0xe88   :  { %v1108_v45 = vpop.permute.xlu0 %1107 }
 0xe89   :  { %v1112_v48 = vmul.f32 %v1108_v45, %v1103_v42 }
 0xe8e   :  { %v1106_v46 = vpop.permute.xlu1 %1105 }
 0xe8f   :  { %v1111_v7 = vmul.f32 %v1106_v46, %v989_v24  ;;  %v1241_v24 = vld [vmem:[#allocation3 + $0x3] sm:$0x1] }
 0xe91   :  { %v1113_v9 = vadd.f32 %v1112_v48, %v1111_v7  ;;  %v4067_v48 = vld [vmem:[%s5412_s7] sm:$0xff]   ;;  %v4068_v7 = vld [vmem:[%s5412_s7 + $0x8] sm:$0xff]  }
 0xe92   :  { %v1110_v17 = vpop.permute.xlu1 %1109 }
 0xe93   :  { %4213 = vtanh.f32 %v1113_v9 }
 0xe9d   :  { %v4214_v11 = vpop.eup %4213 }
 0xe9e   :  { %v1115_v12 = vmul.f32 %v4214_v11, %v1110_v17 }
 0xea0   :  { %1116 = vst [vmem:[#allocation4 + $0x1] sm:$0x1] %v1115_v12  ;;  %v1118_v49 = vpack.c.bf16 %v1115_v12, %v1115_v12 }
 0xea2   :  { %3640 = vmatmul.mubr.bf16.vlgmr.msra.gmra.mrb[24].mxu0 %v1118_v49  ;;  %v4069_v49 = vld [vmem:[%s5412_s7 + $0x10] sm:$0xff]  }
 0xea3   :  { %3679 = vmatprep.mubr.msk.bf16.mxu0 %vm4360_vm0, %v4361_v1  ;;  %3664 = vmatpush3.bf16.msra.mxu0 %v4059_v14 }
 0xea4   :  { %3665 = vmatprep.subr.bf16.mxu0 %v4361_v1 }
 0xea7   :  { %3666 = vmatpush3.bf16.msra.mxu0 %v4060_v23 }
 0xea8   :  { %3667 = vmatprep.subr.bf16.mxu0 %v4361_v1 }
 0xeab   :  { %3668 = vmatpush3.bf16.msra.mxu0 %v4061_v26 }
 0xeac   :  { %3669 = vmatprep.subr.bf16.mxu0 %v4361_v1 }
 0xeaf   :  { %3670 = vmatpush3.bf16.msra.mxu0 %v4062_v30  ;;  %v4081_v30 = vld [vmem:[%s5412_s7 + $0x30] sm:$0xff]  }
 0xeb0   :  { %3671 = vmatprep.subr.bf16.mxu0 %v4361_v1 }
 0xeb3   :  { %3672 = vmatpush3.bf16.msra.mxu0 %v4063_v31  ;;  %v4082_v31 = vld [vmem:[%s5412_s7 + $0x38] sm:$0xff]  }
 0xeb4   :  { %3673 = vmatprep.subr.bf16.mxu0 %v4361_v1 }
 0xeb7   :  { %3674 = vmatpush3.bf16.msra.mxu0 %v4064_v33 }
 0xeb8   :  { %3675 = vmatprep.subr.bf16.mxu0 %v4361_v1 }
 0xebb   :  { %3676 = vmatpush3.bf16.msra.mxu0 %v4065_v37 }
 0xebc   :  { %3677 = vmatprep.subr.bf16.mxu0 %v4361_v1 }
 0xebf   :  { %3678 = vmatpush3.bf16.msra.mxu0 %v4066_v38 }
 0xec0   :  { %3703 = vmatprep.subr.bf16.mxu0 %v4361_v1 }
 0xf75   :  { %v1217_v52 = vpop.f32.mrb[24].mxu0 }
 0xf76   :  { %v1223_v53 = vadd.f32 %v1217_v52, %v1117_v47  ;;  %v3641_v54 = vpop.f32.mrb[25].mxu0  ;;  %v4070_v52 = vld [vmem:[%s5412_s7 + $0x18] sm:$0xff]  }
 0xf77   :  { %v1220_v56 = vpop.f32.mrb[26].mxu0 }
 0xf78   :  { %v1224_v57 = vmul.f32 0.5, %v1223_v53  ;;  %4215 = vtanh.f32 %v1223_v53  ;;  %v3642_v58 = vpop.f32.mrb[27].mxu0  ;;  %v4071_v53 = vld [vmem:[%s5412_s7 + $0x20] sm:$0xff]  }
 0xf7a   :  { %4217 = vtanh.f32 %v1224_v57 }
 0xf82   :  { %v4216_v61 = vpop.eup %4215 }
 0xf83   :  { %1231 = vrot.lane.b32.xlu1 %v4216_v61, %s4365_s18 }
 0xf84   :  { %v4218_v63 = vpop.eup %4217 }
 0xf85   :  { %v1226_v2 = vmul.f32 0.5, %v4218_v63 }
 0xf87   :  { %v1227_v3 = vadd.f32 0.5, %v1226_v2 }
 0xf89   :  { %1229 = vrot.lane.b32.xlu0 %v1227_v3, %s4364_s4 }
 0xf8d   :  { %1233 = vrot.lane.b32.xlu0 %v1227_v3, %s4363_s2 }
 0xff5   :  { %v1232_v6 = vpop.permute.xlu1 %1231 }
 0xff6   :  { %v1236_v10 = vmul.f32 %v1232_v6, %v1227_v3 }
 0xffb   :  { %v1230_v8 = vpop.permute.xlu0 %1229 }
 0xffc   :  { %v1235_v18 = vmul.f32 %v1230_v8, %v1113_v9  ;;  %v1365_v9 = vld [vmem:[#allocation3 + $0x4] sm:$0x1] }
 0xffe   :  { %v1237_v19 = vadd.f32 %v1236_v10, %v1235_v18  ;;  %v4075_v10 = vld [vmem:[%s5412_s7] sm:$0xff]   ;;  %v4076_v18 = vld [vmem:[%s5412_s7 + $0x8] sm:$0xff]  }
 0xfff   :  { %v1234_v21 = vpop.permute.xlu0 %1233 }
0x1000   :  { %4219 = vtanh.f32 %v1237_v19 }
0x100a   :  { %v4220_v20 = vpop.eup %4219 }
0x100b   :  { %v1239_v13 = vmul.f32 %v4220_v20, %v1234_v21 }
0x100d   :  { %1240 = vst [vmem:[#allocation4 + $0x2] sm:$0x1] %v1239_v13  ;;  %v1242_v22 = vpack.c.bf16 %v1239_v13, %v1239_v13 }
0x100f   :  { %3660 = vmatmul.mubr.bf16.vlgmr.msra.gmra.mrb[24].mxu1 %v1242_v22  ;;  %v4077_v22 = vld [vmem:[%s5412_s7 + $0x10] sm:$0xff]  }
0x1010   :  { %3699 = vmatprep.mubr.msk.bf16.mxu1 %vm4360_vm0, %v4361_v1  ;;  %3684 = vmatpush3.bf16.msra.mxu1 %v4067_v48 }
0x1011   :  { %3685 = vmatprep.subr.bf16.mxu1 %v4361_v1 }
0x1014   :  { %3686 = vmatpush3.bf16.msra.mxu1 %v4068_v7 }
0x1015   :  { %3687 = vmatprep.subr.bf16.mxu1 %v4361_v1 }
0x1018   :  { %3688 = vmatpush3.bf16.msra.mxu1 %v4069_v49 }
0x1019   :  { %3689 = vmatprep.subr.bf16.mxu1 %v4361_v1 }
0x101c   :  { %3690 = vmatpush3.bf16.msra.mxu1 %v4070_v52  ;;  %v4089_v52 = vld [vmem:[%s5412_s7 + $0x30] sm:$0xff]  }
0x101d   :  { %3691 = vmatprep.subr.bf16.mxu1 %v4361_v1 }
0x1020   :  { %3692 = vmatpush3.bf16.msra.mxu1 %v4071_v53  ;;  %v4090_v53 = vld [vmem:[%s5412_s7 + $0x38] sm:$0xff]  }
0x1021   :  { %3693 = vmatprep.subr.bf16.mxu1 %v4361_v1 }
0x1024   :  { %3694 = vmatpush3.bf16.msra.mxu1 %v4072_v55 }
0x1025   :  { %3695 = vmatprep.subr.bf16.mxu1 %v4361_v1 }
0x1028   :  { %3696 = vmatpush3.bf16.msra.mxu1 %v4073_v59 }
0x1029   :  { %3697 = vmatprep.subr.bf16.mxu1 %v4361_v1 }
0x102c   :  { %3698 = vmatpush3.bf16.msra.mxu1 %v4074_v60 }
0x102d   :  { %3723 = vmatprep.subr.bf16.mxu1 %v4361_v1 }
0x10e2   :  { %v1341_v15 = vpop.f32.mrb[24].mxu1 }
0x10e3   :  { %v1347_v16 = vadd.f32 %v1341_v15, %v1241_v24  ;;  %v3661_v25 = vpop.f32.mrb[25].mxu1  ;;  %v4078_v15 = vld [vmem:[%s5412_s7 + $0x18] sm:$0xff]  }
0x10e4   :  { %v1344_v27 = vpop.f32.mrb[26].mxu1 }
0x10e5   :  { %v1348_v28 = vmul.f32 0.5, %v1347_v16  ;;  %4221 = vtanh.f32 %v1347_v16  ;;  %v3662_v29 = vpop.f32.mrb[27].mxu1  ;;  %v4079_v16 = vld [vmem:[%s5412_s7 + $0x20] sm:$0xff]   ;;  %v4080_v27 = vld [vmem:[%s5412_s7 + $0x28] sm:$0xff]  }
0x10e7   :  { %4223 = vtanh.f32 %v1348_v28 }
0x10ef   :  { %v4222_v32 = vpop.eup %4221 }
0x10f0   :  { %1355 = vrot.lane.b32.xlu0 %v4222_v32, %s4365_s18 }
0x10f1   :  { %v4224_v34 = vpop.eup %4223 }
0x10f2   :  { %v1350_v35 = vmul.f32 0.5, %v4224_v34 }
0x10f4   :  { %v1351_v36 = vadd.f32 0.5, %v1350_v35 }
0x10f6   :  { %1353 = vrot.lane.b32.xlu1 %v1351_v36, %s4364_s4 }
0x10fa   :  { %1357 = vrot.lane.b32.xlu1 %v1351_v36, %s4363_s2 }
0x1162   :  { %v1356_v0 = vpop.permute.xlu0 %1355 }
0x1163   :  { %v1360_v40 = vmul.f32 %v1356_v0, %v1351_v36 }
0x1168   :  { %v1354_v39 = vpop.permute.xlu1 %1353 }
0x1169   :  { %v1359_v41 = vmul.f32 %v1354_v39, %v1237_v19  ;;  %v1489_v19 = vld [vmem:[#allocation3 + $0x5] sm:$0x1] }
0x116b   :  { %v1361_v42 = vadd.f32 %v1360_v40, %v1359_v41  ;;  %v4083_v40 = vld [vmem:[%s5412_s7] sm:$0xff]   ;;  %v4084_v41 = vld [vmem:[%s5412_s7 + $0x8] sm:$0xff]  }
0x116c   :  { %v1358_v44 = vpop.permute.xlu1 %1357 }
0x116d   :  { %4225 = vtanh.f32 %v1361_v42 }
0x1177   :  { %v4226_v43 = vpop.eup %4225 }
0x1178   :  { %v1363_v45 = vmul.f32 %v4226_v43, %v1358_v44 }
0x117a   :  { %1364 = vst [vmem:[#allocation4 + $0x3] sm:$0x1] %v1363_v45  ;;  %v1366_v46 = vpack.c.bf16 %v1363_v45, %v1363_v45 }
0x117c   :  { %3680 = vmatmul.mubr.bf16.vlgmr.msra.gmra.mrb[28].mxu0 %v1366_v46  ;;  %v4085_v46 = vld [vmem:[%s5412_s7 + $0x10] sm:$0xff]  }
0x117d   :  { %3719 = vmatprep.mubr.msk.bf16.mxu0 %vm4360_vm0, %v4361_v1  ;;  %3704 = vmatpush3.bf16.msra.mxu0 %v4075_v10 }
0x117e   :  { %3705 = vmatprep.subr.bf16.mxu0 %v4361_v1 }
0x1181   :  { %3706 = vmatpush3.bf16.msra.mxu0 %v4076_v18 }
0x1182   :  { %3707 = vmatprep.subr.bf16.mxu0 %v4361_v1 }
0x1185   :  { %3708 = vmatpush3.bf16.msra.mxu0 %v4077_v22 }
0x1186   :  { %3709 = vmatprep.subr.bf16.mxu0 %v4361_v1 }
0x1189   :  { %3710 = vmatpush3.bf16.msra.mxu0 %v4078_v15  ;;  %v4097_v15 = vld [vmem:[%s5412_s7 + $0x30] sm:$0xff]  }
0x118a   :  { %3711 = vmatprep.subr.bf16.mxu0 %v4361_v1 }
0x118d   :  { %3712 = vmatpush3.bf16.msra.mxu0 %v4079_v16  ;;  %v4098_v16 = vld [vmem:[%s5412_s7 + $0x38] sm:$0xff]  }
0x118e   :  { %3713 = vmatprep.subr.bf16.mxu0 %v4361_v1 }
0x1191   :  { %3714 = vmatpush3.bf16.msra.mxu0 %v4080_v27 }
0x1192   :  { %3715 = vmatprep.subr.bf16.mxu0 %v4361_v1 }
0x1195   :  { %3716 = vmatpush3.bf16.msra.mxu0 %v4081_v30 }
0x1196   :  { %3717 = vmatprep.subr.bf16.mxu0 %v4361_v1 }
0x1199   :  { %3718 = vmatpush3.bf16.msra.mxu0 %v4082_v31 }
0x119a   :  { %3743 = vmatprep.subr.bf16.mxu0 %v4361_v1 }
0x124f   :  { %v1465_v11 = vpop.f32.mrb[28].mxu0 }
0x1250   :  { %v1471_v17 = vadd.f32 %v1465_v11, %v1365_v9  ;;  %v3681_v12 = vpop.f32.mrb[29].mxu0  ;;  %v4086_v11 = vld [vmem:[%s5412_s7 + $0x18] sm:$0xff]  }
0x1251   :  { %v1468_v50 = vpop.f32.mrb[30].mxu0 }
0x1252   :  { %v1472_v51 = vmul.f32 0.5, %v1471_v17  ;;  %4227 = vtanh.f32 %v1471_v17  ;;  %v3682_v47 = vpop.f32.mrb[31].mxu0  ;;  %v4087_v17 = vld [vmem:[%s5412_s7 + $0x20] sm:$0xff]   ;;  %v4088_v50 = vld [vmem:[%s5412_s7 + $0x28] sm:$0xff]  }
0x1254   :  { %4229 = vtanh.f32 %v1472_v51 }
0x125c   :  { %v4228_v54 = vpop.eup %4227 }
0x125d   :  { %1479 = vrot.lane.b32.xlu1 %v4228_v54, %s4365_s18 }
0x125e   :  { %v4230_v56 = vpop.eup %4229 }
0x125f   :  { %v1474_v57 = vmul.f32 0.5, %v4230_v56 }
0x1261   :  { %v1475_v58 = vadd.f32 0.5, %v1474_v57 }
0x1263   :  { %1477 = vrot.lane.b32.xlu0 %v1475_v58, %s4364_s4 }
0x1267   :  { %1481 = vrot.lane.b32.xlu0 %v1475_v58, %s4363_s2 }
0x12cf   :  { %v1480_v61 = vpop.permute.xlu1 %1479 }
0x12d0   :  { %v1484_v63 = vmul.f32 %v1480_v61, %v1475_v58 }
0x12d5   :  { %v1478_v62 = vpop.permute.xlu0 %1477 }
0x12d6   :  { %v1483_v2 = vmul.f32 %v1478_v62, %v1361_v42  ;;  %v1613_v42 = vld [vmem:[#allocation3 + $0x6] sm:$0x1] }
0x12d8   :  { %v1485_v3 = vadd.f32 %v1484_v63, %v1483_v2  ;;  %v4091_v63 = vld [vmem:[%s5412_s7] sm:$0xff]   ;;  %v4092_v2 = vld [vmem:[%s5412_s7 + $0x8] sm:$0xff]  }
0x12d9   :  { %v1482_v5 = vpop.permute.xlu0 %1481 }
0x12da   :  { %4231 = vtanh.f32 %v1485_v3 }
0x12e4   :  { %v4232_v4 = vpop.eup %4231 }
0x12e5   :  { %v1487_v6 = vmul.f32 %v4232_v4, %v1482_v5 }
0x12e7   :  { %1488 = vst [vmem:[#allocation4 + $0x4] sm:$0x1] %v1487_v6  ;;  %v1490_v8 = vpack.c.bf16 %v1487_v6, %v1487_v6 }
0x12e9   :  { %3700 = vmatmul.mubr.bf16.vlgmr.msra.gmra.mrb[28].mxu1 %v1490_v8  ;;  %v4093_v8 = vld [vmem:[%s5412_s7 + $0x10] sm:$0xff]  }
0x12ea   :  { %3739 = vmatprep.mubr.msk.bf16.mxu1 %vm4360_vm0, %v4361_v1  ;;  %3724 = vmatpush3.bf16.msra.mxu1 %v4083_v40 }
0x12eb   :  { %3725 = vmatprep.subr.bf16.mxu1 %v4361_v1 }
0x12ee   :  { %3726 = vmatpush3.bf16.msra.mxu1 %v4084_v41 }
0x12ef   :  { %3727 = vmatprep.subr.bf16.mxu1 %v4361_v1 }
0x12f2   :  { %3728 = vmatpush3.bf16.msra.mxu1 %v4085_v46 }
0x12f3   :  { %3729 = vmatprep.subr.bf16.mxu1 %v4361_v1 }
0x12f6   :  { %3730 = vmatpush3.bf16.msra.mxu1 %v4086_v11  ;;  %v4105_v11 = vld [vmem:[%s5412_s7 + $0x30] sm:$0xff]  }
0x12f7   :  { %3731 = vmatprep.subr.bf16.mxu1 %v4361_v1 }
0x12fa   :  { %3732 = vmatpush3.bf16.msra.mxu1 %v4087_v17  ;;  %v4106_v17 = vld [vmem:[%s5412_s7 + $0x38] sm:$0xff]  }
0x12fb   :  { %3733 = vmatprep.subr.bf16.mxu1 %v4361_v1 }
0x12fe   :  { %3734 = vmatpush3.bf16.msra.mxu1 %v4088_v50 }
0x12ff   :  { %3735 = vmatprep.subr.bf16.mxu1 %v4361_v1 }
0x1302   :  { %3736 = vmatpush3.bf16.msra.mxu1 %v4089_v52 }
0x1303   :  { %3737 = vmatprep.subr.bf16.mxu1 %v4361_v1 }
0x1306   :  { %3738 = vmatpush3.bf16.msra.mxu1 %v4090_v53 }
0x1307   :  { %3763 = vmatprep.subr.bf16.mxu1 %v4361_v1 }
0x13bc   :  { %v1589_v20 = vpop.f32.mrb[28].mxu1 }
0x13bd   :  { %v1595_v21 = vadd.f32 %v1589_v20, %v1489_v19  ;;  %v3701_v13 = vpop.f32.mrb[29].mxu1  ;;  %v4094_v20 = vld [vmem:[%s5412_s7 + $0x18] sm:$0xff]  }
0x13be   :  { %v1592_v14 = vpop.f32.mrb[30].mxu1 }
0x13bf   :  { %v1596_v23 = vmul.f32 0.5, %v1595_v21  ;;  %4233 = vtanh.f32 %v1595_v21  ;;  %v3702_v24 = vpop.f32.mrb[31].mxu1  ;;  %v4095_v21 = vld [vmem:[%s5412_s7 + $0x20] sm:$0xff]   ;;  %v4096_v14 = vld [vmem:[%s5412_s7 + $0x28] sm:$0xff]  }
0x13c1   :  { %4235 = vtanh.f32 %v1596_v23 }
0x13c9   :  { %v4234_v25 = vpop.eup %4233 }
0x13ca   :  { %1603 = vrot.lane.b32.xlu0 %v4234_v25, %s4365_s18 }
0x13cb   :  { %v4236_v26 = vpop.eup %4235 }
0x13cc   :  { %v1598_v28 = vmul.f32 0.5, %v4236_v26 }
0x13ce   :  { %v1599_v29 = vadd.f32 0.5, %v1598_v28 }
0x13d0   :  { %1601 = vrot.lane.b32.xlu1 %v1599_v29, %s4364_s4 }
0x13d4   :  { %1605 = vrot.lane.b32.xlu1 %v1599_v29, %s4363_s2 }
0x143c   :  { %v1604_v32 = vpop.permute.xlu0 %1603 }
0x143d   :  { %v1608_v34 = vmul.f32 %v1604_v32, %v1599_v29 }
0x1442   :  { %v1602_v33 = vpop.permute.xlu1 %1601 }
0x1443   :  { %v1607_v35 = vmul.f32 %v1602_v33, %v1485_v3  ;;  %v1737_v3 = vld [vmem:[#allocation3 + $0x7] sm:$0x1] }
0x1445   :  { %v1609_v36 = vadd.f32 %v1608_v34, %v1607_v35  ;;  %v4099_v34 = vld [vmem:[%s5412_s7] sm:$0xff]   ;;  %v4100_v35 = vld [vmem:[%s5412_s7 + $0x8] sm:$0xff]  }
0x1446   :  { %v1606_v38 = vpop.permute.xlu1 %1605 }
0x1447   :  { %4237 = vtanh.f32 %v1609_v36 }
0x1451   :  { %v4238_v37 = vpop.eup %4237 }
0x1452   :  { %v1611_v0 = vmul.f32 %v4238_v37, %v1606_v38 }
0x1454   :  { %1612 = vst [vmem:[#allocation4 + $0x5] sm:$0x1] %v1611_v0  ;;  %v1614_v39 = vpack.c.bf16 %v1611_v0, %v1611_v0 }
0x1456   :  { %3720 = vmatmul.mubr.bf16.vlgmr.msra.gmra.mrb[32].mxu0 %v1614_v39  ;;  %v4101_v39 = vld [vmem:[%s5412_s7 + $0x10] sm:$0xff]  }
0x1457   :  { %3759 = vmatprep.mubr.msk.bf16.mxu0 %vm4360_vm0, %v4361_v1  ;;  %3744 = vmatpush3.bf16.msra.mxu0 %v4091_v63 }
0x1458   :  { %3745 = vmatprep.subr.bf16.mxu0 %v4361_v1 }
0x145b   :  { %3746 = vmatpush3.bf16.msra.mxu0 %v4092_v2 }
0x145c   :  { %3747 = vmatprep.subr.bf16.mxu0 %v4361_v1 }
0x145f   :  { %3748 = vmatpush3.bf16.msra.mxu0 %v4093_v8 }
0x1460   :  { %3749 = vmatprep.subr.bf16.mxu0 %v4361_v1 }
0x1463   :  { %3750 = vmatpush3.bf16.msra.mxu0 %v4094_v20  ;;  %v4113_v20 = vld [vmem:[%s5412_s7 + $0x30] sm:$0xff]  }
0x1464   :  { %3751 = vmatprep.subr.bf16.mxu0 %v4361_v1 }
0x1467   :  { %3752 = vmatpush3.bf16.msra.mxu0 %v4095_v21  ;;  %v4114_v21 = vld [vmem:[%s5412_s7 + $0x38] sm:$0xff]  }
0x1468   :  { %3753 = vmatprep.subr.bf16.mxu0 %v4361_v1 }
0x146b   :  { %3754 = vmatpush3.bf16.msra.mxu0 %v4096_v14 }
0x146c   :  { %3755 = vmatprep.subr.bf16.mxu0 %v4361_v1 }
0x146f   :  { %3756 = vmatpush3.bf16.msra.mxu0 %v4097_v15 }
0x1470   :  { %3757 = vmatprep.subr.bf16.mxu0 %v4361_v1 }
0x1473   :  { %3758 = vmatpush3.bf16.msra.mxu0 %v4098_v16 }
0x1474   :  { %3783 = vmatprep.subr.bf16.mxu0 %v4361_v1 }
0x1529   :  { %v1713_v43 = vpop.f32.mrb[32].mxu0 }
0x152a   :  { %v1719_v44 = vadd.f32 %v1713_v43, %v1613_v42  ;;  %v3721_v45 = vpop.f32.mrb[33].mxu0  ;;  %v4102_v43 = vld [vmem:[%s5412_s7 + $0x18] sm:$0xff]  }
0x152b   :  { %v1716_v48 = vpop.f32.mrb[34].mxu0 }
0x152c   :  { %v1720_v7 = vmul.f32 0.5, %v1719_v44  ;;  %4239 = vtanh.f32 %v1719_v44  ;;  %v3722_v9 = vpop.f32.mrb[35].mxu0  ;;  %v4103_v44 = vld [vmem:[%s5412_s7 + $0x20] sm:$0xff]  }
0x152e   :  { %4241 = vtanh.f32 %v1720_v7  ;;  %v4104_v7 = vld [vmem:[%s5412_s7 + $0x28] sm:$0xff]  }
0x1536   :  { %v4240_v12 = vpop.eup %4239 }
0x1537   :  { %1727 = vrot.lane.b32.xlu1 %v4240_v12, %s4365_s18 }
0x1538   :  { %v4242_v49 = vpop.eup %4241 }
0x1539   :  { %v1722_v51 = vmul.f32 0.5, %v4242_v49 }
0x153b   :  { %v1723_v47 = vadd.f32 0.5, %v1722_v51 }
0x153d   :  { %1725 = vrot.lane.b32.xlu0 %v1723_v47, %s4364_s4 }
0x1541   :  { %1729 = vrot.lane.b32.xlu0 %v1723_v47, %s4363_s2 }
0x15a9   :  { %v1728_v54 = vpop.permute.xlu1 %1727 }
0x15aa   :  { %v1732_v56 = vmul.f32 %v1728_v54, %v1723_v47 }
0x15af   :  { %v1726_v55 = vpop.permute.xlu0 %1725 }
0x15b0   :  { %v1731_v57 = vmul.f32 %v1726_v55, %v1609_v36  ;;  %v1861_v36 = vld [vmem:[#allocation3 + $0x8] sm:$0x1] }
0x15b2   :  { %v1733_v58 = vadd.f32 %v1732_v56, %v1731_v57  ;;  %v4107_v56 = vld [vmem:[%s5412_s7] sm:$0xff]   ;;  %v4108_v57 = vld [vmem:[%s5412_s7 + $0x8] sm:$0xff]  }
0x15b3   :  { %v1730_v60 = vpop.permute.xlu0 %1729 }
0x15b4   :  { %4243 = vtanh.f32 %v1733_v58 }
0x15be   :  { %v4244_v59 = vpop.eup %4243 }
0x15bf   :  { %v1735_v61 = vmul.f32 %v4244_v59, %v1730_v60 }
0x15c1   :  { %1736 = vst [vmem:[#allocation4 + $0x6] sm:$0x1] %v1735_v61  ;;  %v1738_v62 = vpack.c.bf16 %v1735_v61, %v1735_v61 }
0x15c3   :  { %3740 = vmatmul.mubr.bf16.vlgmr.msra.gmra.mrb[32].mxu1 %v1738_v62  ;;  %v4109_v62 = vld [vmem:[%s5412_s7 + $0x10] sm:$0xff]  }
0x15c4   :  { %3779 = vmatprep.mubr.msk.bf16.mxu1 %vm4360_vm0, %v4361_v1  ;;  %3764 = vmatpush3.bf16.msra.mxu1 %v4099_v34 }
0x15c5   :  { %3765 = vmatprep.subr.bf16.mxu1 %v4361_v1 }
0x15c8   :  { %3766 = vmatpush3.bf16.msra.mxu1 %v4100_v35 }
0x15c9   :  { %3767 = vmatprep.subr.bf16.mxu1 %v4361_v1 }
0x15cc   :  { %3768 = vmatpush3.bf16.msra.mxu1 %v4101_v39 }
0x15cd   :  { %3769 = vmatprep.subr.bf16.mxu1 %v4361_v1 }
0x15d0   :  { %3770 = vmatpush3.bf16.msra.mxu1 %v4102_v43  ;;  %v4121_v43 = vld [vmem:[%s5412_s7 + $0x30] sm:$0xff]  }
0x15d1   :  { %3771 = vmatprep.subr.bf16.mxu1 %v4361_v1 }
0x15d4   :  { %3772 = vmatpush3.bf16.msra.mxu1 %v4103_v44  ;;  %v4122_v44 = vld [vmem:[%s5412_s7 + $0x38] sm:$0xff]  }
0x15d5   :  { %3773 = vmatprep.subr.bf16.mxu1 %v4361_v1 }
0x15d8   :  { %3774 = vmatpush3.bf16.msra.mxu1 %v4104_v7 }
0x15d9   :  { %3775 = vmatprep.subr.bf16.mxu1 %v4361_v1 }
0x15dc   :  { %3776 = vmatpush3.bf16.msra.mxu1 %v4105_v11 }
0x15dd   :  { %3777 = vmatprep.subr.bf16.mxu1 %v4361_v1 }
0x15e0   :  { %3778 = vmatpush3.bf16.msra.mxu1 %v4106_v17 }
0x15e1   :  { %3803 = vmatprep.subr.bf16.mxu1 %v4361_v1 }
0x1696   :  { %v1837_v4 = vpop.f32.mrb[32].mxu1 }
0x1697   :  { %v1843_v5 = vadd.f32 %v1837_v4, %v1737_v3  ;;  %v3741_v6 = vpop.f32.mrb[33].mxu1  ;;  %v4110_v4 = vld [vmem:[%s5412_s7 + $0x18] sm:$0xff]  }
0x1698   :  { %v1840_v10 = vpop.f32.mrb[34].mxu1 }
0x1699   :  { %v1844_v18 = vmul.f32 0.5, %v1843_v5  ;;  %4245 = vtanh.f32 %v1843_v5  ;;  %v3742_v19 = vpop.f32.mrb[35].mxu1  ;;  %v4111_v5 = vld [vmem:[%s5412_s7 + $0x20] sm:$0xff]  }
0x169b   :  { %4247 = vtanh.f32 %v1844_v18  ;;  %v4112_v18 = vld [vmem:[%s5412_s7 + $0x28] sm:$0xff]  }
0x16a3   :  { %v4246_v13 = vpop.eup %4245 }
0x16a4   :  { %1851 = vrot.lane.b32.xlu0 %v4246_v13, %s4365_s18 }
0x16a5   :  { %v4248_v22 = vpop.eup %4247 }
0x16a6   :  { %v1846_v23 = vmul.f32 0.5, %v4248_v22 }
0x16a8   :  { %v1847_v24 = vadd.f32 0.5, %v1846_v23 }
0x16aa   :  { %1849 = vrot.lane.b32.xlu1 %v1847_v24, %s4364_s4 }
0x16ae   :  { %1853 = vrot.lane.b32.xlu1 %v1847_v24, %s4363_s2 }
0x1716   :  { %v1852_v25 = vpop.permute.xlu0 %1851 }
0x1717   :  { %v1856_v27 = vmul.f32 %v1852_v25, %v1847_v24 }
0x171c   :  { %v1850_v26 = vpop.permute.xlu1 %1849 }
0x171d   :  { %v1855_v28 = vmul.f32 %v1850_v26, %v1733_v58  ;;  %v1985_v58 = vld [vmem:[#allocation3 + $0x9] sm:$0x1] }
0x171f   :  { %v1857_v29 = vadd.f32 %v1856_v27, %v1855_v28  ;;  %v4115_v27 = vld [vmem:[%s5412_s7] sm:$0xff]   ;;  %v4116_v28 = vld [vmem:[%s5412_s7 + $0x8] sm:$0xff]  }
0x1720   :  { %v1854_v31 = vpop.permute.xlu1 %1853 }
0x1721   :  { %4249 = vtanh.f32 %v1857_v29 }
0x172b   :  { %v4250_v30 = vpop.eup %4249 }
0x172c   :  { %v1859_v32 = vmul.f32 %v4250_v30, %v1854_v31 }
0x172e   :  { %1860 = vst [vmem:[#allocation4 + $0x7] sm:$0x1] %v1859_v32  ;;  %v1862_v33 = vpack.c.bf16 %v1859_v32, %v1859_v32 }
0x1730   :  { %3760 = vmatmul.mubr.bf16.vlgmr.msra.gmra.mrb[36].mxu0 %v1862_v33  ;;  %v4117_v33 = vld [vmem:[%s5412_s7 + $0x10] sm:$0xff]  }
0x1731   :  { %3799 = vmatprep.mubr.msk.bf16.mxu0 %vm4360_vm0, %v4361_v1  ;;  %3784 = vmatpush3.bf16.msra.mxu0 %v4107_v56 }
0x1732   :  { %3785 = vmatprep.subr.bf16.mxu0 %v4361_v1 }
0x1735   :  { %3786 = vmatpush3.bf16.msra.mxu0 %v4108_v57 }
0x1736   :  { %3787 = vmatprep.subr.bf16.mxu0 %v4361_v1 }
0x1739   :  { %3788 = vmatpush3.bf16.msra.mxu0 %v4109_v62 }
0x173a   :  { %3789 = vmatprep.subr.bf16.mxu0 %v4361_v1 }
0x173d   :  { %3790 = vmatpush3.bf16.msra.mxu0 %v4110_v4  ;;  %v4129_v4 = vld [vmem:[%s5412_s7 + $0x30] sm:$0xff]  }
0x173e   :  { %3791 = vmatprep.subr.bf16.mxu0 %v4361_v1 }
0x1741   :  { %3792 = vmatpush3.bf16.msra.mxu0 %v4111_v5  ;;  %v4130_v5 = vld [vmem:[%s5412_s7 + $0x38] sm:$0xff]  }
0x1742   :  { %3793 = vmatprep.subr.bf16.mxu0 %v4361_v1 }
0x1745   :  { %3794 = vmatpush3.bf16.msra.mxu0 %v4112_v18 }
0x1746   :  { %3795 = vmatprep.subr.bf16.mxu0 %v4361_v1 }
0x1749   :  { %3796 = vmatpush3.bf16.msra.mxu0 %v4113_v20 }
0x174a   :  { %3797 = vmatprep.subr.bf16.mxu0 %v4361_v1 }
0x174d   :  { %3798 = vmatpush3.bf16.msra.mxu0 %v4114_v21 }
0x174e   :  { %3823 = vmatprep.subr.bf16.mxu0 %v4361_v1 }
0x1803   :  { %v1961_v37 = vpop.f32.mrb[36].mxu0 }
0x1804   :  { %v1967_v38 = vadd.f32 %v1961_v37, %v1861_v36  ;;  %v3761_v0 = vpop.f32.mrb[37].mxu0  ;;  %v4118_v37 = vld [vmem:[%s5412_s7 + $0x18] sm:$0xff]  }
0x1805   :  { %v1964_v40 = vpop.f32.mrb[38].mxu0  ;;  %v4119_v0 = vld [vmem:[%s5412_s7 + $0x20] sm:$0xff]  }
0x1806   :  { %v1968_v41 = vmul.f32 0.5, %v1967_v38  ;;  %4251 = vtanh.f32 %v1967_v38  ;;  %v3762_v42 = vpop.f32.mrb[39].mxu0 }
0x1808   :  { %4253 = vtanh.f32 %v1968_v41  ;;  %v4120_v41 = vld [vmem:[%s5412_s7 + $0x28] sm:$0xff]  }
0x1810   :  { %v4252_v45 = vpop.eup %4251 }
0x1811   :  { %1975 = vrot.lane.b32.xlu1 %v4252_v45, %s4365_s18 }
0x1812   :  { %v4254_v46 = vpop.eup %4253 }
0x1813   :  { %v1970_v48 = vmul.f32 0.5, %v4254_v46 }
0x1815   :  { %v1971_v9 = vadd.f32 0.5, %v1970_v48 }
0x1817   :  { %1973 = vrot.lane.b32.xlu0 %v1971_v9, %s4364_s4 }
0x181b   :  { %1977 = vrot.lane.b32.xlu0 %v1971_v9, %s4363_s2 }
0x1883   :  { %v1976_v12 = vpop.permute.xlu1 %1975 }
0x1884   :  { %v1980_v50 = vmul.f32 %v1976_v12, %v1971_v9 }
0x1889   :  { %v1974_v49 = vpop.permute.xlu0 %1973 }
0x188a   :  { %v1979_v51 = vmul.f32 %v1974_v49, %v1857_v29  ;;  %v2109_v29 = vld [vmem:[#allocation3 + $0xa] sm:$0x1] }
0x188c   :  { %v1981_v47 = vadd.f32 %v1980_v50, %v1979_v51  ;;  %v4123_v50 = vld [vmem:[%s5412_s7] sm:$0xff]   ;;  %v4124_v51 = vld [vmem:[%s5412_s7 + $0x8] sm:$0xff]  }
0x188d   :  { %v1978_v53 = vpop.permute.xlu0 %1977 }
0x188e   :  { %4255 = vtanh.f32 %v1981_v47 }
0x1898   :  { %v4256_v52 = vpop.eup %4255 }
0x1899   :  { %v1983_v54 = vmul.f32 %v4256_v52, %v1978_v53 }
0x189b   :  { %1984 = vst [vmem:[#allocation4 + $0x8] sm:$0x1] %v1983_v54  ;;  %v1986_v55 = vpack.c.bf16 %v1983_v54, %v1983_v54 }
0x189d   :  { %3780 = vmatmul.mubr.bf16.vlgmr.msra.gmra.mrb[36].mxu1 %v1986_v55  ;;  %v4125_v55 = vld [vmem:[%s5412_s7 + $0x10] sm:$0xff]  }
0x189e   :  { %3819 = vmatprep.mubr.msk.bf16.mxu1 %vm4360_vm0, %v4361_v1  ;;  %3804 = vmatpush3.bf16.msra.mxu1 %v4115_v27 }
0x189f   :  { %3805 = vmatprep.subr.bf16.mxu1 %v4361_v1 }
0x18a2   :  { %3806 = vmatpush3.bf16.msra.mxu1 %v4116_v28 }
0x18a3   :  { %3807 = vmatprep.subr.bf16.mxu1 %v4361_v1 }
0x18a6   :  { %3808 = vmatpush3.bf16.msra.mxu1 %v4117_v33 }
0x18a7   :  { %3809 = vmatprep.subr.bf16.mxu1 %v4361_v1 }
0x18aa   :  { %3810 = vmatpush3.bf16.msra.mxu1 %v4118_v37  ;;  %v4137_v37 = vld [vmem:[%s5412_s7 + $0x30] sm:$0xff]  }
0x18ab   :  { %3811 = vmatprep.subr.bf16.mxu1 %v4361_v1 }
0x18ae   :  { %3812 = vmatpush3.bf16.msra.mxu1 %v4119_v0 }
0x18af   :  { %3813 = vmatprep.subr.bf16.mxu1 %v4361_v1 }
0x18b2   :  { %3814 = vmatpush3.bf16.msra.mxu1 %v4120_v41 }
0x18b3   :  { %3815 = vmatprep.subr.bf16.mxu1 %v4361_v1 }
0x18b6   :  { %3816 = vmatpush3.bf16.msra.mxu1 %v4121_v43 }
0x18b7   :  { %3817 = vmatprep.subr.bf16.mxu1 %v4361_v1 }
0x18ba   :  { %3818 = vmatpush3.bf16.msra.mxu1 %v4122_v44 }
0x18bb   :  { %3843 = vmatprep.subr.bf16.mxu1 %v4361_v1 }
0x1970   :  { %v2085_v59 = vpop.f32.mrb[36].mxu1 }
0x1971   :  { %v2091_v60 = vadd.f32 %v2085_v59, %v1985_v58  ;;  %v3781_v61 = vpop.f32.mrb[37].mxu1  ;;  %v4126_v59 = vld [vmem:[%s5412_s7 + $0x18] sm:$0xff]  }
0x1972   :  { %v2088_v63 = vpop.f32.mrb[38].mxu1  ;;  %v4127_v61 = vld [vmem:[%s5412_s7 + $0x20] sm:$0xff]  }
0x1973   :  { %v2092_v2 = vmul.f32 0.5, %v2091_v60  ;;  %4257 = vtanh.f32 %v2091_v60  ;;  %v3782_v3 = vpop.f32.mrb[39].mxu1 }
0x1975   :  { %4259 = vtanh.f32 %v2092_v2  ;;  %v4128_v2 = vld [vmem:[%s5412_s7 + $0x28] sm:$0xff]  }
0x197d   :  { %v4258_v6 = vpop.eup %4257 }
0x197e   :  { %2099 = vrot.lane.b32.xlu0 %v4258_v6, %s4365_s18 }
0x197f   :  { %v4260_v8 = vpop.eup %4259 }
0x1980   :  { %v2094_v10 = vmul.f32 0.5, %v4260_v8 }
0x1982   :  { %v2095_v19 = vadd.f32 0.5, %v2094_v10 }
0x1984   :  { %2097 = vrot.lane.b32.xlu1 %v2095_v19, %s4364_s4 }
0x1988   :  { %2101 = vrot.lane.b32.xlu1 %v2095_v19, %s4363_s2 }
0x19f0   :  { %v2100_v13 = vpop.permute.xlu0 %2099 }
0x19f1   :  { %v2104_v14 = vmul.f32 %v2100_v13, %v2095_v19 }
0x19f6   :  { %v2098_v22 = vpop.permute.xlu1 %2097 }
0x19f7   :  { %v2103_v23 = vmul.f32 %v2098_v22, %v1981_v47  ;;  %v2233_v47 = vld [vmem:[#allocation3 + $0xb] sm:$0x1] }
0x19f9   :  { %v2105_v24 = vadd.f32 %v2104_v14, %v2103_v23  ;;  %v4131_v14 = vld [vmem:[%s5412_s7] sm:$0xff]   ;;  %v4132_v23 = vld [vmem:[%s5412_s7 + $0x8] sm:$0xff]  }
0x19fa   :  { %v2102_v16 = vpop.permute.xlu1 %2101 }
0x19fb   :  { %4261 = vtanh.f32 %v2105_v24 }
0x1a05   :  { %v4262_v15 = vpop.eup %4261 }
0x1a06   :  { %v2107_v25 = vmul.f32 %v4262_v15, %v2102_v16 }
0x1a08   :  { %2108 = vst [vmem:[#allocation4 + $0x9] sm:$0x1] %v2107_v25  ;;  %v2110_v26 = vpack.c.bf16 %v2107_v25, %v2107_v25 }
0x1a0a   :  { %3800 = vmatmul.mubr.bf16.vlgmr.msra.gmra.mrb[40].mxu0 %v2110_v26  ;;  %v4133_v26 = vld [vmem:[%s5412_s7 + $0x10] sm:$0xff]  }
0x1a0b   :  { %3839 = vmatprep.mubr.msk.bf16.mxu0 %vm4360_vm0, %v4361_v1  ;;  %3824 = vmatpush3.bf16.msra.mxu0 %v4123_v50 }
0x1a0c   :  { %3825 = vmatprep.subr.bf16.mxu0 %v4361_v1 }
0x1a0f   :  { %3826 = vmatpush3.bf16.msra.mxu0 %v4124_v51 }
0x1a10   :  { %3827 = vmatprep.subr.bf16.mxu0 %v4361_v1 }
0x1a13   :  { %3828 = vmatpush3.bf16.msra.mxu0 %v4125_v55 }
0x1a14   :  { %3829 = vmatprep.subr.bf16.mxu0 %v4361_v1 }
0x1a17   :  { %3830 = vmatpush3.bf16.msra.mxu0 %v4126_v59  ;;  %v4145_v59 = vld [vmem:[%s5412_s7 + $0x30] sm:$0xff]  }
0x1a18   :  { %3831 = vmatprep.subr.bf16.mxu0 %v4361_v1 }
0x1a1b   :  { %3832 = vmatpush3.bf16.msra.mxu0 %v4127_v61 }
0x1a1c   :  { %3833 = vmatprep.subr.bf16.mxu0 %v4361_v1 }
0x1a1f   :  { %3834 = vmatpush3.bf16.msra.mxu0 %v4128_v2 }
0x1a20   :  { %3835 = vmatprep.subr.bf16.mxu0 %v4361_v1 }
0x1a23   :  { %3836 = vmatpush3.bf16.msra.mxu0 %v4129_v4 }
0x1a24   :  { %3837 = vmatprep.subr.bf16.mxu0 %v4361_v1 }
0x1a27   :  { %3838 = vmatpush3.bf16.msra.mxu0 %v4130_v5 }
0x1a28   :  { %3863 = vmatprep.subr.bf16.mxu0 %v4361_v1 }
0x1add   :  { %v2209_v30 = vpop.f32.mrb[40].mxu0 }
0x1ade   :  { %v2215_v31 = vadd.f32 %v2209_v30, %v2109_v29  ;;  %v3801_v32 = vpop.f32.mrb[41].mxu0  ;;  %v4134_v30 = vld [vmem:[%s5412_s7 + $0x18] sm:$0xff]  }
0x1adf   :  { %v2212_v34 = vpop.f32.mrb[42].mxu0  ;;  %v4135_v32 = vld [vmem:[%s5412_s7 + $0x20] sm:$0xff]  }
0x1ae0   :  { %v2216_v35 = vmul.f32 0.5, %v2215_v31  ;;  %4263 = vtanh.f32 %v2215_v31  ;;  %v3802_v36 = vpop.f32.mrb[43].mxu0 }
0x1ae2   :  { %4265 = vtanh.f32 %v2216_v35  ;;  %v4136_v35 = vld [vmem:[%s5412_s7 + $0x28] sm:$0xff]  }
0x1aea   :  { %v4264_v38 = vpop.eup %4263 }
0x1aeb   :  { %2223 = vrot.lane.b32.xlu1 %v4264_v38, %s4365_s18  ;;  %v4138_v38 = vld [vmem:[%s5412_s7 + $0x38] sm:$0xff]  }
0x1aec   :  { %v4266_v39 = vpop.eup %4265 }
0x1aed   :  { %v2218_v40 = vmul.f32 0.5, %v4266_v39 }
0x1aef   :  { %v2219_v42 = vadd.f32 0.5, %v2218_v40 }
0x1af1   :  { %2221 = vrot.lane.b32.xlu0 %v2219_v42, %s4364_s4 }
0x1af5   :  { %2225 = vrot.lane.b32.xlu0 %v2219_v42, %s4363_s2 }
0x1b5d   :  { %v2224_v45 = vpop.permute.xlu1 %2223 }
0x1b5e   :  { %v2228_v48 = vmul.f32 %v2224_v45, %v2219_v42 }
0x1b63   :  { %v2222_v46 = vpop.permute.xlu0 %2221 }
0x1b64   :  { %v2227_v7 = vmul.f32 %v2222_v46, %v2105_v24  ;;  %v2357_v24 = vld [vmem:[#allocation3 + $0xc] sm:$0x1] }
0x1b66   :  { %v2229_v9 = vadd.f32 %v2228_v48, %v2227_v7  ;;  %v4139_v48 = vld [vmem:[%s5412_s7] sm:$0xff]   ;;  %v4140_v7 = vld [vmem:[%s5412_s7 + $0x8] sm:$0xff]  }
0x1b67   :  { %v2226_v17 = vpop.permute.xlu0 %2225 }
0x1b68   :  { %4267 = vtanh.f32 %v2229_v9 }
0x1b72   :  { %v4268_v11 = vpop.eup %4267 }
0x1b73   :  { %v2231_v12 = vmul.f32 %v4268_v11, %v2226_v17 }
0x1b75   :  { %2232 = vst [vmem:[#allocation4 + $0xa] sm:$0x1] %v2231_v12  ;;  %v2234_v49 = vpack.c.bf16 %v2231_v12, %v2231_v12 }
0x1b77   :  { %3820 = vmatmul.mubr.bf16.vlgmr.msra.gmra.mrb[40].mxu1 %v2234_v49  ;;  %v4141_v49 = vld [vmem:[%s5412_s7 + $0x10] sm:$0xff]  }
0x1b78   :  { %3859 = vmatprep.mubr.msk.bf16.mxu1 %vm4360_vm0, %v4361_v1  ;;  %3844 = vmatpush3.bf16.msra.mxu1 %v4131_v14  ;;  %v4149_v14 = vld [vmem:[%s5412_s7 + $0x10] sm:$0xff]  }
0x1b79   :  { %3845 = vmatprep.subr.bf16.mxu1 %v4361_v1 }
0x1b7c   :  { %3846 = vmatpush3.bf16.msra.mxu1 %v4132_v23 }
0x1b7d   :  { %3847 = vmatprep.subr.bf16.mxu1 %v4361_v1 }
0x1b80   :  { %3848 = vmatpush3.bf16.msra.mxu1 %v4133_v26  ;;  %v4151_v26 = vld [vmem:[%s5412_s7 + $0x20] sm:$0xff]  }
0x1b81   :  { %3849 = vmatprep.subr.bf16.mxu1 %v4361_v1 }
0x1b84   :  { %3850 = vmatpush3.bf16.msra.mxu1 %v4134_v30  ;;  %v4152_v30 = vld [vmem:[%s5412_s7 + $0x28] sm:$0xff]  }
0x1b85   :  { %3851 = vmatprep.subr.bf16.mxu1 %v4361_v1 }
0x1b88   :  { %3852 = vmatpush3.bf16.msra.mxu1 %v4135_v32  ;;  %v4154_v32 = vld [vmem:[%s5412_s7 + $0x38] sm:$0xff]  }
0x1b89   :  { %3853 = vmatprep.subr.bf16.mxu1 %v4361_v1 }
0x1b8c   :  { %3854 = vmatpush3.bf16.msra.mxu1 %v4136_v35 }
0x1b8d   :  { %3855 = vmatprep.subr.bf16.mxu1 %v4361_v1 }
0x1b90   :  { %3856 = vmatpush3.bf16.msra.mxu1 %v4137_v37 }
0x1b91   :  { %3857 = vmatprep.subr.bf16.mxu1 %v4361_v1 }
0x1b94   :  { %3858 = vmatpush3.bf16.msra.mxu1 %v4138_v38 }
0x1b95   :  { %3883 = vmatprep.subr.bf16.mxu1 %v4361_v1 }
0x1c4a   :  { %v2333_v52 = vpop.f32.mrb[40].mxu1 }
0x1c4b   :  { %v2339_v53 = vadd.f32 %v2333_v52, %v2233_v47  ;;  %v3821_v54 = vpop.f32.mrb[41].mxu1  ;;  %v4142_v52 = vld [vmem:[%s5412_s7 + $0x18] sm:$0xff]  }
0x1c4c   :  { %v2336_v56 = vpop.f32.mrb[42].mxu1  ;;  %v4143_v54 = vld [vmem:[%s5412_s7 + $0x20] sm:$0xff]  }
0x1c4d   :  { %v2340_v57 = vmul.f32 0.5, %v2339_v53  ;;  %4269 = vtanh.f32 %v2339_v53  ;;  %v3822_v58 = vpop.f32.mrb[43].mxu1 }
0x1c4e   :  { %v4144_v58 = vld [vmem:[%s5412_s7 + $0x28] sm:$0xff]  }
0x1c4f   :  { %4271 = vtanh.f32 %v2340_v57 }
0x1c57   :  { %v4270_v60 = vpop.eup %4269 }
0x1c58   :  { %2347 = vrot.lane.b32.xlu0 %v4270_v60, %s4365_s18  ;;  %v4146_v60 = vld [vmem:[%s5412_s7 + $0x38] sm:$0xff]  }
0x1c59   :  { %v4272_v62 = vpop.eup %4271 }
0x1c5a   :  { %v2342_v63 = vmul.f32 0.5, %v4272_v62 }
0x1c5c   :  { %v2343_v3 = vadd.f32 0.5, %v2342_v63 }
0x1c5e   :  { %2345 = vrot.lane.b32.xlu1 %v2343_v3, %s4364_s4 }
0x1c62   :  { %2349 = vrot.lane.b32.xlu1 %v2343_v3, %s4363_s2 }
0x1cca   :  { %v2348_v6 = vpop.permute.xlu0 %2347 }
0x1ccb   :  { %v2352_v10 = vmul.f32 %v2348_v6, %v2343_v3 }
0x1cd0   :  { %v2346_v8 = vpop.permute.xlu1 %2345 }
0x1cd1   :  { %v2351_v18 = vmul.f32 %v2346_v8, %v2229_v9  ;;  %v2481_v9 = vld [vmem:[#allocation3 + $0xd] sm:$0x1] }
0x1cd3   :  { %v2353_v19 = vadd.f32 %v2352_v10, %v2351_v18  ;;  %v2853_v10 = vld [vmem:[#allocation4] sm:$0xff]  ;;  %v4147_v18 = vld [vmem:[%s5412_s7] sm:$0xff]  }
0x1cd4   :  { %v2350_v21 = vpop.permute.xlu1 %2349 }
0x1cd5   :  { %4273 = vtanh.f32 %v2353_v19 }
0x1cdf   :  { %v4274_v20 = vpop.eup %4273 }
0x1ce0   :  { %v2355_v13 = vmul.f32 %v4274_v20, %v2350_v21  ;;  %v2605_v20 = vld [vmem:[#allocation3 + $0xe] sm:$0x1] }
0x1ce2   :  { %2356 = vst [vmem:[#allocation4 + $0xb] sm:$0x1] %v2355_v13  ;;  %v2358_v22 = vpack.c.bf16 %v2355_v13, %v2355_v13 }
0x1ce4   :  { %3840 = vmatmul.mubr.bf16.vlgmr.msra.gmra.mrb[44].mxu0 %v2358_v22 }
0x1ce5   :  { %3879 = vmatprep.mubr.msk.bf16.mxu0 %vm4360_vm0, %v4361_v1  ;;  %3864 = vmatpush3.bf16.msra.mxu0 %v4139_v48  ;;  %v2857_v48 = vld [vmem:[%s5414_s9 + $0x10] sm:$0xff] }
0x1ce6   :  { %3865 = vmatprep.subr.bf16.mxu0 %v4361_v1 }
0x1ce9   :  { %3866 = vmatpush3.bf16.msra.mxu0 %v4140_v7  ;;  %v2858_v7 = vld [vmem:[%s5414_s9 + $0x18] sm:$0xff] }
0x1cea   :  { %3867 = vmatprep.subr.bf16.mxu0 %v4361_v1 }
0x1ced   :  { %3868 = vmatpush3.bf16.msra.mxu0 %v4141_v49  ;;  %v2859_v49 = vld [vmem:[%s5414_s9 + $0x20] sm:$0xff] }
0x1cee   :  { %3869 = vmatprep.subr.bf16.mxu0 %v4361_v1 }
0x1cf1   :  { %3870 = vmatpush3.bf16.msra.mxu0 %v4142_v52  ;;  %v2861_v52 = vld [vmem:[%s5414_s9 + $0x30] sm:$0xff] }
0x1cf2   :  { %3871 = vmatprep.subr.bf16.mxu0 %v4361_v1 }
0x1cf5   :  { %3872 = vmatpush3.bf16.msra.mxu0 %v4143_v54 }
0x1cf6   :  { %3873 = vmatprep.subr.bf16.mxu0 %v4361_v1 }
0x1cf9   :  { %3874 = vmatpush3.bf16.msra.mxu0 %v4144_v58  ;;  %v2863_v58 = vld [vmem:[%s5414_s9 + $0x40] sm:$0xff] }
0x1cfa   :  { %3875 = vmatprep.subr.bf16.mxu0 %v4361_v1 }
0x1cfd   :  { %3876 = vmatpush3.bf16.msra.mxu0 %v4145_v59  ;;  %v2864_v59 = vld [vmem:[%s5414_s9 + $0x48] sm:$0xff] }
0x1cfe   :  { %3877 = vmatprep.subr.bf16.mxu0 %v4361_v1 }
0x1d01   :  { %3878 = vmatpush3.bf16.msra.mxu0 %v4146_v60  ;;  %v3992_v60 = vpack.c.bf16 %v2864_v59, %v2863_v58 }
0x1db7   :  { %v2457_v15 = vpop.f32.mrb[44].mxu0 }
0x1db8   :  { %v2463_v16 = vadd.f32 %v2457_v15, %v2357_v24  ;;  %v3841_v25 = vpop.f32.mrb[45].mxu0 }
0x1db9   :  { %v2460_v27 = vpop.f32.mrb[46].mxu0 }
0x1dba   :  { %v2464_v28 = vmul.f32 0.5, %v2463_v16  ;;  %4275 = vtanh.f32 %v2463_v16  ;;  %v3842_v29 = vpop.f32.mrb[47].mxu0  ;;  %v4150_v16 = vld [vmem:[%s5412_s7 + $0x18] sm:$0xff]  }
0x1dbc   :  { %4277 = vtanh.f32 %v2464_v28 }
0x1dc4   :  { %v4276_v31 = vpop.eup %4275 }
0x1dc5   :  { %2471 = vrot.lane.b32.xlu1 %v4276_v31, %s4365_s18  ;;  %v4153_v31 = vld [vmem:[%s5412_s7 + $0x30] sm:$0xff]  }
0x1dc6   :  { %v4278_v33 = vpop.eup %4277 }
0x1dc7   :  { %v2466_v34 = vmul.f32 0.5, %v4278_v33 }
0x1dc9   :  { %v2467_v36 = vadd.f32 0.5, %v2466_v34 }
0x1dcb   :  { %2469 = vrot.lane.b32.xlu0 %v2467_v36, %s4364_s4 }
0x1dcf   :  { %2473 = vrot.lane.b32.xlu0 %v2467_v36, %s4363_s2 }
0x1e37   :  { %v2472_v0 = vpop.permute.xlu1 %2471 }
0x1e38   :  { %v2476_v40 = vmul.f32 %v2472_v0, %v2467_v36 }
0x1e3d   :  { %v2470_v39 = vpop.permute.xlu0 %2469 }
0x1e3e   :  { %v2475_v41 = vmul.f32 %v2470_v39, %v2353_v19  ;;  %v4148_v19 = vld [vmem:[%s5412_s7 + $0x8] sm:$0xff]  }
0x1e40   :  { %v2477_v42 = vadd.f32 %v2476_v40, %v2475_v41  ;;  %v2855_v41 = vld [vmem:[%s5414_s9] sm:$0xff] }
0x1e41   :  { %v2474_v44 = vpop.permute.xlu0 %2473 }
0x1e42   :  { %4279 = vtanh.f32 %v2477_v42 }
0x1e4c   :  { %v4280_v43 = vpop.eup %4279 }
0x1e4d   :  { %v2479_v45 = vmul.f32 %v4280_v43, %v2474_v44  ;;  %v2729_v43 = vld [vmem:[#allocation3 + $0xf] sm:$0x1] }
0x1e4f   :  { %2480 = vst [vmem:[#allocation4 + $0xc] sm:$0x1] %v2479_v45  ;;  %v2482_v46 = vpack.c.bf16 %v2479_v45, %v2479_v45 }
0x1e51   :  { %3860 = vmatmul.mubr.bf16.vlgmr.msra.gmra.mrb[44].mxu1 %v2482_v46 }
0x1e52   :  { %3899 = vmatprep.mubr.msk.bf16.mxu1 %vm4360_vm0, %v4361_v1  ;;  %3884 = vmatpush3.bf16.msra.mxu1 %v4147_v18 }
0x1e53   :  { %3885 = vmatprep.subr.bf16.mxu1 %v4361_v1 }
0x1e56   :  { %3886 = vmatpush3.bf16.msra.mxu1 %v4148_v19 }
0x1e57   :  { %3887 = vmatprep.subr.bf16.mxu1 %v4361_v1 }
0x1e5a   :  { %3888 = vmatpush3.bf16.msra.mxu1 %v4149_v14 }
0x1e5b   :  { %3889 = vmatprep.subr.bf16.mxu1 %v4361_v1 }
0x1e5e   :  { %3890 = vmatpush3.bf16.msra.mxu1 %v4150_v16 }
0x1e5f   :  { %3891 = vmatprep.subr.bf16.mxu1 %v4361_v1 }
0x1e62   :  { %3892 = vmatpush3.bf16.msra.mxu1 %v4151_v26 }
0x1e63   :  { %3893 = vmatprep.subr.bf16.mxu1 %v4361_v1 }
0x1e66   :  { %3894 = vmatpush3.bf16.msra.mxu1 %v4152_v30 }
0x1e67   :  { %3895 = vmatprep.subr.bf16.mxu1 %v4361_v1 }
0x1e6a   :  { %3896 = vmatpush3.bf16.msra.mxu1 %v4153_v31 }
0x1e6b   :  { %3897 = vmatprep.subr.bf16.mxu1 %v4361_v1  ;;  %v2856_v1 = vld [vmem:[%s5414_s9 + $0x8] sm:$0xff] }
0x1e6e   :  { %3898 = vmatpush3.bf16.msra.mxu1 %v4154_v32 }
0x1f24   :  { %v2581_v11 = vpop.f32.mrb[44].mxu1 }
0x1f25   :  { %v2587_v17 = vadd.f32 %v2581_v11, %v2481_v9  ;;  %v3861_v12 = vpop.f32.mrb[45].mxu1  ;;  %v3980_v11 = vpack.c.bf16 %v2858_v7, %v2857_v48 }
0x1f26   :  { %v2584_v50 = vpop.f32.mrb[46].mxu1 }
0x1f27   :  { %v2588_v51 = vmul.f32 0.5, %v2587_v17  ;;  %4281 = vtanh.f32 %v2587_v17  ;;  %v3862_v47 = vpop.f32.mrb[47].mxu1  ;;  %v2860_v50 = vld [vmem:[%s5414_s9 + $0x28] sm:$0xff] }
0x1f29   :  { %4283 = vtanh.f32 %v2588_v51  ;;  %v3984_v51 = vpack.c.bf16 %v2860_v50, %v2859_v49 }
0x1f31   :  { %v4282_v53 = vpop.eup %4281 }
0x1f32   :  { %2595 = vrot.lane.b32.xlu0 %v4282_v53, %s4365_s18  ;;  %v2862_v53 = vld [vmem:[%s5414_s9 + $0x38] sm:$0xff] }
0x1f33   :  { %v4284_v55 = vpop.eup %4283 }
0x1f34   :  { %v2590_v56 = vmul.f32 0.5, %v4284_v55  ;;  %v3988_v55 = vpack.c.bf16 %v2862_v53, %v2861_v52 }
0x1f36   :  { %v2591_v57 = vadd.f32 0.5, %v2590_v56 }
0x1f38   :  { %2593 = vrot.lane.b32.xlu1 %v2591_v57, %s4364_s4 }
0x1f3c   :  { %2597 = vrot.lane.b32.xlu1 %v2591_v57, %s4363_s2 }
0x1fa4   :  { %v2596_v61 = vpop.permute.xlu0 %2595 }
0x1fa5   :  { %v2600_v63 = vmul.f32 %v2596_v61, %v2591_v57  ;;  %v2865_v61 = vld [vmem:[%s5414_s9 + $0x50] sm:$0xff] }
0x1faa   :  { %v2594_v62 = vpop.permute.xlu1 %2593 }
0x1fab   :  { %v2599_v2 = vmul.f32 %v2594_v62, %v2477_v42  ;;  %v3976_v42 = vpack.c.bf16 %v2856_v1, %v2855_v41  ;;  %v2866_v62 = vld [vmem:[%s5414_s9 + $0x58] sm:$0xff] }
0x1fad   :  { %v2601_v3 = vadd.f32 %v2600_v63, %v2599_v2  ;;  %3977 = vmatprep.subr.bf16.mxu0 %v3976_v42  ;;  %v3996_v63 = vpack.c.bf16 %v2866_v62, %v2865_v61  ;;  %v2867_v2 = vld [vmem:[%s5414_s9 + $0x60] sm:$0xff] }
0x1fae   :  { %v2598_v5 = vpop.permute.xlu1 %2597 }
0x1faf   :  { %4285 = vtanh.f32 %v2601_v3 }
0x1fb9   :  { %v4286_v4 = vpop.eup %4285 }
0x1fba   :  { %v2603_v6 = vmul.f32 %v4286_v4, %v2598_v5  ;;  %v2869_v4 = vld [vmem:[%s5414_s9 + $0x70] sm:$0xff] }
0x1fbc   :  { %2604 = vst [vmem:[#allocation4 + $0xd] sm:$0x1] %v2603_v6  ;;  %v2606_v8 = vpack.c.bf16 %v2603_v6, %v2603_v6  ;;  %v2870_v6 = vld [vmem:[%s5414_s9 + $0x78] sm:$0xff] }
0x1fbe   :  { %3880 = vmatmul.mubr.bf16.vlgmr.msra.gmra.mrb[48].mxu0 %v2606_v8  ;;  %v4004_v8 = vpack.c.bf16 %v2870_v6, %v2869_v4 }
0x1fbf   :  { %3935 = vmatprep.mubr.f32.mxu0 %v2853_v10  ;;  %3979 = vmatpush3.bf16.msra.mxu0 %v3976_v42 }
0x1fc0   :  { %3981 = vmatprep.subr.bf16.mxu0 %v3980_v11 }
0x1fc3   :  { %3983 = vmatpush3.bf16.msra.mxu0 %v3980_v11 }
0x1fc4   :  { %3985 = vmatprep.subr.bf16.mxu0 %v3984_v51 }
0x1fc7   :  { %3987 = vmatpush3.bf16.msra.mxu0 %v3984_v51 }
0x1fc8   :  { %3989 = vmatprep.subr.bf16.mxu0 %v3988_v55 }
0x1fcb   :  { %3991 = vmatpush3.bf16.msra.mxu0 %v3988_v55 }
0x1fcc   :  { %3993 = vmatprep.subr.bf16.mxu0 %v3992_v60 }
0x1fcf   :  { %3995 = vmatpush3.bf16.msra.mxu0 %v3992_v60 }
0x1fd0   :  { %3997 = vmatprep.subr.bf16.mxu0 %v3996_v63 }
0x1fd3   :  { %3999 = vmatpush3.bf16.msra.mxu0 %v3996_v63 }
0x2091   :  { %v2705_v21 = vpop.f32.mrb[48].mxu0 }
0x2092   :  { %v2711_v13 = vadd.f32 %v2705_v21, %v2605_v20  ;;  %v3881_v22 = vpop.f32.mrb[49].mxu0 }
0x2093   :  { %v2708_v23 = vpop.f32.mrb[50].mxu0 }
0x2094   :  { %v2712_v24 = vmul.f32 0.5, %v2711_v13  ;;  %4287 = vtanh.f32 %v2711_v13  ;;  %v3882_v15 = vpop.f32.mrb[51].mxu0 }
0x2096   :  { %4289 = vtanh.f32 %v2712_v24  ;;  %v2872_v24 = vstv %s5415_s10 }
0x209e   :  { %v4288_v25 = vpop.eup %4287 }
0x209f   :  { %2719 = vrot.lane.b32.xlu1 %v4288_v25, %s4365_s18 }
0x20a0   :  { %v4290_v27 = vpop.eup %4289 }
0x20a1   :  { %v2714_v28 = vmul.f32 0.5, %v4290_v27 }
0x20a3   :  { %v2715_v29 = vadd.f32 0.5, %v2714_v28 }
0x20a5   :  { %2717 = vrot.lane.b32.xlu0 %v2715_v29, %s4364_s4 }
0x20a9   :  { %2721 = vrot.lane.b32.xlu0 %v2715_v29, %s4363_s2 }
0x2111   :  { %v2720_v33 = vpop.permute.xlu1 %2719 }
0x2112   :  { %v2724_v35 = vmul.f32 %v2720_v33, %v2715_v29 }
0x2117   :  { %v2718_v34 = vpop.permute.xlu0 %2717 }
0x2118   :  { %v2723_v36 = vmul.f32 %v2718_v34, %v2601_v3  ;;  %v2868_v3 = vld [vmem:[%s5414_s9 + $0x68] sm:$0xff] }
0x2119   :  { %v4000_v5 = vpack.c.bf16 %v2868_v3, %v2867_v2 }
0x211a   :  { %v5341_v37 = vadd.f32 %v2724_v35, %v2723_v36 }
0x211b   :  { %v2722_v0 = vpop.permute.xlu0 %2721  ;;  %4001 = vmatprep.subr.bf16.mxu0 %v4000_v5 }
0x211c   :  { %4291 = vtanh.f32 %v5341_v37  ;;  %4003 = vmatpush3.bf16.msra.mxu0 %v4000_v5 }
0x211d   :  { %4005 = vmatprep.subr.bf16.mxu0 %v4004_v8 }
0x2120   :  { %4007 = vmatpush3.bf16.msra.mxu0 %v4004_v8 }
0x2126   :  { %v4292_v38 = vpop.eup %4291 }
0x2127   :  { %v2727_v39 = vmul.f32 %v4292_v38, %v2722_v0 }
0x2129   :  { %2728 = vst [vmem:[#allocation4 + $0xe] sm:$0x1] %v2727_v39  ;;  %v2730_v40 = vpack.c.bf16 %v2727_v39, %v2727_v39 }
0x212b   :  { %3900 = vmatmul.mubr.bf16.vlgmr.msra.gmra.mrb[48].mxu1 %v2730_v40 }
0x21fe   :  { %v2829_v44 = vpop.f32.mrb[48].mxu1 }
0x21ff   :  { %v2835_v45 = vadd.f32 %v2829_v44, %v2729_v43  ;;  %v3901_v46 = vpop.f32.mrb[49].mxu1 }
0x2200   :  { %v2832_v9 = vpop.f32.mrb[50].mxu1 }
0x2201   :  { %v2836_v17 = vmul.f32 0.5, %v2835_v45  ;;  %4293 = vtanh.f32 %v2835_v45  ;;  %v3902_v12 = vpop.f32.mrb[51].mxu1 }
0x2203   :  { %4295 = vtanh.f32 %v2836_v17 }
0x220b   :  { %v4294_v47 = vpop.eup %4293 }
0x220c   :  { %2843 = vrot.lane.b32.xlu0 %v4294_v47, %s4365_s18 }
0x220d   :  { %v4296_v54 = vpop.eup %4295 }
0x220e   :  { %v2838_v56 = vmul.f32 0.5, %v4296_v54 }
0x2210   :  { %v2839_v57 = vadd.f32 0.5, %v2838_v56 }
0x2212   :  { %2841 = vrot.lane.b32.xlu1 %v2839_v57, %s4364_s4 }
0x2216   :  { %2845 = vrot.lane.b32.xlu1 %v2839_v57, %s4363_s2 }
0x227e   :  { %v2844_v10 = vpop.permute.xlu0 %2843 }
0x227f   :  { %v2848_v19 = vmul.f32 %v2844_v10, %v2839_v57 }
0x2284   :  { %v2842_v18 = vpop.permute.xlu1 %2841 }
0x2285   :  { %v2847_v20 = vmul.f32 %v2842_v18, %v5341_v37 }
0x2287   :  { %v2849_v21 = vadd.f32 %v2848_v19, %v2847_v20 }
0x2288   :  { %v2846_v22 = vpop.permute.xlu1 %2845 }
0x2289   :  { %4297 = vtanh.f32 %v2849_v21 }
0x2293   :  { %v4298_v13 = vpop.eup %4297 }
0x2294   :  { %v2851_v14 = vmul.f32 %v4298_v13, %v2846_v22 }
0x2296   :  { %2852 = vst [vmem:[#allocation4 + $0xf] sm:$0x1] %v2851_v14 }
0x229d   :  { %v2854_v23 = vld [vmem:[#allocation4 + $0x8] sm:$0xff] }
0x229e   :  { %3936 = vmatmul.mubr.f32.vlgmr.msra.gmra.mrb[18].mxu0 %v2854_v23 }
0x2371   :  { %v3937_v15 = vpop.f32.mrb[18].mxu0 }
0x2372   :  { %v2945_v16 = vadd.f32 %v3937_v15, %v2872_v24  ;;  %v2939_v25 = vpop.f32.mrb[19].mxu0 }
0x2373   :  { %v2940_v26 = vadd.f32 %v2939_v25, %v2872_v24 }
0x2374   :  { %v2949_v27 = vmul.f32 0.5, %v2945_v16 }
0x2375   :  { %v2948_v28 = vmul.f32 0.5, %v2940_v26 }
0x2376   :  { %4299 = vtanh.f32 %v2949_v27 }
0x2377   :  { %4301 = vtanh.f32 %v2948_v28 }
0x2380   :  { %v4300_v29 = vpop.eup %4299 }
0x2381   :  { %v4302_v30 = vpop.eup %4301  ;;  %v2953_v31 = vmul.f32 0.5, %v4300_v29 }
0x2382   :  { %v2952_v32 = vmul.f32 0.5, %v4302_v30 }
0x2383   :  { %v2955_v33 = vadd.f32 0.5, %v2953_v31 }
0x2384   :  { %v2954_v34 = vadd.f32 0.5, %v2952_v32 }
0x2385   :  { %2957 = vst [vmem:[%s5416_s11 + $0x8] sm:$0xff] %v2955_v33 }
0x2386   :  { %2956 = vst [vmem:[%s5416_s11] sm:$0xff] %v2954_v34 }
0x2387   :  { %2962 = vsyncpa [#allocation7], 1 }
0x2388   :  { %2963 = vsyncpa [#allocation9], 1 }

</bundles_post_ra>
